<compile_context>
chip_gen: v6e
topology: v6e:2x2x1
jax: 0.10.0
libtpu: 0.0.40
codegen_flags: <defaults>
</compile_context>

<pallas_src>
import functools

import jax
import jax.numpy as jnp
import numpy as np
from jax import lax
from jax.experimental import pallas as pl
from jax.experimental.pallas import tpu as pltpu


# -----------------------------------------------------------------------------
# Pallas kernel: one (batch, N-tile) step of the forward pass.
# -----------------------------------------------------------------------------
def _attn_prop_kernel(x_ref, src_ref,
                      wq_ref, bq_ref, wk_ref, bk_ref, wv_ref, bv_ref,
                      wcomb_ref, w1x_ref, b1_ref, w2_ref, b2_ref,
                      out_ref,
                      k_vmem, v_vmem,
                      *, num_heads: int):
    nt = pl.program_id(1)

    # K / V projections of `source`: computed once per batch element. The src block,
    # the weights and these scratch buffers stay resident across the (inner,
    # "arbitrary") N-tile axis.
    @pl.when(nt == 0)
    def _():
        src = src_ref[0]                                               # (M, F) bf16
        k = jnp.dot(src, wk_ref[...], preferred_element_type=jnp.float32) + bk_ref[...]
        v = jnp.dot(src, wv_ref[...], preferred_element_type=jnp.float32) + bv_ref[...]
        k_vmem[...] = k.astype(k_vmem.dtype)
        v_vmem[...] = v.astype(v_vmem.dtype)

    x = x_ref[0]                                                       # (TN, F) bf16

    # Q projection. 1/sqrt(Dh) is already folded into wq / bq by the wrapper.
    q = (jnp.dot(x, wq_ref[...], preferred_element_type=jnp.float32)
         + bq_ref[...]).astype(jnp.bfloat16)                           # (TN, F) head-major

    k = k_vmem[...]                                                    # (M, F) bf16
    v = v_vmem[...]                                                    # (M, F) bf16
    wcomb = wcomb_ref[...]                                             # (F, 2F) bf16

    feat = q.shape[-1]
    dh = feat // num_heads

    # First MLP layer pre-activation. BatchNorm (inference) and the merge-conv bias
    # are already folded into w1x / wcomb / b1 by the wrapper.
    h1 = (jnp.dot(x, w1x_ref[...], preferred_element_type=jnp.float32)
          + b1_ref[...])                                               # (TN, 2F) f32

    # Per-head attention; head outputs are accumulated straight into h1 through the
    # folded (merge ∘ w1_message) weight — no concatenates, no (TN, F) message temp.
    for h in range(num_heads):
        sl = slice(h * dh, (h + 1) * dh)
        qh = q[:, sl]                                                  # (TN, Dh) bf16
        kh = k[:, sl]                                                  # (M, Dh) bf16
        vh = v[:, sl]                                                  # (M, Dh) bf16

        # scores = (q / sqrt(Dh)) @ k^T, contraction expressed directly (no transpose).
        s = lax.dot_general(qh, kh, (((1,), (1,)), ((), ())),
                            preferred_element_type=jnp.float32)        # (TN, M) f32
        s = s - jnp.max(s, axis=-1, keepdims=True)
        e = jnp.exp(s)
        p = e * pl.reciprocal(jnp.sum(e, axis=-1, keepdims=True), approx=True)

        oh = jnp.dot(p.astype(jnp.bfloat16), vh,
                     preferred_element_type=jnp.float32)               # (TN, Dh) f32
        h1 += jnp.dot(oh.astype(jnp.bfloat16), wcomb[sl, :],
                      preferred_element_type=jnp.float32)              # (TN, 2F) f32

    h1 = jnp.maximum(h1, 0.0).astype(jnp.bfloat16)                     # ReLU (BN folded)
    out = jnp.dot(h1, w2_ref[...], preferred_element_type=jnp.float32) + b2_ref[...]
    out_ref[0] = out.astype(out_ref.dtype)


# -----------------------------------------------------------------------------
# Wrapper: host-side weight folding + pallas_call.
# -----------------------------------------------------------------------------
def attentional_propagation(x, source, params, num_heads, k=None, *, block_n=128):
    """x: (B, F, N), source: (B, F, M), float32, PyTorch NCW layout. Returns (B, F, N)."""
    if k is not None:
        # TODO(synk): dynamic_attention (top-k) path not implemented in Pallas.
        raise NotImplementedError("only the k=None (dense attention) path is implemented")

    B, F, N = x.shape
    M = source.shape[2]
    H = num_heads
    Dh = F // H

    TN = block_n if (N % block_n == 0) else N      # N-tile size (full N as fallback)
    NT = N // TN

    cdt = jnp.bfloat16
    f32 = jnp.float32

    # NCW -> NWC, fused with the bf16 cast (single XLA op each).
    x_nwc = jnp.transpose(x, (0, 2, 1)).astype(cdt)
    src_nwc = jnp.transpose(source, (0, 2, 1)).astype(cdt)

    # Head-major channel permutation: perm[h*Dh + d] = d*H + h (matches the PyTorch
    # view(B, Dh, H, N) channel split).
    perm = np.arange(F).reshape(Dh, H).T.reshape(-1)
    inv_sqrt_dh = 1.0 / np.sqrt(Dh)

    def row(v):  # (C,) -> (1, C) f32 (VMEM-friendly 2D bias)
        return jnp.asarray(v, f32).reshape(1, -1)

    # Projections: rows head-permuted, transposed to (C_in, C_out); scale folded into Q.
    wq_t = (params["wq"][perm, :].T * inv_sqrt_dh).astype(cdt)          # (F, F)
    bq = row(params["bq"][perm] * inv_sqrt_dh)
    wk_t = params["wk"][perm, :].T.astype(cdt)
    bk = row(params["bk"][perm])
    wv_t = params["wv"][perm, :].T.astype(cdt)
    bv = row(params["bv"][perm])

    # Fold BatchNorm1d (inference) into the first MLP layer.
    eps = 1e-5
    scale = params["bn_gamma"] / jnp.sqrt(params["bn_var"] + eps)       # (2F,)
    shift = params["bn_beta"] - params["bn_mean"] * scale

    w1 = params["w1"]                                                   # (2F, 2F) = (out, in)
    w1x_t = (w1[:, :F].T * scale[None, :]).astype(cdt)                  # x half,  (F, 2F)
    w1m_scaled = w1[:, F:].T * scale[None, :]                           # msg half, (F, 2F) f32
    # Fold merge Conv1d into the message half: wcomb = wm_perm^T @ (w1_msg * bn_scale).
    wm_t = params["wm"][:, perm].T.astype(f32)                          # (F head-major, F)
    wcomb = jnp.dot(wm_t, w1m_scaled).astype(cdt)                       # (F head-major, 2F)
    # Merge bias + MLP bias + BN shift folded into one bias.
    b1_all = row((params["b1"] + jnp.dot(params["bm"], w1[:, F:].T)) * scale + shift)

    w2_t = params["w2"].T.astype(cdt)                                   # (2F, F)
    b2 = row(params["b2"])

    weight_args = (wq_t, bq, wk_t, bk, wv_t, bv, wcomb, w1x_t, b1_all, w2_t, b2)

    def const_spec(a):
        nd = a.ndim
        return pl.BlockSpec(a.shape, lambda b, n, _nd=nd: (0,) * _nd)

    # Explicit VMEM budget (double-buffered tiles + resident weights + scratch +
    # in-kernel working set), clamped so it is valid on v5e/v6e (128 MiB) and v7x (64 MiB).
    def _nbytes(a):
        return int(np.prod(a.shape)) * jnp.dtype(a.dtype).itemsize
    blocks = 2 * (TN * F * 2 + M * F * 2 + TN * F * 4)
    weights = 2 * sum(_nbytes(a) for a in weight_args)
    scratch = 2 * (M * F * 2)
    working = 6 * TN * M * 4 + 12 * TN * F * 4
    vmem_limit = int(min(max(2 * (blocks + weights + scratch + working), 16 << 20), 48 << 20))

    out_nwc = pl.pallas_call(
        functools.partial(_attn_prop_kernel, num_heads=H),
        out_shape=jax.ShapeDtypeStruct((B, N, F), jnp.float32),
        grid_spec=pltpu.PrefetchScalarGridSpec(
            num_scalar_prefetch=0,
            grid=(B, NT),
            in_specs=[
                pl.BlockSpec((1, TN, F), lambda b, n: (b, n, 0)),   # x tile
                pl.BlockSpec((1, M, F), lambda b, n: (b, 0, 0)),    # full source (resident)
            ] + [const_spec(a) for a in weight_args],
            out_specs=pl.BlockSpec((1, TN, F), lambda b, n: (b, n, 0)),
            scratch_shapes=[
                pltpu.VMEM((M, F), cdt),   # K projection, cached per batch element
                pltpu.VMEM((M, F), cdt),   # V projection, cached per batch element
            ],
        ),
        # N-tile axis must be "arbitrary": the K/V scratch is initialized at n_tile == 0
        # and reused by later tiles of the same batch element. B provides megacore work.
        compiler_params=pltpu.CompilerParams(
            dimension_semantics=("parallel", "arbitrary"),
            vmem_limit_bytes=vmem_limit,
        ),
    )(x_nwc, src_nwc, *weight_args)

    return jnp.transpose(out_nwc, (0, 2, 1)).astype(x.dtype)   # back to (B, F, N)


# -----------------------------------------------------------------------------
# Pure-JAX f32 reference (mirrors the PyTorch module) for a sanity check.
# -----------------------------------------------------------------------------
def reference_forward(x, source, params, num_heads):
    B, F, N = x.shape
    H = num_heads
    Dh = F // H

    def conv1d(z, w, b):  # z: (B, C_in, L)
        return jnp.einsum('oc,bcl->bol', w, z) + b[None, :, None]

    q = conv1d(x, params["wq"], params["bq"]).reshape(B, Dh, H, N)
    k = conv1d(source, params["wk"], params["bk"]).reshape(B, Dh, H, -1)
    v = conv1d(source, params["wv"], params["bv"]).reshape(B, Dh, H, -1)
    scores = jnp.einsum('bdhn,bdhm->bhnm', q, k) / (Dh ** 0.5)
    prob = jax.nn.softmax(scores, axis=-1)
    att = jnp.einsum('bhnm,bdhm->bdhn', prob, v).reshape(B, F, N)
    message = conv1d(att, params["wm"], params["bm"])
    cat = jnp.concatenate([x, message], axis=1)
    h1 = conv1d(cat, params["w1"], params["b1"])
    eps = 1e-5
    scale = params["bn_gamma"] / jnp.sqrt(params["bn_var"] + eps)
    shift = params["bn_beta"] - params["bn_mean"] * scale
    h1 = h1 * scale[None, :, None] + shift[None, :, None]
    h1 = jnp.maximum(h1, 0.0)
    return conv1d(h1, params["w2"], params["b2"])


# -----------------------------------------------------------------------------
if __name__ == "__main__":
    # Lane-dense feature dim (multiple of 128) per the perf guidance; N=256 exercises
    # the N-tile grid axis (grid = (2, 2)).
    B, F, H, N, M = 2, 128, 4, 256, 128

    key = jax.random.PRNGKey(0)
    keys = jax.random.split(key, 16)

    def init(kk, shape, s=0.1):
        return (s * jax.random.normal(kk, shape)).astype(jnp.float32)

    params = {
        "wq": init(keys[0], (F, F)), "bq": init(keys[1], (F,)),
        "wk": init(keys[2], (F, F)), "bk": init(keys[3], (F,)),
        "wv": init(keys[4], (F, F)), "bv": init(keys[5], (F,)),
        "wm": init(keys[6], (F, F)), "bm": init(keys[7], (F,)),
        "w1": init(keys[8], (2 * F, 2 * F)), "b1": init(keys[9], (2 * F,)),
        "bn_gamma": 1.0 + init(keys[10], (2 * F,)),
        "bn_beta": init(keys[11], (2 * F,)),
        "bn_mean": init(keys[12], (2 * F,)),
        "bn_var": 1.0 + jnp.abs(init(keys[13], (2 * F,))),
        "w2": init(keys[14], (F, 2 * F)),
        "b2": jnp.zeros((F,), jnp.float32),   # nn.init.constant_(mlp[-1].bias, 0.0)
    }

    x = init(keys[15], (B, F, N), s=1.0)
    source = init(jax.random.PRNGKey(42), (B, F, M), s=1.0)

    out = attentional_propagation(x, source, params, num_heads=H, k=None)
    out = jax.block_until_ready(out)

    ref = reference_forward(x, source, params, num_heads=H)
    assert out.shape == (B, F, N)
    # bf16 MXU operands (f32 accumulation) vs an all-f32 reference.
    np.testing.assert_allclose(np.asarray(out), np.asarray(ref), rtol=2e-2, atol=5e-2)

    print("KERNEL_OK")
</pallas_src>

<mosaic_0001>
module attributes {stable_mosaic.version = 11 : i64} {
  func.func @_attn_prop_kernel(%arg0: i32, %arg1: i32, %arg2: memref<1x128x128xbf16, #tpu.memory_space<vmem>>, %arg3: memref<1x128x128xbf16, #tpu.memory_space<vmem>>, %arg4: memref<128x128xbf16, #tpu.memory_space<vmem>>, %arg5: memref<1x128xf32, #tpu.memory_space<vmem>>, %arg6: memref<128x128xbf16, #tpu.memory_space<vmem>>, %arg7: memref<1x128xf32, #tpu.memory_space<vmem>>, %arg8: memref<128x128xbf16, #tpu.memory_space<vmem>>, %arg9: memref<1x128xf32, #tpu.memory_space<vmem>>, %arg10: memref<128x256xbf16, #tpu.memory_space<vmem>>, %arg11: memref<128x256xbf16, #tpu.memory_space<vmem>>, %arg12: memref<1x256xf32, #tpu.memory_space<vmem>>, %arg13: memref<256x128xbf16, #tpu.memory_space<vmem>>, %arg14: memref<1x128xf32, #tpu.memory_space<vmem>>, %arg15: memref<1x128x128xf32, #tpu.memory_space<vmem>>, %arg16: memref<128x128xbf16, #tpu.memory_space<vmem>>, %arg17: memref<128x128xbf16, #tpu.memory_space<vmem>>) attributes {dimension_semantics = [#tpu.dimension_semantics<parallel>, #tpu.dimension_semantics<arbitrary>], iteration_bounds = array<i64: 2, 2>, scalar_prefetch = 0 : i64, scratch_operands = 2 : i64, tpu.core_type = #tpu.core_type<tc>, window_params = [{transform_indices = @transform_0, window_bounds = array<i64: 1, 128, 128>}, {transform_indices = @transform_1, window_bounds = array<i64: 1, 128, 128>}, {pipeline_mode = #tpu.pipeline_mode<synchronous>, transform_indices = @transform_2, window_bounds = array<i64: 128, 128>}, {pipeline_mode = #tpu.pipeline_mode<synchronous>, transform_indices = @transform_3, window_bounds = array<i64: 1, 128>}, {pipeline_mode = #tpu.pipeline_mode<synchronous>, transform_indices = @transform_4, window_bounds = array<i64: 128, 128>}, {pipeline_mode = #tpu.pipeline_mode<synchronous>, transform_indices = @transform_5, window_bounds = array<i64: 1, 128>}, {pipeline_mode = #tpu.pipeline_mode<synchronous>, transform_indices = @transform_6, window_bounds = array<i64: 128, 128>}, {pipeline_mode = #tpu.pipeline_mode<synchronous>, transform_indices = @transform_7, window_bounds = array<i64: 1, 128>}, {pipeline_mode = #tpu.pipeline_mode<synchronous>, transform_indices = @transform_8, window_bounds = array<i64: 128, 256>}, {pipeline_mode = #tpu.pipeline_mode<synchronous>, transform_indices = @transform_9, window_bounds = array<i64: 128, 256>}, {pipeline_mode = #tpu.pipeline_mode<synchronous>, transform_indices = @transform_10, window_bounds = array<i64: 1, 256>}, {pipeline_mode = #tpu.pipeline_mode<synchronous>, transform_indices = @transform_11, window_bounds = array<i64: 256, 128>}, {pipeline_mode = #tpu.pipeline_mode<synchronous>, transform_indices = @transform_12, window_bounds = array<i64: 1, 128>}, {transform_indices = @transform_13, window_bounds = array<i64: 1, 128, 128>}]} {
    %c0_i32 = arith.constant 0 : i32
    %0 = arith.cmpi eq, %arg1, %c0_i32 : i32
    %1 = arith.extui %0 : i1 to i32
    %c0_i32_0 = arith.constant 0 : i32
    %2 = arith.cmpi ne, %1, %c0_i32_0 : i32
    scf.if %2 {
      %c0_47 = arith.constant 0 : index
      %c0_48 = arith.constant 0 : index
      %c0_49 = arith.constant 0 : index
      %110 = vector.load %arg3[%c0_47, %c0_48, %c0_49] : memref<1x128x128xbf16, #tpu.memory_space<vmem>>, vector<1x128x128xbf16>
      %111 = vector.shape_cast %110 : vector<1x128x128xbf16> to vector<128x128xbf16>
      %c0_50 = arith.constant 0 : index
      %c0_51 = arith.constant 0 : index
      %112 = vector.load %arg6[%c0_50, %c0_51] : memref<128x128xbf16, #tpu.memory_space<vmem>>, vector<128x128xbf16>
      %cst_52 = arith.constant dense<0.000000e+00> : vector<128x128xf32>
      %113 = tpu.matmul %111, %112, %cst_52 {dimension_numbers = #tpu.dot_dimension_numbers<[1], [0], [0], [1], [0, 0, 1, 1], [], []>} : vector<128x128xbf16>, vector<128x128xbf16>, vector<128x128xf32> -> vector<128x128xf32>
      %c0_53 = arith.constant 0 : index
      %c0_54 = arith.constant 0 : index
      %114 = vector.load %arg7[%c0_53, %c0_54] : memref<1x128xf32, #tpu.memory_space<vmem>>, vector<1x128xf32>
      %115 = vector.broadcast %114 : vector<1x128xf32> to vector<128x128xf32>
      %116 = arith.addf %113, %115 : vector<128x128xf32>
      %c0_55 = arith.constant 0 : index
      %c0_56 = arith.constant 0 : index
      %117 = vector.load %arg8[%c0_55, %c0_56] : memref<128x128xbf16, #tpu.memory_space<vmem>>, vector<128x128xbf16>
      %cst_57 = arith.constant dense<0.000000e+00> : vector<128x128xf32>
      %118 = tpu.matmul %111, %117, %cst_57 {dimension_numbers = #tpu.dot_dimension_numbers<[1], [0], [0], [1], [0, 0, 1, 1], [], []>} : vector<128x128xbf16>, vector<128x128xbf16>, vector<128x128xf32> -> vector<128x128xf32>
      %c0_58 = arith.constant 0 : index
      %c0_59 = arith.constant 0 : index
      %119 = vector.load %arg9[%c0_58, %c0_59] : memref<1x128xf32, #tpu.memory_space<vmem>>, vector<1x128xf32>
      %120 = vector.broadcast %119 : vector<1x128xf32> to vector<128x128xf32>
      %121 = arith.addf %118, %120 : vector<128x128xf32>
      %122 = arith.truncf %116 : vector<128x128xf32> to vector<128x128xbf16>
      %c0_60 = arith.constant 0 : index
      %c0_61 = arith.constant 0 : index
      %123 = vector.load %arg16[%c0_60, %c0_61] : memref<128x128xbf16, #tpu.memory_space<vmem>>, vector<128x128xbf16>
      tpu.vector_store %arg16[%c0_60, %c0_61], %122 {strides = array<i32>} : memref<128x128xbf16, #tpu.memory_space<vmem>>, vector<128x128xbf16>,
      %124 = arith.truncf %121 : vector<128x128xf32> to vector<128x128xbf16>
      %c0_62 = arith.constant 0 : index
      %c0_63 = arith.constant 0 : index
      %125 = vector.load %arg17[%c0_62, %c0_63] : memref<128x128xbf16, #tpu.memory_space<vmem>>, vector<128x128xbf16>
      tpu.vector_store %arg17[%c0_62, %c0_63], %124 {strides = array<i32>} : memref<128x128xbf16, #tpu.memory_space<vmem>>, vector<128x128xbf16>,
    } else {
    }
    %c0 = arith.constant 0 : index
    %c0_1 = arith.constant 0 : index
    %c0_2 = arith.constant 0 : index
    %3 = vector.load %arg2[%c0, %c0_1, %c0_2] : memref<1x128x128xbf16, #tpu.memory_space<vmem>>, vector<1x128x128xbf16>
    %4 = vector.shape_cast %3 : vector<1x128x128xbf16> to vector<128x128xbf16>
    %c0_3 = arith.constant 0 : index
    %c0_4 = arith.constant 0 : index
    %5 = vector.load %arg4[%c0_3, %c0_4] : memref<128x128xbf16, #tpu.memory_space<vmem>>, vector<128x128xbf16>
    %cst = arith.constant dense<0.000000e+00> : vector<128x128xf32>
    %6 = tpu.matmul %4, %5, %cst {dimension_numbers = #tpu.dot_dimension_numbers<[1], [0], [0], [1], [0, 0, 1, 1], [], []>} : vector<128x128xbf16>, vector<128x128xbf16>, vector<128x128xf32> -> vector<128x128xf32>
    %c0_5 = arith.constant 0 : index
    %c0_6 = arith.constant 0 : index
    %7 = vector.load %arg5[%c0_5, %c0_6] : memref<1x128xf32, #tpu.memory_space<vmem>>, vector<1x128xf32>
    %8 = vector.broadcast %7 : vector<1x128xf32> to vector<128x128xf32>
    %9 = arith.addf %6, %8 : vector<128x128xf32>
    %10 = arith.truncf %9 : vector<128x128xf32> to vector<128x128xbf16>
    %c0_7 = arith.constant 0 : index
    %c0_8 = arith.constant 0 : index
    %11 = vector.load %arg16[%c0_7, %c0_8] : memref<128x128xbf16, #tpu.memory_space<vmem>>, vector<128x128xbf16>
    %c0_9 = arith.constant 0 : index
    %c0_10 = arith.constant 0 : index
    %12 = vector.load %arg17[%c0_9, %c0_10] : memref<128x128xbf16, #tpu.memory_space<vmem>>, vector<128x128xbf16>
    %c0_11 = arith.constant 0 : index
    %c0_12 = arith.constant 0 : index
    %13 = vector.load %arg10[%c0_11, %c0_12] : memref<128x256xbf16, #tpu.memory_space<vmem>>, vector<128x256xbf16>
    %c0_13 = arith.constant 0 : index
    %c0_14 = arith.constant 0 : index
    %14 = vector.load %arg11[%c0_13, %c0_14] : memref<128x256xbf16, #tpu.memory_space<vmem>>, vector<128x256xbf16>
    %cst_15 = arith.constant dense<0.000000e+00> : vector<128x256xf32>
    %15 = tpu.matmul %4, %14, %cst_15 {dimension_numbers = #tpu.dot_dimension_numbers<[1], [0], [0], [1], [0, 0, 1, 1], [], []>} : vector<128x128xbf16>, vector<128x256xbf16>, vector<128x256xf32> -> vector<128x256xf32>
    %c0_16 = arith.constant 0 : index
    %c0_17 = arith.constant 0 : index
    %16 = vector.load %arg12[%c0_16, %c0_17] : memref<1x256xf32, #tpu.memory_space<vmem>>, vector<1x256xf32>
    %17 = vector.broadcast %16 : vector<1x256xf32> to vector<128x256xf32>
    %18 = arith.addf %15, %17 : vector<128x256xf32>
    %19 = vector.extract_strided_slice %10 {offsets = [0, 0], sizes = [128, 32], strides = [1, 1]} : vector<128x128xbf16> to vector<128x32xbf16>
    %20 = vector.extract_strided_slice %11 {offsets = [0, 0], sizes = [128, 32], strides = [1, 1]} : vector<128x128xbf16> to vector<128x32xbf16>
    %21 = vector.extract_strided_slice %12 {offsets = [0, 0], sizes = [128, 32], strides = [1, 1]} : vector<128x128xbf16> to vector<128x32xbf16>
    %cst_18 = arith.constant dense<0.000000e+00> : vector<128x128xf32>
    %22 = tpu.matmul %19, %20, %cst_18 {dimension_numbers = #tpu.dot_dimension_numbers<[1], [1], [0], [0], [0, 0, 1, 0], [], []>} : vector<128x32xbf16>, vector<128x32xbf16>, vector<128x128xf32> -> vector<128x128xf32>
    %cst_19 = arith.constant dense<0xFF800000> : vector<128xf32>
    %23 = vector.multi_reduction <maximumf>, %22, %cst_19 [1] : vector<128x128xf32> to vector<128xf32>
    %24 = vector.shape_cast %23 : vector<128xf32> to vector<128x1xf32>
    %25 = vector.broadcast %24 : vector<128x1xf32> to vector<128x128xf32>
    %26 = arith.subf %22, %25 : vector<128x128xf32>
    %27 = math.exp %26 : vector<128x128xf32>
    %cst_20 = arith.constant dense<0.000000e+00> : vector<128xf32>
    %28 = vector.multi_reduction <add>, %27, %cst_20 [1] : vector<128x128xf32> to vector<128xf32>
    %29 = vector.shape_cast %28 : vector<128xf32> to vector<128x1xf32>
    %30 = tpu.reciprocal %29 {approx = true} : vector<128x1xf32> -> vector<128x1xf32>
    %31 = vector.broadcast %30 : vector<128x1xf32> to vector<128x128xf32>
    %32 = arith.mulf %27, %31 : vector<128x128xf32>
    %33 = arith.truncf %32 : vector<128x128xf32> to vector<128x128xbf16>
    %cst_21 = arith.constant dense<0.000000e+00> : vector<128x32xf32>
    %34 = tpu.matmul %33, %21, %cst_21 {dimension_numbers = #tpu.dot_dimension_numbers<[1], [0], [0], [1], [0, 0, 1, 1], [], []>} : vector<128x128xbf16>, vector<128x32xbf16>, vector<128x32xf32> -> vector<128x32xf32>
    %35 = arith.truncf %34 : vector<128x32xf32> to vector<128x32xbf16>
    %36 = vector.extract_strided_slice %13 {offsets = [0, 0], sizes = [32, 256], strides = [1, 1]} : vector<128x256xbf16> to vector<32x256xbf16>
    %cst_22 = arith.constant dense<0.000000e+00> : vector<128x256xf32>
    %37 = tpu.matmul %35, %36, %cst_22 {dimension_numbers = #tpu.dot_dimension_numbers<[1], [0], [0], [1], [0, 0, 1, 1], [], []>} : vector<128x32xbf16>, vector<32x256xbf16>, vector<128x256xf32> -> vector<128x256xf32>
    %38 = arith.addf %18, %37 : vector<128x256xf32>
    %39 = vector.extract_strided_slice %10 {offsets = [0, 32], sizes = [128, 32], strides = [1, 1]} : vector<128x128xbf16> to vector<128x32xbf16>
    %40 = vector.extract_strided_slice %11 {offsets = [0, 32], sizes = [128, 32], strides = [1, 1]} : vector<128x128xbf16> to vector<128x32xbf16>
    %41 = vector.extract_strided_slice %12 {offsets = [0, 32], sizes = [128, 32], strides = [1, 1]} : vector<128x128xbf16> to vector<128x32xbf16>
    %cst_23 = arith.constant dense<0.000000e+00> : vector<128x128xf32>
    %42 = tpu.matmul %39, %40, %cst_23 {dimension_numbers = #tpu.dot_dimension_numbers<[1], [1], [0], [0], [0, 0, 1, 0], [], []>} : vector<128x32xbf16>, vector<128x32xbf16>, vector<128x128xf32> -> vector<128x128xf32>
    %cst_24 = arith.constant dense<0xFF800000> : vector<128xf32>
    %43 = vector.multi_reduction <maximumf>, %42, %cst_24 [1] : vector<128x128xf32> to vector<128xf32>
    %44 = vector.shape_cast %43 : vector<128xf32> to vector<128x1xf32>
    %45 = vector.broadcast %44 : vector<128x1xf32> to vector<128x128xf32>
    %46 = arith.subf %42, %45 : vector<128x128xf32>
    %47 = math.exp %46 : vector<128x128xf32>
    %cst_25 = arith.constant dense<0.000000e+00> : vector<128xf32>
    %48 = vector.multi_reduction <add>, %47, %cst_25 [1] : vector<128x128xf32> to vector<128xf32>
    %49 = vector.shape_cast %48 : vector<128xf32> to vector<128x1xf32>
    %50 = tpu.reciprocal %49 {approx = true} : vector<128x1xf32> -> vector<128x1xf32>
    %51 = vector.broadcast %50 : vector<128x1xf32> to vector<128x128xf32>
    %52 = arith.mulf %47, %51 : vector<128x128xf32>
    %53 = arith.truncf %52 : vector<128x128xf32> to vector<128x128xbf16>
    %cst_26 = arith.constant dense<0.000000e+00> : vector<128x32xf32>
    %54 = tpu.matmul %53, %41, %cst_26 {dimension_numbers = #tpu.dot_dimension_numbers<[1], [0], [0], [1], [0, 0, 1, 1], [], []>} : vector<128x128xbf16>, vector<128x32xbf16>, vector<128x32xf32> -> vector<128x32xf32>
    %55 = arith.truncf %54 : vector<128x32xf32> to vector<128x32xbf16>
    %56 = vector.extract_strided_slice %13 {offsets = [32, 0], sizes = [32, 256], strides = [1, 1]} : vector<128x256xbf16> to vector<32x256xbf16>
    %cst_27 = arith.constant dense<0.000000e+00> : vector<128x256xf32>
    %57 = tpu.matmul %55, %56, %cst_27 {dimension_numbers = #tpu.dot_dimension_numbers<[1], [0], [0], [1], [0, 0, 1, 1], [], []>} : vector<128x32xbf16>, vector<32x256xbf16>, vector<128x256xf32> -> vector<128x256xf32>
    %58 = arith.addf %38, %57 : vector<128x256xf32>
    %59 = vector.extract_strided_slice %10 {offsets = [0, 64], sizes = [128, 32], strides = [1, 1]} : vector<128x128xbf16> to vector<128x32xbf16>
    %60 = vector.extract_strided_slice %11 {offsets = [0, 64], sizes = [128, 32], strides = [1, 1]} : vector<128x128xbf16> to vector<128x32xbf16>
    %61 = vector.extract_strided_slice %12 {offsets = [0, 64], sizes = [128, 32], strides = [1, 1]} : vector<128x128xbf16> to vector<128x32xbf16>
    %cst_28 = arith.constant dense<0.000000e+00> : vector<128x128xf32>
    %62 = tpu.matmul %59, %60, %cst_28 {dimension_numbers = #tpu.dot_dimension_numbers<[1], [1], [0], [0], [0, 0, 1, 0], [], []>} : vector<128x32xbf16>, vector<128x32xbf16>, vector<128x128xf32> -> vector<128x128xf32>
    %cst_29 = arith.constant dense<0xFF800000> : vector<128xf32>
    %63 = vector.multi_reduction <maximumf>, %62, %cst_29 [1] : vector<128x128xf32> to vector<128xf32>
    %64 = vector.shape_cast %63 : vector<128xf32> to vector<128x1xf32>
    %65 = vector.broadcast %64 : vector<128x1xf32> to vector<128x128xf32>
    %66 = arith.subf %62, %65 : vector<128x128xf32>
    %67 = math.exp %66 : vector<128x128xf32>
    %cst_30 = arith.constant dense<0.000000e+00> : vector<128xf32>
    %68 = vector.multi_reduction <add>, %67, %cst_30 [1] : vector<128x128xf32> to vector<128xf32>
    %69 = vector.shape_cast %68 : vector<128xf32> to vector<128x1xf32>
    %70 = tpu.reciprocal %69 {approx = true} : vector<128x1xf32> -> vector<128x1xf32>
    %71 = vector.broadcast %70 : vector<128x1xf32> to vector<128x128xf32>
    %72 = arith.mulf %67, %71 : vector<128x128xf32>
    %73 = arith.truncf %72 : vector<128x128xf32> to vector<128x128xbf16>
    %cst_31 = arith.constant dense<0.000000e+00> : vector<128x32xf32>
    %74 = tpu.matmul %73, %61, %cst_31 {dimension_numbers = #tpu.dot_dimension_numbers<[1], [0], [0], [1], [0, 0, 1, 1], [], []>} : vector<128x128xbf16>, vector<128x32xbf16>, vector<128x32xf32> -> vector<128x32xf32>
    %75 = arith.truncf %74 : vector<128x32xf32> to vector<128x32xbf16>
    %76 = vector.extract_strided_slice %13 {offsets = [64, 0], sizes = [32, 256], strides = [1, 1]} : vector<128x256xbf16> to vector<32x256xbf16>
    %cst_32 = arith.constant dense<0.000000e+00> : vector<128x256xf32>
    %77 = tpu.matmul %75, %76, %cst_32 {dimension_numbers = #tpu.dot_dimension_numbers<[1], [0], [0], [1], [0, 0, 1, 1], [], []>} : vector<128x32xbf16>, vector<32x256xbf16>, vector<128x256xf32> -> vector<128x256xf32>
    %78 = arith.addf %58, %77 : vector<128x256xf32>
    %79 = vector.extract_strided_slice %10 {offsets = [0, 96], sizes = [128, 32], strides = [1, 1]} : vector<128x128xbf16> to vector<128x32xbf16>
    %80 = vector.extract_strided_slice %11 {offsets = [0, 96], sizes = [128, 32], strides = [1, 1]} : vector<128x128xbf16> to vector<128x32xbf16>
    %81 = vector.extract_strided_slice %12 {offsets = [0, 96], sizes = [128, 32], strides = [1, 1]} : vector<128x128xbf16> to vector<128x32xbf16>
    %cst_33 = arith.constant dense<0.000000e+00> : vector<128x128xf32>
    %82 = tpu.matmul %79, %80, %cst_33 {dimension_numbers = #tpu.dot_dimension_numbers<[1], [1], [0], [0], [0, 0, 1, 0], [], []>} : vector<128x32xbf16>, vector<128x32xbf16>, vector<128x128xf32> -> vector<128x128xf32>
    %cst_34 = arith.constant dense<0xFF800000> : vector<128xf32>
    %83 = vector.multi_reduction <maximumf>, %82, %cst_34 [1] : vector<128x128xf32> to vector<128xf32>
    %84 = vector.shape_cast %83 : vector<128xf32> to vector<128x1xf32>
    %85 = vector.broadcast %84 : vector<128x1xf32> to vector<128x128xf32>
    %86 = arith.subf %82, %85 : vector<128x128xf32>
    %87 = math.exp %86 : vector<128x128xf32>
    %cst_35 = arith.constant dense<0.000000e+00> : vector<128xf32>
    %88 = vector.multi_reduction <add>, %87, %cst_35 [1] : vector<128x128xf32> to vector<128xf32>
    %89 = vector.shape_cast %88 : vector<128xf32> to vector<128x1xf32>
    %90 = tpu.reciprocal %89 {approx = true} : vector<128x1xf32> -> vector<128x1xf32>
    %91 = vector.broadcast %90 : vector<128x1xf32> to vector<128x128xf32>
    %92 = arith.mulf %87, %91 : vector<128x128xf32>
    %93 = arith.truncf %92 : vector<128x128xf32> to vector<128x128xbf16>
    %cst_36 = arith.constant dense<0.000000e+00> : vector<128x32xf32>
    %94 = tpu.matmul %93, %81, %cst_36 {dimension_numbers = #tpu.dot_dimension_numbers<[1], [0], [0], [1], [0, 0, 1, 1], [], []>} : vector<128x128xbf16>, vector<128x32xbf16>, vector<128x32xf32> -> vector<128x32xf32>
    %95 = arith.truncf %94 : vector<128x32xf32> to vector<128x32xbf16>
    %96 = vector.extract_strided_slice %13 {offsets = [96, 0], sizes = [32, 256], strides = [1, 1]} : vector<128x256xbf16> to vector<32x256xbf16>
    %cst_37 = arith.constant dense<0.000000e+00> : vector<128x256xf32>
    %97 = tpu.matmul %95, %96, %cst_37 {dimension_numbers = #tpu.dot_dimension_numbers<[1], [0], [0], [1], [0, 0, 1, 1], [], []>} : vector<128x32xbf16>, vector<32x256xbf16>, vector<128x256xf32> -> vector<128x256xf32>
    %98 = arith.addf %78, %97 : vector<128x256xf32>
    %cst_38 = arith.constant 0.000000e+00 : f32
    %99 = vector.broadcast %cst_38 : f32 to vector<128x256xf32>
    %100 = arith.maximumf %98, %99 : vector<128x256xf32>
    %101 = arith.truncf %100 : vector<128x256xf32> to vector<128x256xbf16>
    %c0_39 = arith.constant 0 : index
    %c0_40 = arith.constant 0 : index
    %102 = vector.load %arg13[%c0_39, %c0_40] : memref<256x128xbf16, #tpu.memory_space<vmem>>, vector<256x128xbf16>
    %cst_41 = arith.constant dense<0.000000e+00> : vector<128x128xf32>
    %103 = tpu.matmul %101, %102, %cst_41 {dimension_numbers = #tpu.dot_dimension_numbers<[1], [0], [0], [1], [0, 0, 1, 1], [], []>} : vector<128x256xbf16>, vector<256x128xbf16>, vector<128x128xf32> -> vector<128x128xf32>
    %c0_42 = arith.constant 0 : index
    %c0_43 = arith.constant 0 : index
    %104 = vector.load %arg14[%c0_42, %c0_43] : memref<1x128xf32, #tpu.memory_space<vmem>>, vector<1x128xf32>
    %105 = vector.broadcast %104 : vector<1x128xf32> to vector<128x128xf32>
    %106 = arith.addf %103, %105 : vector<128x128xf32>
    %c0_44 = arith.constant 0 : index
    %c0_45 = arith.constant 0 : index
    %c0_46 = arith.constant 0 : index
    %107 = vector.load %arg15[%c0_44, %c0_45, %c0_46] : memref<1x128x128xf32, #tpu.memory_space<vmem>>, vector<1x128x128xf32>
    %108 = vector.shape_cast %107 : vector<1x128x128xf32> to vector<128x128xf32>
    %109 = vector.shape_cast %106 : vector<128x128xf32> to vector<1x128x128xf32>
    tpu.vector_store %arg15[%c0_44, %c0_45, %c0_46], %109 {strides = array<i32>} : memref<1x128x128xf32, #tpu.memory_space<vmem>>, vector<1x128x128xf32>,
    return
  }
  func.func @transform_0(%arg0: i32, %arg1: i32) -> (i32, i32, i32) {
    %c0_i32 = arith.constant 0 : i32
    %c0_i32_0 = arith.constant 0 : i32
    return %arg0, %arg1, %c0_i32 : i32, i32, i32
  }
  func.func @transform_1(%arg0: i32, %arg1: i32) -> (i32, i32, i32) {
    %c0_i32 = arith.constant 0 : i32
    %c0_i32_0 = arith.constant 0 : i32
    %c0_i32_1 = arith.constant 0 : i32
    return %arg0, %c0_i32, %c0_i32_0 : i32, i32, i32
  }
  func.func @transform_2(%arg0: i32, %arg1: i32) -> (i32, i32) {
    %c0_i32 = arith.constant 0 : i32
    %c0_i32_0 = arith.constant 0 : i32
    %c0_i32_1 = arith.constant 0 : i32
    return %c0_i32, %c0_i32_0 : i32, i32
  }
  func.func @transform_3(%arg0: i32, %arg1: i32) -> (i32, i32) {
    %c0_i32 = arith.constant 0 : i32
    %c0_i32_0 = arith.constant 0 : i32
    %c0_i32_1 = arith.constant 0 : i32
    return %c0_i32, %c0_i32_0 : i32, i32
  }
  func.func @transform_4(%arg0: i32, %arg1: i32) -> (i32, i32) {
    %c0_i32 = arith.constant 0 : i32
    %c0_i32_0 = arith.constant 0 : i32
    %c0_i32_1 = arith.constant 0 : i32
    return %c0_i32, %c0_i32_0 : i32, i32
  }
  func.func @transform_5(%arg0: i32, %arg1: i32) -> (i32, i32) {
    %c0_i32 = arith.constant 0 : i32
    %c0_i32_0 = arith.constant 0 : i32
    %c0_i32_1 = arith.constant 0 : i32
    return %c0_i32, %c0_i32_0 : i32, i32
  }
  func.func @transform_6(%arg0: i32, %arg1: i32) -> (i32, i32) {
    %c0_i32 = arith.constant 0 : i32
    %c0_i32_0 = arith.constant 0 : i32
    %c0_i32_1 = arith.constant 0 : i32
    return %c0_i32, %c0_i32_0 : i32, i32
  }
  func.func @transform_7(%arg0: i32, %arg1: i32) -> (i32, i32) {
    %c0_i32 = arith.constant 0 : i32
    %c0_i32_0 = arith.constant 0 : i32
    %c0_i32_1 = arith.constant 0 : i32
    return %c0_i32, %c0_i32_0 : i32, i32
  }
  func.func @transform_8(%arg0: i32, %arg1: i32) -> (i32, i32) {
    %c0_i32 = arith.constant 0 : i32
    %c0_i32_0 = arith.constant 0 : i32
    %c0_i32_1 = arith.constant 0 : i32
    return %c0_i32, %c0_i32_0 : i32, i32
  }
  func.func @transform_9(%arg0: i32, %arg1: i32) -> (i32, i32) {
    %c0_i32 = arith.constant 0 : i32
    %c0_i32_0 = arith.constant 0 : i32
    %c0_i32_1 = arith.constant 0 : i32
    return %c0_i32, %c0_i32_0 : i32, i32
  }
  func.func @transform_10(%arg0: i32, %arg1: i32) -> (i32, i32) {
    %c0_i32 = arith.constant 0 : i32
    %c0_i32_0 = arith.constant 0 : i32
    %c0_i32_1 = arith.constant 0 : i32
    return %c0_i32, %c0_i32_0 : i32, i32
  }
  func.func @transform_11(%arg0: i32, %arg1: i32) -> (i32, i32) {
    %c0_i32 = arith.constant 0 : i32
    %c0_i32_0 = arith.constant 0 : i32
    %c0_i32_1 = arith.constant 0 : i32
    return %c0_i32, %c0_i32_0 : i32, i32
  }
  func.func @transform_12(%arg0: i32, %arg1: i32) -> (i32, i32) {
    %c0_i32 = arith.constant 0 : i32
    %c0_i32_0 = arith.constant 0 : i32
    %c0_i32_1 = arith.constant 0 : i32
    return %c0_i32, %c0_i32_0 : i32, i32
  }
  func.func @transform_13(%arg0: i32, %arg1: i32) -> (i32, i32, i32) {
    %c0_i32 = arith.constant 0 : i32
    %c0_i32_0 = arith.constant 0 : i32
    return %arg0, %arg1, %c0_i32 : i32, i32, i32
  }
}

</mosaic_0001>

<bundles_post_ra>
// kernel: tpu_custom_call.1
= control target key start
LH: loop header
LB: loop body
LE: loop exit
PB: predicated region body
PF: predicated region fallthrough
CT: control target
= control target key end

     0   :  { %s8665_s0 = inlined_call_operand.hbm [shape: bf16[2,256,128], index: 0, kind: input, shape index: {}]   ;;  %s8666_s1 = inlined_call_operand.hbm [shape: bf16[2,128,128], index: 1, kind: input, shape index: {}]   ;;  %s8667_s2 = inlined_call_operand.hbm [shape: bf16[128,128], index: 2, kind: input, shape index: {}]   ;;  %s8668_s3 = inlined_call_operand.vmem [shape: f32[1,128], index: 3, kind: input, shape index: {}]   ;;  %s8669_s4 = inlined_call_operand.hbm [shape: bf16[128,128], index: 4, kind: input, shape index: {}]   ;;  %s8670_s5 = inlined_call_operand.vmem [shape: f32[1,128], index: 5, kind: input, shape index: {}]   ;;  %s8671_s6 = inlined_call_operand.hbm [shape: bf16[128,128], index: 6, kind: input, shape index: {}]   ;;  %s8672_s7 = inlined_call_operand.vmem [shape: f32[1,128], index: 7, kind: input, shape index: {}]   ;;  %s8673_s8 = inlined_call_operand.hbm [shape: bf16[128,256], index: 8, kind: input, shape index: {}]   ;;  %s8674_s9 = inlined_call_operand.hbm [shape: bf16[128,256], index: 9, kind: input, shape index: {}]   ;;  %s8675_s10 = inlined_call_operand.vmem [shape: f32[1,256], index: 10, kind: input, shape index: {}]   ;;  %s8676_s11 = inlined_call_operand.hbm [shape: bf16[256,128], index: 11, kind: input, shape index: {}]   ;;  %s8677_s12 = inlined_call_operand.vmem [shape: f32[1,128], index: 12, kind: input, shape index: {}]   ;;  %s8678_s13 = inlined_call_operand.hbm [shape: f32[2,256,128], index: 13, kind: output, shape index: {}]  }
   0x1   :  { %8707 = sst [smem:[#allocation65_spill]] %s8667_s2 }
   0x2   :  { %8708 = sst [smem:[#allocation66_spill]] %s8668_s3 }
   0x3   :  { %8709 = sst [smem:[#allocation67_spill]] %s8669_s4 }
   0x4   :  { %8710 = sst [smem:[#allocation68_spill]] %s8670_s5 }
   0x5   :  { %8711 = sst [smem:[#allocation69_spill]] %s8671_s6 }
   0x6   :  { %8712 = sst [smem:[#allocation70_spill]] %s8672_s7 }
   0x7   :  { %8713 = sst [smem:[#allocation71_spill]] %s8673_s8 }
   0x8   :  { %8714 = sst [smem:[#allocation72_spill]] %s8674_s9 }
   0x9   :  { %8715 = sst [smem:[#allocation73_spill]] %s8675_s10 }
   0xa   :  { %8716 = sst [smem:[#allocation74_spill]] %s8676_s11 }
   0xb   :  { %8717 = sst [smem:[#allocation75_spill]] %s8677_s12 }
   0xc   :  { %8718 = sst [smem:[#allocation76_spill]] %s8678_s13 }
   0xd   :  { %18 = vsyncpa [#allocation5], 0 }
   0xe   :  { %20 = vsyncpa [#allocation5 + $0x1], 0 }
   0xf   :  { %21 = vsyncpa [#allocation8], 0 }
  0x10   :  { %23 = vsyncpa [#allocation8 + $0x1], 0 }
  0x11   :  { %24 = vsyncpa [#allocation11], 0 }
  0x12   :  { %25 = vsyncpa [#allocation14], 0 }
  0x13   :  { %26 = vsyncpa [#allocation17], 0 }
  0x14   :  { %27 = vsyncpa [#allocation6], 0 }
  0x15   :  { %29 = vsyncpa [#allocation6 + $0x1], 0  ;;  %s6813_s25 = smov 0   ;;  %s6815_s26 = smov 0  }
  0x16   :  { %s6817_s27 = smov 0   ;;  %s6819_s28 = smov 0  }
  0x17   :  { %s6821_s29 = smov 0   ;;  %s6823_s30 = smov 0  }
  0x18   :  { %s6825_s14 = smov 0   ;;  %s6827_s15 = smov 0  }
  0x19   :  { %s6829_s16 = smov 0   ;;  %s6831_s17 = smov 0  }
  0x1a   :  { %s6833_s18 = smov 0  }
  0x1b LB: > { %8719 = sst [smem:[#allocation26_spill]] %s6694_s28  ;;  %s6869_s19 = sadd.s32 4294967295, %s6722_s18   ;;  %s6722_s18 = sphi %s6833_s18, %s35_s18   ;;  %s6718_s17 = sphi %s6831_s17, %s8865_s17   ;;  %s6714_s16 = sphi %s6829_s16, %s8856_s16   ;;  %s6710_s15 = sphi %s6827_s15, %s8864_s15   ;;  %s6706_s14 = sphi %s6825_s14, %s8855_s14   ;;  %s6702_s30 = sphi %s6823_s30, %s8863_s30   ;;  %s6698_s29 = sphi %s6821_s29, %s8862_s29   ;;  %s6694_s28 = sphi %s6819_s28, %s8861_s28   ;;  %s6690_s27 = sphi %s6817_s27, %s8860_s27   ;;  %s6686_s26 = sphi %s6815_s26, %s8859_s26   ;;  %s6682_s25 = sphi %s6813_s25, %s8858_s25  }
  0x1c   : > { %8720 = sst [smem:[#allocation27_spill]] %s6706_s14  ;;  %p4793_p0 = scmp.ge.s32.totalorder %s6722_s18, 1 }
  0x1d   : > { %8721 = sst [smem:[#allocation28_spill]] %s6710_s15  ;;  %p8690_p1 = scmp.eq.s32.totalorder %s6869_s19, 0 }
  0x1e   : > { %8722 = sst [smem:[#allocation29_spill]] %s6714_s16  ;;  %p365_p2 = scmp.lt.s32.totalorder %s6722_s18, 5 }
  0x1f   : > { %s6724_s21 = smov [#allocation9]   ;;  %s6725_s24 = smov [#allocation10]  }
  0x20   : > { %p6874_p3 = pnand %p4793_p0, %p365_p2  ;;  %s377_s22 = sshll.u32 %s6724_s21, 4  ;;  %s378_s22 = int_to_ptr.vmem [resolvable:$true] %s377_s22 }
  0x21   : > { %s393_s13 = sshll.u32 %s6725_s24, 4  ;;  %s6726_s15 = smov [#allocation13]   ;;  %s394_s13 = int_to_ptr.vmem [resolvable:$true] %s393_s13 }
  0x22   : > { %p5826_p4 = pneg %p6874_p3  ;;  %s425_s12 = sshll.u32 %s6726_s15, 4  ;;  %s426_s12 = int_to_ptr.vmem [resolvable:$true] %s425_s12 }
  0x23   : > { %s6381_s21 = scalar_lea.vmem %s378_s22, 1024  ;;  %p6389_p10 = scmp.lt.s32.totalorder %s378_s22, %s378_s22 }
  0x24   : > { %p6882_p5 = pnand %p5826_p4, %p8690_p1  ;;  %p6382_p7 = scmp.ne.s32.totalorder %s378_s22, %s6381_s21 }
  0x25   : > { %p6390_p11 = scmp.lt.s32.totalorder %s6381_s21, %s6381_s21 }
  0x26   : > { %p6888_p6 = pneg %p6882_p5 }
  0x27   : > { %p6391_p12 = por %p6390_p11, %p6389_p10 }
  0x28   : > { %p6384_p8 = pnand %p6382_p7, %p6888_p6 }
  0x2a   : > { %p6385_p9 = pneg %p6384_p8 }
  0x2c   : > { %p6392_p13 = pnand %p6391_p12, %p6385_p9 }
  0x2e   : > { %6395 = shalt.err (!%p6392_p13)
}
  0x2f   : > { %s8680_s24 = smov 64   ;;  %s8682_s15 = smov 4  }
  0x30   : > { %s8726_s2 = sld [smem:[#allocation65_spill]]  ;;  %s6407_s5 = scalar_lea.vmem %s394_s13, 1024 }
  0x31   : > { %p6408_p0 = scmp.ne.s32.totalorder %s394_s13, %s6407_s5  ;;  %p6415_p7 = scmp.lt.s32.totalorder %s394_s13, %s394_s13 }
  0x32   : > { %p6416_p8 = scmp.lt.s32.totalorder %s6407_s5, %s6407_s5 }
  0x33   : > { %p6410_p2 = pnand %p6408_p0, %p6888_p6 }
  0x34   : > { %p6417_p9 = por %p6416_p8, %p6415_p7 }
  0x35   : > { %p6411_p4 = pneg %p6410_p2 }
  0x36   : > { %5829 = dma.hbm_to_vmem [thread:$0]  (!%p6882_p5), %s8726_s2, 1024, %s378_s22, [#allocation8], %s8680_s24, %s8680_s24, %s8682_s15  }
  0x37   : > { %p6418_p10 = pnand %p6417_p9, %p6411_p4 }
  0x39   : > { %6421 = shalt.err (!%p6418_p10)
}
  0x3a   : > { %s8727_s4 = sld [smem:[#allocation67_spill]]  ;;  %s6433_s3 = scalar_lea.vmem %s426_s12, 2048 }
  0x3b   : > { %p6434_p11 = scmp.ne.s32.totalorder %s426_s12, %s6433_s3  ;;  %p6441_p0 = scmp.lt.s32.totalorder %s426_s12, %s426_s12 }
  0x3c   : > { %p6442_p2 = scmp.lt.s32.totalorder %s6433_s3, %s6433_s3 }
  0x3d   : > { %p6436_p12 = pnand %p6434_p11, %p6888_p6 }
  0x3e   : > { %p6443_p4 = por %p6442_p2, %p6441_p0 }
  0x3f   : > { %p6437_p13 = pneg %p6436_p12 }
  0x40   : > { %5832 = dma.hbm_to_vmem [thread:$0]  (!%p6882_p5), %s8727_s4, 1024, %s394_s13, [#allocation11], %s8680_s24, %s8680_s24, %s8682_s15  }
  0x41   : > { %p6444_p7 = pnand %p6443_p4, %p6437_p13 }
  0x43   : > { %6447 = shalt.err (!%p6444_p7)
}
  0x44   : > { %s6729_s5 = smov 128   ;;  %s6730_s7 = smov 8  }
  0x45   : > { %s8728_s8 = sld [smem:[#allocation71_spill]]  ;;  %s6731_s22 = smov [#allocation12]  }
  0x46   : > { %s409_s21 = sshll.u32 %s6731_s22, 4  ;;  %s6732_s24 = smov [#allocation15]   ;;  %s410_s21 = int_to_ptr.vmem [resolvable:$true] %s409_s21 }
  0x47   : > { %s438_s3 = sshll.u32 %s6732_s24, 4  ;;  %s6459_s15 = scalar_lea.vmem %s410_s21, 1024  ;;  %s439_s3 = int_to_ptr.vmem [resolvable:$true] %s438_s3 }
  0x48   : > { %p6460_p8 = scmp.ne.s32.totalorder %s410_s21, %s6459_s15  ;;  %p6467_p11 = scmp.lt.s32.totalorder %s410_s21, %s410_s21 }
  0x49   : > { %p6468_p12 = scmp.lt.s32.totalorder %s6459_s15, %s6459_s15 }
  0x4a   : > { %p6462_p9 = pnand %p6460_p8, %p6888_p6 }
  0x4b   : > { %5838 = dma.hbm_to_vmem [thread:$0]  (!%p6882_p5), %s8728_s8, 2048, %s426_s12, [#allocation14], %s6729_s5, %s6729_s5, %s6730_s7  }
  0x4c   : > { %p6463_p10 = pneg %p6462_p9  ;;  %p6469_p13 = por %p6468_p12, %p6467_p11 }
  0x4e   : > { %p6470_p0 = pnand %p6469_p13, %p6463_p10 }
  0x50   : > { %6473 = shalt.err (!%p6470_p0)
}
  0x51   : > { %s8729_s2 = smov 4   ;;  %s8730_s13 = smov 64  }
  0x52   : > { %s8731_s6 = sld [smem:[#allocation69_spill]]  ;;  %s6485_s24 = scalar_lea.vmem %s439_s3, 2048 }
  0x53   : > { %p6486_p2 = scmp.ne.s32.totalorder %s439_s3, %s6485_s24  ;;  %p6493_p8 = scmp.lt.s32.totalorder %s439_s3, %s439_s3 }
  0x54   : > { %p6494_p9 = scmp.lt.s32.totalorder %s6485_s24, %s6485_s24 }
  0x55   : > { %p6488_p4 = pnand %p6486_p2, %p6888_p6 }
  0x56   : > { %p6495_p10 = por %p6494_p9, %p6493_p8 }
  0x57   : > { %p6489_p7 = pneg %p6488_p4 }
  0x58   : > { %5835 = dma.hbm_to_vmem [thread:$0]  (!%p6882_p5), %s8731_s6, 1024, %s410_s21, [#allocation11], %s8730_s13, %s8730_s13, %s8729_s2  }
  0x59   : > { %p6496_p11 = pnand %p6495_p10, %p6489_p7 }
  0x5b   : > { %6499 = shalt.err (!%p6496_p11)
}
  0x5c   : > { %s8732_s9 = sld [smem:[#allocation72_spill]]  ;;  %s6733_s21 = smov [#allocation16]  }
  0x5d   : > { %s454_s12 = sshll.u32 %s6733_s21, 4  ;;  %s455_s12 = int_to_ptr.vmem [resolvable:$true] %s454_s12 }
  0x5e   : > { %s6511_s14 = scalar_lea.vmem %s455_s12, 2048  ;;  %p6519_p2 = scmp.lt.s32.totalorder %s455_s12, %s455_s12 }
  0x5f   : > { %p6512_p12 = scmp.ne.s32.totalorder %s455_s12, %s6511_s14  ;;  %p6520_p4 = scmp.lt.s32.totalorder %s6511_s14, %s6511_s14 }
  0x61   : > { %p6514_p13 = pnand %p6512_p12, %p6888_p6  ;;  %p6521_p7 = por %p6520_p4, %p6519_p2 }
  0x62   : > { %5841 = dma.hbm_to_vmem [thread:$0]  (!%p6882_p5), %s8732_s9, 2048, %s439_s3, [#allocation14], %s6729_s5, %s6729_s5, %s6730_s7  }
  0x63   : > { %p6515_p0 = pneg %p6514_p13 }
  0x65   : > { %p6522_p8 = pnand %p6521_p7, %p6515_p0 }
  0x67   : > { %6525 = shalt.err (!%p6522_p8)
}
  0x68   : > { %s8733_s11 = sld [smem:[#allocation74_spill]]  ;;  %s4792_s10 = sadd.s32 4294967294, %s6722_s18  }
  0x69   : > { %s44_s23 = sadd.s32 1, %s6714_s16  ;;  %s47_s7 = sadd.s32 1, %s6718_s17 }
  0x6a   : > { %p45_p6 = scmp.ge.s32.totalorder %s44_s23, 2  ;;  %s56_s3 = sadd.s32 1, %s6702_s30 }
  0x6b   : > { %p63_p9 = scmp.ne.s32.totalorder %s6702_s30, %s6698_s29  ;;  %p8691_p10 = scmp.eq.s32.totalorder %s6722_s18, 0 }
  0x6c   : > { %s8867_s23 = smov (%p45_p6, %s44_s23), 0  ;;  %s8869_s7 = smov (!%p45_p6, %s47_s7), %s6718_s17 }
  0x6d   : > { %8734 = sst [smem:[#allocation30_spill]] %s8867_s23  ;;  %s52_s15 = ssub.s32 %s6714_s16, %s8867_s23 }
  0x6e   : > { %5844 = dma.hbm_to_vmem [thread:$0]  (!%p6882_p5), %s8733_s11, 2048, %s455_s12, [#allocation17], %s8730_s13, %s8730_s13, %s8729_s2  }
  0x6f   : > { %p49_p11 = scmp.ge.s32.totalorder %s8869_s7, 2  ;;  %p69_p12 = scmp.ne.s32.totalorder %s6698_s29, %s6694_s28 }
  0x70   : > { %p6968_p5 = por %p8691_p10, %p63_p9  ;;  %p352_p13 = scmp.eq.s32.totalorder %s6869_s19, 3 }
  0x71   : > { %s8871_s7 = smov (%p49_p11, %s8869_s7), 0  ;;  %p6977_p0 = por %p8690_p1, %p69_p12 }
  0x72   : > { %8736 = sst [smem:[#allocation31_spill]] %s8871_s7  ;;  %p6981_p2 = por %p352_p13, %p63_p9 }
  0x73   : > { %s6987_s14 = ssub.s32 %s6718_s17, %s8871_s7  ;;  %p358_p4 = scmp.eq.s32.totalorder %s4792_s10, 3 }
  0x74   : > { %s53_s24 = sor.u32 %s52_s15, %s6987_s14  ;;  %p80_p7 = scmp.eq.s32.totalorder %s6987_s14, 0 }
  0x75   : > { %p54_p8 = scmp.eq.s32.totalorder %s53_s24, 0  ;;  %p6991_p6 = por %p358_p4, %p69_p12 }
  0x76   : > { %p8689_p11 = scmp.lt.s32.totalorder %s6722_s18, 4  ;;  %s471_s4 = sand.u32 1, %s6702_s30  }
  0x77   : > { %s8739_s5 = scalar_select %p6991_p6, 1, 0 }
  0x78   : > { %s6998_s6 = scalar_select %p54_p8, %s6702_s30, %s56_s3  }
  0x79   : > { %8740 = sst [smem:[#allocation32_spill]] %s8739_s5  ;;  %s4801_s8 = sshll.u32 %s471_s4, 6 }
  0x7a   : > { %8741 = sst [smem:[#allocation33_spill]] %s6998_s6  ;;  %s4802_s9 = sshll.u32 %s6714_s16, 4 }
  0x7b   : > { %s4803_s11 = sshll.u32 %s6718_s17, 5  ;;  %s475_s7 = scalar_lea.vmem [#allocation4], %s4801_s8 }
  0x7c   : > { %s484_s23 = sshll.u32 %s475_s7, 4  ;;  %s481_s28 = sadd.s32 %s4803_s11, %s4802_s9  ;;  %s485_s23 = int_to_ptr.vmem [resolvable:$true] %s484_s23 }
  0x7d   : > { %s4804_s10 = sshll.u32 %s481_s28, 6  ;;  %p7006_p9 = pnand %p8689_p11, %p6968_p5 }
  0x7e   : > { %s483_s3 = scalar_lea.hbm %s8665_s0, %s4804_s10  ;;  %s472_s6 = scalar_lea.sflag [#allocation5], %s471_s4 }
  0x7f   : > { %p6528_p12 = pneg %p7006_p9  ;;  %s6539_s16 = scalar_lea.vmem %s485_s23, 1024 }
  0x80   : > { %p6540_p13 = scmp.ne.s32.totalorder %s485_s23, %s6539_s16  ;;  %s6734_s8 = smov [#allocation4]  }
  0x81   : > { %s6544_s9 = sshll.u32 %s6734_s8, 4  ;;  %s6545_s9 = int_to_ptr.vmem [resolvable:$false] %s6544_s9 }
  0x82   : > { %p6542_p4 = pnand %p6540_p13, %p6528_p12  ;;  %s6546_s11 = scalar_lea.vmem %s6545_s9, 2048 }
  0x83   : > { %p6547_p5 = scmp.lt.s32.totalorder %s485_s23, %s6545_s9  ;;  %p6548_p11 = scmp.lt.s32.totalorder %s6546_s11, %s6539_s16 }
  0x84   : > { %p6543_p8 = pneg %p6542_p4 }
  0x85   : > { %p6549_p1 = por %p6548_p11, %p6547_p5 }
  0x87   : > { %p6550_p10 = pnand %p6549_p1, %p6543_p8 }
  0x89   : > { %6553 = shalt.err (!%p6550_p10)
}
  0x8a   : > { %5848 = dma.hbm_to_vmem [thread:$0]  (!%p7006_p9), %s483_s3, 1024, %s485_s23, %s472_s6, %s8730_s13, %s8730_s13, %s8729_s2  }
  0x8b   : > { %s82_s4 = sadd.s32 1, %s6690_s27  ;;  %p89_p1 = scmp.ne.s32.totalorder %s6690_s27, %s6686_s26 }
  0x8c   : > { %s7026_s28 = scalar_select %p80_p7, %s6690_s27, %s82_s4  }
  0x8d   : > { %p8743_p10 = scmp.eq.s32.totalorder %s6722_s18, 0  ;;  %p95_p12 = scmp.ne.s32.totalorder %s6686_s26, %s6682_s25 }
  0x8e   : > { %s494_s16 = sand.u32 1, %s6722_s18   ;;  %s496_s7 = sand.u32 1, %s6690_s27  }
  0x8f   : > { %p91_p11 = por %p89_p1, %p8743_p10  ;;  %p8744_p13 = scmp.eq.s32.totalorder %s6869_s19, 0 }
  0x90   : > { %s4805_s5 = sshll.u32 %s496_s7, 6  ;;  %s5029_s10 = sshll.u32 %s6718_s17, 10 }
  0x91   : > { %p7036_p4 = por %p95_p12, %p8744_p13  ;;  %s504_s6 = scalar_lea.hbm %s8666_s1, %s5029_s10 }
  0x92   : > { %s498_s23 = scalar_lea.vmem [#allocation7], %s4805_s5  ;;  %p8746_p7 = scmp.lt.s32.totalorder %s6722_s18, 4 }
  0x93   : > { %s505_s14 = sshll.u32 %s498_s23, 4  ;;  %s495_s25 = scalar_lea.sflag [#allocation8], %s494_s16  ;;  %s506_s14 = int_to_ptr.vmem [resolvable:$true] %s505_s14 }
  0x94   : > { %p7046_p9 = pnand %p8746_p7, %p91_p11  ;;  %s6567_s8 = scalar_lea.vmem %s506_s14, 1024 }
  0x95   : > { %p6568_p5 = scmp.ne.s32.totalorder %s506_s14, %s6567_s8  ;;  %s6735_s9 = smov [#allocation7]  }
  0x96   : > { %p6556_p8 = pneg %p7046_p9  ;;  %s6572_s11 = sshll.u32 %s6735_s9, 4  ;;  %s6573_s11 = int_to_ptr.vmem [resolvable:$false] %s6572_s11 }
  0x97   : > { %s6574_s4 = scalar_lea.vmem %s6573_s11, 2048  ;;  %p6575_p12 = scmp.lt.s32.totalorder %s506_s14, %s6573_s11 }
  0x98   : > { %p6570_p1 = pnand %p6568_p5, %p6556_p8  ;;  %p6576_p13 = scmp.lt.s32.totalorder %s6574_s4, %s6567_s8 }
  0x9a   : > { %p6571_p10 = pneg %p6570_p1  ;;  %p6577_p6 = por %p6576_p13, %p6575_p12 }
  0x9c   : > { %p6578_p11 = pnand %p6577_p6, %p6571_p10 }
  0x9e   : > { %6581 = shalt.err (!%p6578_p11)
}
  0x9f   : > { %5851 = dma.hbm_to_vmem [thread:$0]  (!%p7046_p9), %s504_s6, 1024, %s506_s14, %s495_s25, %s8730_s13, %s8730_s13, %s8729_s2  }
  0xa0   : > { %517 = sbr.rel (%p6874_p3) target bundleno = 3738 (0xe9a), region = 72 }
  0xa5   : > { %s7060_s16 = sand.u32 1, %s6698_s29  }
  0xa6   : > { %s4809_s7 = sshll.u32 %s7060_s16, 6  ;;  %s520_s5 = scalar_lea.sflag [#allocation5], %s7060_s16 }
  0xa7   : > { %s7064_s10 = scalar_lea.vmem [#allocation4], %s4809_s7 }
  0xa8   : > { %6653 = dma.done.wait (%p6977_p0), %s520_s5, 1024  }
  0xa9   : > { %6655 = vsyncadd (%p6977_p0), %s520_s5, 4294966272  ;;  %s528_s2 = sand.u32 1, %s6869_s19   ;;  %s530_s20 = sand.u32 1, %s6686_s26  }
  0xaa   : > { %s4810_s13 = sshll.u32 %s530_s20, 6  ;;  %s529_s15 = scalar_lea.sflag [#allocation8], %s528_s2 }
  0xab   : > { %s7072_s24 = scalar_lea.vmem [#allocation7], %s4810_s13 }
  0xac   : > { %6657 = dma.done.wait (%p7036_p4), %s529_s15, 1024  }
  0xad   : > { %6659 = vsyncadd (%p7036_p4), %s529_s15, 4294966272  ;;  %p8748_p3 = scmp.eq.s32.totalorder %s6869_s19, 0 }
  0xaf   : > { %6661 = dma.done.wait (%p8748_p3), [#allocation8], 1024   ;;  %p8749_p6 = pmov %p8748_p3 }
  0xb0   : > { %p8750_p0 = pmov %p8748_p3 }
  0xb1   : > { %6663 = vsyncadd (%p8749_p6), [#allocation8], 4294966272 }
  0xb2   : > { %6665 = dma.done.wait (%p8750_p0), [#allocation11], 2048   ;;  %p8751_p7 = pmov %p8750_p0 }
  0xb3   : > { %p8752_p9 = pmov %p8750_p0 }
  0xb4   : > { %6667 = vsyncadd (%p8751_p7), [#allocation11], 4294965248 }
  0xb5   : > { %6669 = dma.done.wait (%p8752_p9), [#allocation14], 4096   ;;  %p8753_p8 = pmov %p8750_p0 }
  0xb6   : > { %p8754_p4 = pmov %p8750_p0 }
  0xb7   : > { %6671 = vsyncadd (%p8753_p8), [#allocation14], 4294963200 }
  0xb8   : > { %6673 = dma.done.wait (%p8754_p4), [#allocation17], 2048   ;;  %p8755_p5 = pmov %p8750_p0 }
  0xb9   : > { %s4817_s21 = sshll.u32 %s7060_s16, 7  ;;  %s8756_s6 = sld [smem:[#allocation27_spill]] }
  0xba   : > { %6675 = vsyncadd (%p8755_p5), [#allocation17], 4294965248  ;;  %s7095_s22 = scalar_lea.vmem [#allocation18], %s4817_s21 }
  0xbf   : > { %p4818_p1 = scmp.ne.s32.totalorder %s8756_s6, 0 }
  0xc0   : > { %s8757_s14 = sld [smem:[#allocation68_spill]] (!%p4818_p1) }
  0xc1   : > { %610 = sbr.rel (%p4818_p1) target bundleno = 460 (0x1cc), region = 108  ;;  %s8758_s8 = sld [smem:[#allocation70_spill]] (!%p4818_p1) }
  0xc6   : > { %v5974_v0 = vld [vmem:[#allocation10 + $0x38] sm:$0xff]   ;;  %v5976_v2 = vld [vmem:[#allocation10 + $0x30] sm:$0xff]   ;;  %v5978_v4 = vld [vmem:[#allocation10 + $0x28] sm:$0xff]  }
  0xc7   : > { %v5975_v1 = vld [vmem:[#allocation12 + $0x38] sm:$0xff]   ;;  %5396 = vmatprep.subr.bf16.mxu0 %v5974_v0  ;;  %v5977_v3 = vld [vmem:[#allocation12 + $0x30] sm:$0xff]   ;;  %v5979_v5 = vld [vmem:[#allocation12 + $0x28] sm:$0xff]  }
  0xc8   : > { %5428 = vmatprep.subr.bf16.mxu1 %v5975_v1  ;;  %5397 = vmatpush3.bf16.msra.mxu0 %v5974_v0  ;;  %v5980_v6 = vld [vmem:[#allocation10 + $0x20] sm:$0xff]   ;;  %v5982_v8 = vld [vmem:[#allocation10 + $0x18] sm:$0xff]   ;;  %v5984_v10 = vld [vmem:[#allocation10 + $0x10] sm:$0xff]  }
  0xc9   : > { %5429 = vmatpush3.bf16.msra.mxu1 %v5975_v1  ;;  %5398 = vmatprep.subr.bf16.mxu0 %v5976_v2  ;;  %v5981_v7 = vld [vmem:[#allocation12 + $0x20] sm:$0xff]   ;;  %v5983_v9 = vld [vmem:[#allocation12 + $0x18] sm:$0xff]   ;;  %v5985_v12 = vld [vmem:[#allocation12 + $0x10] sm:$0xff]  }
  0xca   : > { %5430 = vmatprep.subr.bf16.mxu1 %v5977_v3  ;;  %v5990_v11 = vld [vmem:[%s7072_s24] sm:$0xff]   ;;  %v5986_v13 = vld [vmem:[#allocation10 + $0x8] sm:$0xff]   ;;  %v5992_v18 = vld [vmem:[%s7072_s24 + $0x10] sm:$0xff]  }
  0xcb   : > { %5412 = vmatprep.mubr.bf16.mxu0 %v5990_v11  ;;  %5444 = vmatprep.mubr.bf16.mxu1 %v5990_v11  ;;  %v5987_v14 = vld [vmem:[#allocation12 + $0x8] sm:$0xff]   ;;  %v5988_v15 = vld [vmem:[#allocation10] sm:$0xff]   ;;  %v5993_v19 = vld [vmem:[%s7072_s24 + $0x18] sm:$0xff]  }
  0xcc   : > { %5399 = vmatpush3.bf16.msra.mxu0 %v5976_v2  ;;  %v5989_v16 = vld [vmem:[#allocation12] sm:$0xff]   ;;  %v5991_v17 = vld [vmem:[%s7072_s24 + $0x8] sm:$0xff]   ;;  %v5996_v22 = vld [vmem:[%s7072_s24 + $0x30] sm:$0xff]  }
  0xcd   : > { %5431 = vmatpush3.bf16.msra.mxu1 %v5977_v3  ;;  %5400 = vmatprep.subr.bf16.mxu0 %v5978_v4  ;;  %v5994_v20 = vld [vmem:[%s7072_s24 + $0x20] sm:$0xff]   ;;  %v5995_v21 = vld [vmem:[%s7072_s24 + $0x28] sm:$0xff]   ;;  %v5997_v23 = vld [vmem:[%s7072_s24 + $0x38] sm:$0xff]  }
  0xce   : > { %5432 = vmatprep.subr.bf16.mxu1 %v5979_v5  ;;  %v7109_v26 = vld [vmem:[%s8757_s14] ss:$0 sm:$0xff] }
  0xcf   : > { %v7114_v28 = vld [vmem:[%s8758_s8] ss:$0 sm:$0xff] }
  0xd0   : > { %5401 = vmatpush3.bf16.msra.mxu0 %v5978_v4 }
  0xd1   : > { %5433 = vmatpush3.bf16.msra.mxu1 %v5979_v5  ;;  %5402 = vmatprep.subr.bf16.mxu0 %v5980_v6 }
  0xd2   : > { %5434 = vmatprep.subr.bf16.mxu1 %v5981_v7 }
  0xd4   : > { %5403 = vmatpush3.bf16.msra.mxu0 %v5980_v6 }
  0xd5   : > { %5435 = vmatpush3.bf16.msra.mxu1 %v5981_v7  ;;  %5404 = vmatprep.subr.bf16.mxu0 %v5982_v8 }
  0xd6   : > { %5436 = vmatprep.subr.bf16.mxu1 %v5983_v9 }
  0xd8   : > { %5405 = vmatpush3.bf16.msra.mxu0 %v5982_v8 }
  0xd9   : > { %5437 = vmatpush3.bf16.msra.mxu1 %v5983_v9  ;;  %5406 = vmatprep.subr.bf16.mxu0 %v5984_v10 }
  0xda   : > { %5438 = vmatprep.subr.bf16.mxu1 %v5985_v12 }
  0xdc   : > { %5407 = vmatpush3.bf16.msra.mxu0 %v5984_v10 }
  0xdd   : > { %5439 = vmatpush3.bf16.msra.mxu1 %v5985_v12  ;;  %5408 = vmatprep.subr.bf16.mxu0 %v5986_v13 }
  0xde   : > { %5440 = vmatprep.subr.bf16.mxu1 %v5987_v14 }
  0xe0   : > { %5409 = vmatpush3.bf16.msra.mxu0 %v5986_v13 }
  0xe1   : > { %5441 = vmatpush3.bf16.msra.mxu1 %v5987_v14  ;;  %5410 = vmatprep.subr.bf16.mxu0 %v5988_v15 }
  0xe2   : > { %5442 = vmatprep.subr.bf16.mxu1 %v5989_v16 }
  0xe4   : > { %5411 = vmatpush3.bf16.msra.mxu0 %v5988_v15 }
  0xe5   : > { %5443 = vmatpush3.bf16.msra.mxu1 %v5989_v16 }
  0xe7   : > { %5413 = vmatmul.mubr.bf16.vlgmr.msra.gmra.mxu0 %v5991_v17 }
  0xe8   : > { %5445 = vmatmul.mubr.bf16.vlgmr.msra.gmra.mxu1 %v5991_v17  ;;  %5416 = vmatprep.mubr.bf16.mxu0 %v5992_v18 }
  0xe9   : > { %5448 = vmatprep.mubr.bf16.mxu1 %v5992_v18 }
  0xef   : > { %5417 = vmatmul.mubr.bf16.gmra.mxu0 %v5993_v19 }
  0xf0   : > { %5449 = vmatmul.mubr.bf16.gmra.mxu1 %v5993_v19  ;;  %5420 = vmatprep.mubr.bf16.mxu0 %v5994_v20 }
  0xf1   : > { %5452 = vmatprep.mubr.bf16.mxu1 %v5994_v20 }
  0xf7   : > { %5421 = vmatmul.mubr.bf16.gmra.mxu0 %v5995_v21 }
  0xf8   : > { %5453 = vmatmul.mubr.bf16.gmra.mxu1 %v5995_v21  ;;  %5424 = vmatprep.mubr.bf16.mxu0 %v5996_v22 }
  0xf9   : > { %5456 = vmatprep.mubr.bf16.mxu1 %v5996_v22 }
  0xff   : > { %5425 = vmatmul.mubr.bf16.gmra.mxu0 %v5997_v23 }
 0x100   : > { %5457 = vmatmul.mubr.bf16.gmra.mxu1 %v5997_v23 }
 0x1a7   : > { %v5414_v24 = vpop.f32.mrf.mxu0 }
 0x1a8   : > { %v5446_v25 = vpop.f32.mrf.mxu1  ;;  %v789_v31 = vadd.f32 %v5414_v24, %v7109_v26 }
 0x1a9   : > { %v780_v27 = vpop.f32.mrf.mxu0  ;;  %v957_v34 = vadd.f32 %v5446_v25, %v7114_v28 }
 0x1aa   : > { %v948_v29 = vpop.f32.mrf.mxu1  ;;  %v781_v37 = vadd.f32 %v7109_v26, %v780_v27 }
 0x1ab   : > { %v5415_v30 = vpop.f32.mrf.mxu0  ;;  %v949_v41 = vadd.f32 %v7114_v28, %v948_v29 }
 0x1ac   : > { %v792_v32 = vadd.f32 %v5415_v30, %v7109_v26  ;;  %v5447_v33 = vpop.f32.mrf.mxu1 }
 0x1ad   : > { %v960_v35 = vadd.f32 %v5447_v33, %v7114_v28  ;;  %v783_v36 = vpop.f32.mrf.mxu0 }
 0x1ae   : > { %v5070_v38 = vpack.c.bf16 %v792_v32, %v789_v31  ;;  %v784_v39 = vadd.f32 %v7109_v26, %v783_v36  ;;  %v951_v40 = vpop.f32.mrf.mxu1 }
 0x1af   : > { %v5110_v42 = vpack.c.bf16 %v960_v35, %v957_v34  ;;  %v952_v43 = vadd.f32 %v7114_v28, %v951_v40  ;;  %v5418_v44 = vpop.f32.mrf.mxu0 }
 0x1b0   : > { %5142 = vst [vmem:[#allocation2 + $0x8] sm:$0xff] %v5070_v38   ;;  %v5065_v45 = vpack.c.bf16 %v784_v39, %v781_v37  ;;  %v5450_v46 = vpop.f32.mrf.mxu1  ;;  %v805_v51 = vadd.f32 %v5418_v44, %v7109_v26 }
 0x1b1   : > { %5149 = vst [vmem:[#allocation3 + $0x8] sm:$0xff] %v5110_v42   ;;  %v5105_v47 = vpack.c.bf16 %v952_v43, %v949_v41  ;;  %v796_v48 = vpop.f32.mrf.mxu0  ;;  %v973_v54 = vadd.f32 %v5450_v46, %v7114_v28 }
 0x1b2   : > { %5066 = vst [vmem:[#allocation2] sm:$0xff] %v5065_v45   ;;  %v964_v49 = vpop.f32.mrf.mxu1  ;;  %v797_v57 = vadd.f32 %v7109_v26, %v796_v48 }
 0x1b3   : > { %5106 = vst [vmem:[#allocation3] sm:$0xff] %v5105_v47   ;;  %v5419_v50 = vpop.f32.mrf.mxu0  ;;  %v965_v61 = vadd.f32 %v7114_v28, %v964_v49 }
 0x1b4   : > { %v808_v52 = vadd.f32 %v5419_v50, %v7109_v26  ;;  %v5451_v53 = vpop.f32.mrf.mxu1 }
 0x1b5   : > { %v976_v55 = vadd.f32 %v5451_v53, %v7114_v28  ;;  %v799_v56 = vpop.f32.mrf.mxu0 }
 0x1b6   : > { %v5080_v58 = vpack.c.bf16 %v808_v52, %v805_v51  ;;  %v800_v59 = vadd.f32 %v7109_v26, %v799_v56  ;;  %v967_v60 = vpop.f32.mrf.mxu1 }
 0x1b7   : > { %v5120_v62 = vpack.c.bf16 %v976_v55, %v973_v54  ;;  %v968_v63 = vadd.f32 %v7114_v28, %v967_v60  ;;  %v5422_v0 = vpop.f32.mrf.mxu0 }
 0x1b8   : > { %5144 = vst [vmem:[#allocation2 + $0x18] sm:$0xff] %v5080_v58   ;;  %v5075_v1 = vpack.c.bf16 %v800_v59, %v797_v57  ;;  %v5454_v2 = vpop.f32.mrf.mxu1  ;;  %v821_v7 = vadd.f32 %v5422_v0, %v7109_v26 }
 0x1b9   : > { %5151 = vst [vmem:[#allocation3 + $0x18] sm:$0xff] %v5120_v62   ;;  %v5115_v3 = vpack.c.bf16 %v968_v63, %v965_v61  ;;  %v812_v4 = vpop.f32.mrf.mxu0  ;;  %v989_v10 = vadd.f32 %v5454_v2, %v7114_v28 }
 0x1ba   : > { %5143 = vst [vmem:[#allocation2 + $0x10] sm:$0xff] %v5075_v1   ;;  %v980_v5 = vpop.f32.mrf.mxu1  ;;  %v813_v13 = vadd.f32 %v7109_v26, %v812_v4 }
 0x1bb   : > { %5150 = vst [vmem:[#allocation3 + $0x10] sm:$0xff] %v5115_v3   ;;  %v5423_v6 = vpop.f32.mrf.mxu0  ;;  %v981_v17 = vadd.f32 %v7114_v28, %v980_v5 }
 0x1bc   : > { %v824_v8 = vadd.f32 %v5423_v6, %v7109_v26  ;;  %v5455_v9 = vpop.f32.mrf.mxu1 }
 0x1bd   : > { %v992_v11 = vadd.f32 %v5455_v9, %v7114_v28  ;;  %v815_v12 = vpop.f32.mrf.mxu0 }
 0x1be   : > { %v5090_v14 = vpack.c.bf16 %v824_v8, %v821_v7  ;;  %v816_v15 = vadd.f32 %v7109_v26, %v815_v12  ;;  %v983_v16 = vpop.f32.mrf.mxu1 }
 0x1bf   : > { %v5130_v18 = vpack.c.bf16 %v992_v11, %v989_v10  ;;  %v984_v19 = vadd.f32 %v7114_v28, %v983_v16  ;;  %v5426_v20 = vpop.f32.mrf.mxu0 }
 0x1c0   : > { %5146 = vst [vmem:[#allocation2 + $0x28] sm:$0xff] %v5090_v14   ;;  %v5085_v21 = vpack.c.bf16 %v816_v15, %v813_v13  ;;  %v5458_v22 = vpop.f32.mrf.mxu1  ;;  %v837_v29 = vadd.f32 %v5426_v20, %v7109_v26 }
 0x1c1   : > { %5153 = vst [vmem:[#allocation3 + $0x28] sm:$0xff] %v5130_v18   ;;  %v5125_v23 = vpack.c.bf16 %v984_v19, %v981_v17  ;;  %v828_v24 = vpop.f32.mrf.mxu0  ;;  %v1005_v32 = vadd.f32 %v5458_v22, %v7114_v28 }
 0x1c2   : > { %5145 = vst [vmem:[#allocation2 + $0x20] sm:$0xff] %v5085_v21   ;;  %v996_v25 = vpop.f32.mrf.mxu1  ;;  %v829_v35 = vadd.f32 %v7109_v26, %v828_v24 }
 0x1c3   : > { %5152 = vst [vmem:[#allocation3 + $0x20] sm:$0xff] %v5125_v23   ;;  %v5427_v27 = vpop.f32.mrf.mxu0  ;;  %v997_v39 = vadd.f32 %v7114_v28, %v996_v25 }
 0x1c4   : > { %v840_v30 = vadd.f32 %v5427_v27, %v7109_v26  ;;  %v5459_v31 = vpop.f32.mrf.mxu1 }
 0x1c5   : > { %v1008_v33 = vadd.f32 %v5459_v31, %v7114_v28  ;;  %v831_v34 = vpop.f32.mrf.mxu0 }
 0x1c6   : > { %v5100_v36 = vpack.c.bf16 %v840_v30, %v837_v29  ;;  %v832_v37 = vadd.f32 %v7109_v26, %v831_v34  ;;  %v999_v38 = vpop.f32.mrf.mxu1 }
 0x1c7   : > { %v5140_v40 = vpack.c.bf16 %v1008_v33, %v1005_v32  ;;  %v1000_v41 = vadd.f32 %v7114_v28, %v999_v38 }
 0x1c8   : > { %5148 = vst [vmem:[#allocation2 + $0x38] sm:$0xff] %v5100_v36   ;;  %v5095_v42 = vpack.c.bf16 %v832_v37, %v829_v35 }
 0x1c9   : > { %5155 = vst [vmem:[#allocation3 + $0x38] sm:$0xff] %v5140_v40   ;;  %v5135_v43 = vpack.c.bf16 %v1000_v41, %v997_v39 }
 0x1ca   : > { %5147 = vst [vmem:[#allocation2 + $0x30] sm:$0xff] %v5095_v42  }
 0x1cb   : > { %5154 = vst [vmem:[#allocation3 + $0x30] sm:$0xff] %v5135_v43  }
 0x1cc PF: > { %v5998_v44 = vld [vmem:[#allocation9 + $0x38] sm:$0xff]   ;;  %v5999_v45 = vld [vmem:[#allocation9 + $0x30] sm:$0xff]   ;;  %v6000_v26 = vld [vmem:[#allocation9 + $0x28] sm:$0xff]   ;;  %vm1720_vm0 = vcmask 261120   ;;  %s6736_s9 = smov 96   ;;  %s8759_s7 = sld [smem:[#allocation66_spill]] }
 0x1cd   : > { %5460 = vmatprep.subr.bf16.mxu0 %v5998_v44  ;;  %v6001_v46 = vld [vmem:[#allocation9 + $0x20] sm:$0xff]   ;;  %v6002_v28 = vld [vmem:[#allocation9 + $0x18] sm:$0xff]   ;;  %v6003_v48 = vld [vmem:[#allocation9 + $0x10] sm:$0xff]   ;;  %s8767_s2 = sld [smem:[#allocation73_spill]]  ;;  %s6738_s20 = smov 64  }
 0x1ce   : > { %5461 = vmatpush3.bf16.msra.mxu0 %v5998_v44  ;;  %v7149_v47 = vld [vmem:[%s7064_s10] sm:$0xff]   ;;  %v6004_v49 = vld [vmem:[#allocation9 + $0x8] sm:$0xff]   ;;  %v7157_v54 = vld [vmem:[%s7064_s10 + $0x10] sm:$0xff]   ;;  %s6739_s13 = smov 32   ;;  %s8847_s21 = sld [smem:[#allocation75_spill]] }
 0x1cf   : > { %5462 = vmatprep.subr.bf16.mxu0 %v5999_v45  ;;  %5476 = vmatprep.mubr.bf16.mxu0 %v7149_v47  ;;  %v6005_v50 = vld [vmem:[#allocation9] sm:$0xff]   ;;  %v6014_v51 = vld [vmem:[#allocation2 + $0x38] sm:$0xff]   ;;  %v7153_v52 = vld [vmem:[%s7064_s10 + $0x8] sm:$0xff]   ;;  %s8848_s6 = sld [smem:[#allocation27_spill]]  ;;  %s4621_s8 = sshll.u32 %s7095_s22, 4  ;;  %s8601_s8 = int_to_ptr.vmem [resolvable:$true] %s4621_s8 }
 0x1d0   : > { %v1767_v53 = vsel %vm1720_vm0, %v6014_v51, 0  ;;  %v7160_v56 = vld [vmem:[#allocation2 + $0x28] sm:$0xff]   ;;  %v7165_v57 = vld [vmem:[%s7064_s10 + $0x18] sm:$0xff]   ;;  %v7169_v58 = vld [vmem:[%s7064_s10 + $0x20] sm:$0xff]   ;;  %2398 = vrot.lane.b32.xlu0 %v6014_v51, %s6736_s9  ;;  %s8849_s19 = sld [smem:[#allocation28_spill]]  ;;  %s4606_s5 = scalar_lea.sflag [#allocation6], %s7060_s16 }
 0x1d1   : > { %v6015_v55 = vld [vmem:[#allocation2 + $0x30] sm:$0xff]   ;;  %v1761_v60 = vsel %vm1720_vm0, %v7160_v56, 0  ;;  %v7177_v61 = vld [vmem:[%s7064_s10 + $0x28] sm:$0xff]   ;;  %v7184_v63 = vld [vmem:[#allocation2 + $0x20] sm:$0xff]   ;;  %s8850_s4 = sld [smem:[#allocation76_spill]] }
 0x1d2   : > { %5463 = vmatpush3.bf16.msra.mxu0 %v5999_v45  ;;  %v1764_v59 = vsel %vm1720_vm0, %v6015_v55, 0  ;;  %v7182_v62 = vld [vmem:[%s7064_s10 + $0x30] sm:$0xff]   ;;  %v7191_v0 = vld [vmem:[%s7064_s10 + $0x38] sm:$0xff]   ;;  %v1758_v1 = vsel %vm1720_vm0, %v7184_v63, 0  ;;  %v7208_v6 = vld [vmem:[#allocation2 + $0x8] sm:$0xff]   ;;  %2396 = vrot.lane.b32.xlu1 %v6015_v55, %s6736_s9  ;;  %s6582_s10 = scalar_lea.vmem %s8601_s8, 2048 }
 0x1d3   : > { %5464 = vmatprep.subr.bf16.mxu0 %v6000_v26  ;;  %v7195_v2 = vld [vmem:[#allocation2 + $0x18] sm:$0xff]   ;;  %v7202_v4 = vld [vmem:[#allocation2 + $0x10] sm:$0xff]   ;;  %v1749_v7 = vsel %vm1720_vm0, %v7208_v6, 0  ;;  %v7214_v8 = vld [vmem:[#allocation2] sm:$0xff]   ;;  %p6583_p10 = scmp.ne.s32.totalorder %s8601_s8, %s6582_s10 }
 0x1d4   : > { %v1755_v3 = vsel %vm1720_vm0, %v7195_v2, 0  ;;  %v1752_v5 = vsel %vm1720_vm0, %v7202_v4, 0  ;;  %v1746_v9 = vsel %vm1720_vm0, %v7214_v8, 0  ;;  %v4877_v13 = vld [vmem:[%s8759_s7] ss:$0 sm:$0xff] }
 0x1d5   : > { %s5024_s23 = sshll.u32 %s8848_s6, 4  ;;  %p6584_p12 = pnand %p6583_p10, %p6981_p2 }
 0x1d6   : > { %5465 = vmatpush3.bf16.msra.mxu0 %v6000_v26  ;;  %s5025_s14 = sshll.u32 %s8849_s19, 5 }
 0x1d7   : > { %5466 = vmatprep.subr.bf16.mxu0 %v6001_v46  ;;  %s4618_s3 = sadd.s32 %s5025_s14, %s5024_s23  ;;  %p6585_p13 = pneg %p6584_p12 }
 0x1d8   : > { %s5026_s25 = sshll.u32 %s4618_s3, 7 }
 0x1d9   : > { %s8599_s7 = scalar_lea.hbm %s8850_s4, %s5026_s25 }
 0x1da   : > { %5467 = vmatpush3.bf16.msra.mxu0 %v6001_v46 }
 0x1db   : > { %5468 = vmatprep.subr.bf16.mxu0 %v6002_v28 }
 0x1de   : > { %5469 = vmatpush3.bf16.msra.mxu0 %v6002_v28 }
 0x1df   : > { %5470 = vmatprep.subr.bf16.mxu0 %v6003_v48 }
 0x1e2   : > { %5471 = vmatpush3.bf16.msra.mxu0 %v6003_v48 }
 0x1e3   : > { %5472 = vmatprep.subr.bf16.mxu0 %v6004_v49 }
 0x1e6   : > { %5473 = vmatpush3.bf16.msra.mxu0 %v6004_v49 }
 0x1e7   : > { %5474 = vmatprep.subr.bf16.mxu0 %v6005_v50 }
 0x1ea   : > { %5475 = vmatpush3.bf16.msra.mxu0 %v6005_v50 }
 0x1eb   : > { %5764 = vmatprep.subr.msk.bf16.mxu0 %vm1720_vm0, %v6014_v51 }
 0x1ed   : > { %5477 = vmatmul.mubr.bf16.vlgmr.msra.gmra.mxu0 %v7153_v52 }
 0x1ee   : > { %5480 = vmatprep.mubr.bf16.mxu0 %v7157_v54  ;;  %5493 = vmatpush3.bf16.xpose.msra.mxu0 %v1767_v53  ;;  %v6022_v53 = vld [vmem:[#allocation15 + $0x74] ss:$8 sps:$4 sm:$0xff]  }
 0x1ef   : > { %5765 = vmatprep.subr.msk.bf16.mxu0 %vm1720_vm0, %v6015_v55  ;;  %v6024_v55 = vld [vmem:[#allocation15 + $0x70] ss:$8 sps:$4 sm:$0xff]   ;;  %1567 = vmatprep.subr.bf16.mxu1 %v6022_v53 }
 0x1f0   : > { %1568 = vmatpush1.bf16.msra.mxu1 %v6024_v55 }
 0x1f5   : > { %5481 = vmatmul.mubr.bf16.gmra.mxu0 %v7165_v57 }
 0x1f6   : > { %5484 = vmatprep.mubr.bf16.mxu0 %v7169_v58  ;;  %5495 = vmatpush3.bf16.xpose.msra.mxu0 %v1764_v59  ;;  %v6025_v59 = vld [vmem:[#allocation15 + $0x64] ss:$8 sps:$4 sm:$0xff]  }
 0x1f7   : > { %5766 = vmatprep.subr.msk.bf16.mxu0 %vm1720_vm0, %v7160_v56  ;;  %1569 = vmatprep.subr.bf16.mxu1 %v6025_v59 }
 0x1fd   : > { %5485 = vmatmul.mubr.bf16.gmra.mxu0 %v7177_v61 }
 0x1fe   : > { %5488 = vmatprep.mubr.bf16.mxu0 %v7182_v62  ;;  %5497 = vmatpush3.bf16.xpose.msra.mxu0 %v1761_v60  ;;  %v6027_v60 = vld [vmem:[#allocation15 + $0x60] ss:$8 sps:$4 sm:$0xff]  }
 0x1ff   : > { %5767 = vmatprep.subr.msk.bf16.mxu0 %vm1720_vm0, %v7184_v63  ;;  %1570 = vmatpush1.bf16.msra.mxu1 %v6027_v60 }
 0x205   : > { %5489 = vmatmul.mubr.bf16.gmra.mxu0 %v7191_v0 }
 0x206   : > { %5499 = vmatpush3.bf16.xpose.msra.mxu0 %v1758_v1  ;;  %v6028_v1 = vld [vmem:[#allocation15 + $0x54] ss:$8 sps:$4 sm:$0xff]  }
 0x207   : > { %5768 = vmatprep.subr.msk.bf16.mxu0 %vm1720_vm0, %v7195_v2  ;;  %1571 = vmatprep.subr.bf16.mxu1 %v6028_v1 }
 0x20e   : > { %5501 = vmatpush3.bf16.xpose.msra.mxu0 %v1755_v3  ;;  %v6030_v3 = vld [vmem:[#allocation15 + $0x50] ss:$8 sps:$4 sm:$0xff]  }
 0x20f   : > { %5769 = vmatprep.subr.msk.bf16.mxu0 %vm1720_vm0, %v7202_v4  ;;  %1572 = vmatpush1.bf16.msra.mxu1 %v6030_v3 }
 0x216   : > { %5503 = vmatpush3.bf16.xpose.msra.mxu0 %v1752_v5  ;;  %v6031_v5 = vld [vmem:[#allocation15 + $0x44] ss:$8 sps:$4 sm:$0xff]  }
 0x217   : > { %5770 = vmatprep.subr.msk.bf16.mxu0 %vm1720_vm0, %v7208_v6  ;;  %1573 = vmatprep.subr.bf16.mxu1 %v6031_v5 }
 0x21e   : > { %5505 = vmatpush3.bf16.xpose.msra.mxu0 %v1749_v7  ;;  %v6033_v7 = vld [vmem:[#allocation15 + $0x40] ss:$8 sps:$4 sm:$0xff]  }
 0x21f   : > { %5771 = vmatprep.subr.msk.bf16.mxu0 %vm1720_vm0, %v7214_v8  ;;  %1574 = vmatpush1.bf16.msra.mxu1 %v6033_v7 }
 0x226   : > { %5507 = vmatpush3.bf16.xpose.msra.mxu0 %v1746_v9  ;;  %v6034_v9 = vld [vmem:[#allocation15 + $0x34] ss:$8 sps:$4 sm:$0xff]  }
 0x227   : > { %1575 = vmatprep.subr.bf16.mxu1 %v6034_v9 }
 0x2ad   : > { %v5478_v10 = vpop.f32.mrf.mxu0 }
 0x2ae   : > { %v1349_v18 = vadd.f32 %v5478_v10, %v4877_v13  ;;  %v6036_v10 = vld [vmem:[#allocation15 + $0x30] ss:$8 sps:$4 sm:$0xff]  }
 0x2af   : > { %v1340_v11 = vpop.f32.mrf.mxu0  ;;  %1576 = vmatpush1.bf16.msra.mxu1 %v6036_v10 }
 0x2b0   : > { %v1341_v16 = vadd.f32 %v4877_v13, %v1340_v11  ;;  %v6037_v11 = vld [vmem:[#allocation15 + $0x24] ss:$8 sps:$4 sm:$0xff]  }
 0x2b1   : > { %v5479_v12 = vpop.f32.mrf.mxu0  ;;  %1577 = vmatprep.subr.bf16.mxu1 %v6037_v11 }
 0x2b2   : > { %v1352_v14 = vadd.f32 %v5479_v12, %v4877_v13  ;;  %v6039_v12 = vld [vmem:[#allocation15 + $0x20] ss:$8 sps:$4 sm:$0xff]  }
 0x2b3   : > { %v1343_v15 = vpop.f32.mrf.mxu0  ;;  %1578 = vmatpush1.bf16.msra.mxu1 %v6039_v12 }
 0x2b4   : > { %v1344_v17 = vadd.f32 %v4877_v13, %v1343_v15  ;;  %v7227_v21 = vpack.c.bf16 %v1352_v14, %v1349_v18  ;;  %v8692_v14 = vmov 0   ;;  %v6042_v15 = vld [vmem:[#allocation15 + $0x10] ss:$8 sps:$4 sm:$0xff]  }
 0x2b5   : > { %v5482_v19 = vpop.f32.mrf.mxu0  ;;  %1599 = vmatprep.mubr.bf16.mxu1 %v8692_v14  ;;  %v7259_v18 = vld [vmem:[#allocation3 + $0x38] sm:$0xff]  }
 0x2b6   : > { %v7225_v20 = vpack.c.bf16 %v1344_v17, %v1341_v16  ;;  %v1365_v23 = vadd.f32 %v5482_v19, %v4877_v13  ;;  %v6043_v16 = vld [vmem:[#allocation15 + $0x4] ss:$8 sps:$4 sm:$0xff]   ;;  %v6045_v17 = vld [vmem:[#allocation15] ss:$8 sps:$4 sm:$0xff]   ;;  %v7262_v19 = vld [vmem:[#allocation3 + $0x30] sm:$0xff]  }
 0x2b7   : > { %v1356_v22 = vpop.f32.mrf.mxu0 }
 0x2b8   : > { %5508 = vmatprep.mubr.msk.bf16.mxu0 %vm1720_vm0, %v7225_v20  ;;  %v1357_v25 = vadd.f32 %v4877_v13, %v1356_v22  ;;  %v7268_v22 = vld [vmem:[#allocation3 + $0x28] sm:$0xff]  }
 0x2b9   : > { %v5483_v24 = vpop.f32.mrf.mxu0  ;;  %5509 = vmatmul.mubr.msk.bf16.vlgmr.msra.gmra.mxu0 %vm1720_vm0, %v7227_v21 }
 0x2ba   : > { %v1368_v27 = vadd.f32 %v5483_v24, %v4877_v13  ;;  %v7285_v24 = vld [vmem:[#allocation3 + $0x10] sm:$0xff]  }
 0x2bb   : > { %v1359_v29 = vpop.f32.mrf.mxu0 }
 0x2bc   : > { %v1360_v30 = vadd.f32 %v4877_v13, %v1359_v29  ;;  %v7233_v31 = vpack.c.bf16 %v1368_v27, %v1365_v23  ;;  %v7272_v23 = vld [vmem:[#allocation3 + $0x20] sm:$0xff]  }
 0x2bd   : > { %v5486_v32 = vpop.f32.mrf.mxu0 }
 0x2be   : > { %v7235_v33 = vpack.c.bf16 %v1360_v30, %v1357_v25  ;;  %v1381_v35 = vadd.f32 %v5486_v32, %v4877_v13  ;;  %v7291_v25 = vld [vmem:[#allocation3] sm:$0xff]  }
 0x2bf   : > { %v1372_v34 = vpop.f32.mrf.mxu0 }
 0x2c0   : > { %8760 = vst [vmem:[#allocation34_spill] sm:$0xff] %v7235_v33  ;;  %5512 = vmatprep.mubr.msk.bf16.mxu0 %vm1720_vm0, %v7235_v33  ;;  %v1373_v37 = vadd.f32 %v4877_v13, %v1372_v34 }
 0x2c1   : > { %v5487_v36 = vpop.f32.mrf.mxu0  ;;  %5513 = vmatmul.mubr.msk.bf16.gmra.mxu0 %vm1720_vm0, %v7233_v31 }
 0x2c2   : > { %v1384_v38 = vadd.f32 %v5487_v36, %v4877_v13 }
 0x2c3   : > { %v1375_v39 = vpop.f32.mrf.mxu0 }
 0x2c4   : > { %v1376_v40 = vadd.f32 %v4877_v13, %v1375_v39  ;;  %v7241_v41 = vpack.c.bf16 %v1384_v38, %v1381_v35 }
 0x2c5   : > { %v5490_v42 = vpop.f32.mrf.mxu0 }
 0x2c6   : > { %v7243_v43 = vpack.c.bf16 %v1376_v40, %v1373_v37  ;;  %v1397_v45 = vadd.f32 %v5490_v42, %v4877_v13  ;;  %v7344_v42 = vpop.permute.xlu1 %2396 }
 0x2c7   : > { %v1388_v44 = vpop.f32.mrf.mxu0 }
 0x2c8   : > { %8761 = vst [vmem:[#allocation35_spill] sm:$0xff] %v7243_v43  ;;  %5516 = vmatprep.mubr.msk.bf16.mxu0 %vm1720_vm0, %v7243_v43  ;;  %v1389_v46 = vadd.f32 %v4877_v13, %v1388_v44 }
 0x2c9   : > { %5517 = vmatmul.mubr.msk.bf16.gmra.mxu0 %vm1720_vm0, %v7241_v41  ;;  %v5491_v26 = vpop.f32.mrf.mxu0 }
 0x2ca   : > { %v1400_v28 = vadd.f32 %v5491_v26, %v4877_v13 }
 0x2cb   : > { %v1391_v48 = vpop.f32.mrf.mxu0 }
 0x2cc   : > { %v1392_v49 = vadd.f32 %v4877_v13, %v1391_v48  ;;  %v7249_v50 = vpack.c.bf16 %v1400_v28, %v1397_v45  ;;  %v6040_v13 = vld [vmem:[#allocation15 + $0x14] ss:$8 sps:$4 sm:$0xff]  }
 0x2cd   : > { %1579 = vmatprep.subr.bf16.mxu1 %v6040_v13 }
 0x2ce   : > { %8762 = vst [vmem:[#allocation36_spill] sm:$0xff] %v7249_v50  ;;  %v7251_v51 = vpack.c.bf16 %v1392_v49, %v1389_v46  ;;  %1580 = vmatpush1.bf16.msra.mxu1 %v6042_v15 }
 0x2cf   : > { %1581 = vmatprep.subr.bf16.mxu1 %v6043_v16 }
 0x2d0   : > { %8763 = vst [vmem:[#allocation37_spill] sm:$0xff] %v7251_v51  ;;  %5520 = vmatprep.mubr.msk.bf16.mxu0 %vm1720_vm0, %v7251_v51 }
 0x2d1   : > { %5521 = vmatmul.mubr.msk.bf16.gmra.mxu0 %vm1720_vm0, %v7249_v50 }
 0x2d2   : > { %2247 = vmatprep.mubr.bf16.mxu0 %v8692_v14  ;;  %1582 = vmatpush1.bf16.msra.mxu1 %v6045_v17 }
 0x2d3   : > { %5524 = vmatprep.subr.bf16.mxu1 %v7259_v18 }
 0x2d5   : > { %1600 = vmatmul.mubr.bf16.vlgmr.msra.gmra.mxu1 %v7149_v47  ;;  %v7278_v47 = vld [vmem:[#allocation3 + $0x18] sm:$0xff]  }
 0x2d6   : > { %5525 = vmatpush3.bf16.msra.mxu1 %v7259_v18  ;;  %1609 = vmatprep.mubr.bf16.mxu1 %v8692_v14 }
 0x2d7   : > { %5526 = vmatprep.subr.bf16.mxu1 %v7262_v19 }
 0x2da   : > { %5527 = vmatpush3.bf16.msra.mxu1 %v7262_v19 }
 0x2db   : > { %5528 = vmatprep.subr.bf16.mxu1 %v7268_v22 }
 0x2dd   : > { %1610 = vmatmul.mubr.bf16.gmra.mxu1 %v7153_v52  ;;  %v7289_v52 = vld [vmem:[#allocation3 + $0x8] sm:$0xff]  }
 0x2de   : > { %5529 = vmatpush3.bf16.msra.mxu1 %v7268_v22  ;;  %1619 = vmatprep.mubr.bf16.mxu1 %v8692_v14 }
 0x2df   : > { %5530 = vmatprep.subr.bf16.mxu1 %v7272_v23 }
 0x2e2   : > { %5531 = vmatpush3.bf16.msra.mxu1 %v7272_v23 }
 0x2e3   : > { %5532 = vmatprep.subr.bf16.mxu1 %v7278_v47 }
 0x2e5   : > { %1620 = vmatmul.mubr.bf16.gmra.mxu1 %v7157_v54  ;;  %v7298_v54 = vpop.permute.xlu0 %2398 }
 0x2e6   : > { %5533 = vmatpush3.bf16.msra.mxu1 %v7278_v47  ;;  %1629 = vmatprep.mubr.bf16.mxu1 %v8692_v14 }
 0x2e7   : > { %5534 = vmatprep.subr.bf16.mxu1 %v7285_v24 }
 0x2ea   : > { %5535 = vmatpush3.bf16.msra.mxu1 %v7285_v24 }
 0x2eb   : > { %5536 = vmatprep.subr.bf16.mxu1 %v7289_v52 }
 0x2ed   : > { %1630 = vmatmul.mubr.bf16.gmra.mxu1 %v7165_v57 }
 0x2ee   : > { %5537 = vmatpush3.bf16.msra.mxu1 %v7289_v52  ;;  %1639 = vmatprep.mubr.bf16.mxu1 %v8692_v14 }
 0x2ef   : > { %5538 = vmatprep.subr.bf16.mxu1 %v7291_v25 }
 0x2f2   : > { %5539 = vmatpush3.bf16.msra.mxu1 %v7291_v25 }
 0x2f3   : > { %5772 = vmatprep.subr.msk.bf16.mxu1 %vm1720_vm0, %v7298_v54 }
 0x2f5   : > { %1640 = vmatmul.mubr.bf16.gmra.mxu1 %v7169_v58 }
 0x2f6   : > { %1649 = vmatprep.mubr.bf16.mxu1 %v8692_v14 }
 0x2fd   : > { %1650 = vmatmul.mubr.bf16.gmra.mxu1 %v7177_v61 }
 0x2fe   : > { %1659 = vmatprep.mubr.bf16.mxu1 %v8692_v14 }
 0x305   : > { %1660 = vmatmul.mubr.bf16.gmra.mxu1 %v7182_v62 }
 0x306   : > { %1669 = vmatprep.mubr.bf16.mxu1 %v8692_v14 }
 0x30d   : > { %1670 = vmatmul.mubr.bf16.gmra.mxu1 %v7191_v0 }
 0x379   : > { %v5510_v57 = vpop.f32.mrf.mxu0 }
 0x37a   : > { %1870 = vmax.xlane.f32.xlu1 %v5510_v57 }
 0x37b   : > { %v1803_v27 = vpop.f32.mrf.mxu0 }
 0x37c   : > { %1866 = vmax.xlane.f32.xlu0 %v1803_v27 }
 0x37d   : > { %v5511_v29 = vpop.f32.mrf.mxu0 }
 0x37e   : > { %1872 = vmax.xlane.f32.xlu1 %v5511_v29 }
 0x37f   : > { %v1806_v30 = vpop.f32.mrf.mxu0 }
 0x380   : > { %1868 = vmax.xlane.f32.xlu0 %v1806_v30 }
 0x381   : > { %v5514_v58 = vpop.f32.mrf.mxu0 }
 0x383   : > { %v7310_v32 = vpop.f32.mrf.mxu0 }
 0x384   : > { %1878 = vmax.xlane.f32.xlu0 %v5514_v58 }
 0x385   : > { %v7312_v61 = vpop.f32.mrf.mxu0 }
 0x386   : > { %1880 = vmax.xlane.f32.xlu1 %v7312_v61 }
 0x387   : > { %v7315_v62 = vpop.f32.mrf.mxu0 }
 0x388   : > { %1874 = vmax.xlane.f32.xlu0 %v7310_v32 }
 0x389   : > { %v7318_v0 = vpop.f32.mrf.mxu0 }
 0x38a   : > { %1876 = vmax.xlane.f32.xlu1 %v7315_v62 }
 0x38b   : > { %v7321_v34 = vpop.f32.mrf.mxu0 }
 0x38c   : > { %1886 = vmax.xlane.f32.xlu0 %v7318_v0 }
 0x38d   : > { %v7324_v35 = vpop.f32.mrf.mxu0 }
 0x38e   : > { %1888 = vmax.xlane.f32.xlu1 %v7324_v35 }
 0x38f   : > { %v7327_v36 = vpop.f32.mrf.mxu0 }
 0x390   : > { %1882 = vmax.xlane.f32.xlu0 %v7321_v34 }
 0x391   : > { %v5522_v37 = vpop.f32.mrf.mxu0 }
 0x392   : > { %1884 = vmax.xlane.f32.xlu1 %v7327_v36 }
 0x393   : > { %v7331_v38 = vpop.f32.mrf.mxu0 }
 0x394   : > { %1894 = vmax.xlane.f32.xlu0 %v5522_v37 }
 0x395   : > { %v7338_v39 = vpop.f32.mrf.mxu0 }
 0x397   : > { %v7341_v40 = vpop.f32.mrf.mxu0 }
 0x398   : > { %1890 = vmax.xlane.f32.xlu0 %v7331_v38 }
 0x3a3   : > { %2392 = vrot.lane.b32.xlu1 %v7184_v63, %s6736_s9 }
 0x3ae   : > { %2394 = vrot.lane.b32.xlu0 %v7160_v56, %s6736_s9 }
 0x3c7   : > { %1896 = vmax.xlane.f32.xlu1 %v7338_v39 }
 0x3cb   : > { %1892 = vmax.xlane.f32.xlu1 %v7341_v40 }
 0x403   : > { %v1871_v44 = vpop.xlane.xlu1 %1870 }
 0x404   : > { %v1900_v45 = vsub.f32 %v5510_v57, %v1871_v44 }
 0x405   : > { %v1867_v26 = vpop.xlane.xlu0 %1866 }
 0x406   : > { %v1918_v46 = vmul.f32 1.442695, %v1900_v45  ;;  %v1898_v28 = vsub.f32 %v1803_v27, %v1867_v26 }
 0x407   : > { %v1873_v48 = vpop.xlane.xlu1 %1872 }
 0x408   : > { %6094 = vpow2.f32 %v1918_v46  ;;  %v1914_v63 = vmul.f32 1.442695, %v1898_v28  ;;  %v1901_v49 = vsub.f32 %v5511_v29, %v1873_v48 }
 0x409   : > { %v1869_v56 = vpop.xlane.xlu0 %1868 }
 0x40a   : > { %v1920_v53 = vmul.f32 1.442695, %v1901_v49  ;;  %v1899_v55 = vsub.f32 %v1806_v30, %v1869_v56  ;;  %6096 = vpow2.f32 %v1914_v63 }
 0x40c   : > { %6098 = vpow2.f32 %v1920_v53  ;;  %v1916_v59 = vmul.f32 1.442695, %v1899_v55 }
 0x40d   : > { %v1879_v7 = vpop.xlane.xlu0 %1878 }
 0x40e   : > { %6100 = vpow2.f32 %v1916_v59  ;;  %v1904_v13 = vsub.f32 %v5514_v58, %v1879_v7 }
 0x40f   : > { %v1881_v11 = vpop.xlane.xlu1 %1880 }
 0x410   : > { %v1926_v57 = vmul.f32 1.442695, %v1904_v13  ;;  %v1905_v29 = vsub.f32 %v7312_v61, %v1881_v11 }
 0x411   : > { %v1875_v9 = vpop.xlane.xlu0 %1874 }
 0x412   : > { %v1902_v16 = vsub.f32 %v7310_v32, %v1875_v9  ;;  %6102 = vpow2.f32 %v1926_v57  ;;  %v1928_v46 = vmul.f32 1.442695, %v1905_v29 }
 0x413   : > { %v1877_v15 = vpop.xlane.xlu1 %1876 }
 0x414   : > { %v1903_v27 = vsub.f32 %v7315_v62, %v1877_v15  ;;  %v1922_v30 = vmul.f32 1.442695, %v1902_v16 }
 0x415   : > { %v7346_v60 = vpop.eup %6094  ;;  %v1887_v10 = vpop.xlane.xlu0 %1886 }
 0x416   : > { %1950 = vadd.xlane.f32.xlu0 %v7346_v60  ;;  %6104 = vpow2.f32 %v1922_v30 }
 0x417   : > { %v7349_v1 = vpop.eup %6096  ;;  %v1889_v44 = vpop.xlane.xlu1 %1888 }
 0x418   : > { %v1909_v63 = vsub.f32 %v7324_v35, %v1889_v44 }
 0x419   : > { %v7351_v3 = vpop.eup %6098  ;;  %v1883_v12 = vpop.xlane.xlu0 %1882 }
 0x41a   : > { %1946 = vadd.xlane.f32.xlu0 %v7349_v1  ;;  %1952 = vadd.xlane.f32.xlu1 %v7351_v3  ;;  %v1906_v62 = vsub.f32 %v7321_v34, %v1883_v12 }
 0x41b   : > { %v7355_v5 = vpop.eup %6100  ;;  %v1885_v28 = vpop.xlane.xlu1 %1884 }
 0x41c   : > { %v1930_v49 = vmul.f32 1.442695, %v1906_v62  ;;  %v1907_v34 = vsub.f32 %v7327_v36, %v1885_v28 }
 0x41d   : > { %v1895_v17 = vpop.xlane.xlu0 %1894 }
 0x41e   : > { %1948 = vadd.xlane.f32.xlu1 %v7355_v5  ;;  %v1912_v45 = vsub.f32 %v5522_v37, %v1895_v17 }
 0x41f   : > { %v7369_v37 = vpop.permute.xlu1 %2392  ;;  %v7371_v56 = vpop.eup %6102 }
 0x420   : > { %v1942_v58 = vmul.f32 1.442695, %v1912_v45 }
 0x421   : > { %v1891_v26 = vpop.xlane.xlu0 %1890 }
 0x422   : > { %v1910_v32 = vsub.f32 %v7331_v38, %v1891_v26 }
 0x423   : > { %v7374_v53 = vpop.eup %6104 }
 0x424   : > { %v1938_v61 = vmul.f32 1.442695, %v1910_v32 }
 0x42f   : > { %2388 = vrot.lane.b32.xlu1 %v7202_v4, %s6736_s9  ;;  %v1924_v4 = vmul.f32 1.442695, %v1903_v27 }
 0x430   : > { %2390 = vrot.lane.b32.xlu0 %v7195_v2, %s6736_s9  ;;  %v1908_v2 = vsub.f32 %v7318_v0, %v1887_v10  ;;  %v1936_v0 = vmul.f32 1.442695, %v1909_v63  ;;  %v1932_v10 = vmul.f32 1.442695, %v1907_v34 }
 0x431   : > { %6106 = vpow2.f32 %v1924_v4 }
 0x432   : > { %6108 = vpow2.f32 %v1928_v46  ;;  %v1934_v48 = vmul.f32 1.442695, %v1908_v2 }
 0x433   : > { %6110 = vpow2.f32 %v1942_v58 }
 0x434   : > { %6112 = vpow2.f32 %v1934_v48 }
 0x435   : > { %6114 = vpow2.f32 %v1938_v61  ;;  %v2446_v61 = vsel %vm1720_vm0, %v7298_v54, 0 }
 0x436   : > { %6116 = vpow2.f32 %v1930_v49  ;;  %v2443_v49 = vsel %vm1720_vm0, %v7344_v42, 0 }
 0x437   : > { %6118 = vpow2.f32 %v1936_v0 }
 0x43e   : > { %v7378_v59 = vpop.eup %6106 }
 0x43f   : > { %v7382_v9 = vpop.eup %6108 }
 0x440   : > { %v7385_v12 = vpop.eup %6110 }
 0x441   : > { %v7389_v36 = vpop.eup %6112 }
 0x442   : > { %v7391_v13 = vpop.eup %6114 }
 0x443   : > { %v7395_v15 = vpop.eup %6116 }
 0x44f   : > { %1958 = vadd.xlane.f32.xlu0 %v7371_v56 }
 0x450   : > { %v1897_v38 = vpop.xlane.xlu1 %1896 }
 0x451   : > { %v1913_v55 = vsub.f32 %v7338_v39, %v1897_v38 }
 0x453   : > { %v1944_v35 = vmul.f32 1.442695, %v1913_v55  ;;  %1956 = vadd.xlane.f32.xlu0 %v7378_v59  ;;  %1954 = vadd.xlane.f32.xlu1 %v7374_v53  ;;  %v1475_v55 = vld [vmem:[%s8767_s2] sm:$0x3]  ;;  %s6740_s2 = smov [#allocation18]  }
 0x454   : > { %v1893_v7 = vpop.xlane.xlu1 %1892 }
 0x455   : > { %6120 = vpow2.f32 %v1944_v35  ;;  %v1911_v11 = vsub.f32 %v7341_v40, %v1893_v7  ;;  %v7398_v40 = vpop.eup %6118 }
 0x456   : > { %6122 = vpow2.f32 %v1932_v10 }
 0x457   : > { %1974 = vadd.xlane.f32.xlu0 %v7385_v12  ;;  %1960 = vadd.xlane.f32.xlu1 %v7382_v9  ;;  %v1940_v39 = vmul.f32 1.442695, %v1911_v11 }
 0x459   : > { %6124 = vpow2.f32 %v1940_v39 }
 0x45b   : > { %1970 = vadd.xlane.f32.xlu0 %v7391_v13  ;;  %1966 = vadd.xlane.f32.xlu1 %v7389_v36 }
 0x45f   : > { %1962 = vadd.xlane.f32.xlu1 %v7395_v15 }
 0x462   : > { %v7400_v16 = vpop.eup %6120 }
 0x463   : > { %1976 = vadd.xlane.f32.xlu0 %v7400_v16  ;;  %1968 = vadd.xlane.f32.xlu1 %v7398_v40  ;;  %v7404_v17 = vpop.eup %6122 }
 0x466   : > { %v7407_v57 = vpop.eup %6124 }
 0x467   : > { %1964 = vadd.xlane.f32.xlu1 %v7404_v17 }
 0x46b   : > { %1972 = vadd.xlane.f32.xlu1 %v7407_v57 }
 0x479   : > { %2386 = vrot.lane.b32.xlu0 %v7208_v6, %s6736_s9  ;;  %v2395_v6 = vpop.permute.xlu0 %2394 }
 0x47c   : > { %2384 = vrot.lane.b32.xlu1 %v7214_v8, %s6736_s9 }
 0x47d   : > { %2368 = vrot.lane.b32.xlu0 %v7225_v20, %s6736_s9 }
 0x480   : > { %2370 = vrot.lane.b32.xlu1 %v7227_v21, %s6736_s9 }
 0x481   : > { %2372 = vrot.lane.b32.xlu0 %v7235_v33, %s6736_s9 }
 0x484   : > { %2374 = vrot.lane.b32.xlu1 %v7233_v31, %s6736_s9 }
 0x485   : > { %2376 = vrot.lane.b32.xlu0 %v7243_v43, %s6736_s9 }
 0x488   : > { %2378 = vrot.lane.b32.xlu1 %v7241_v41, %s6736_s9 }
 0x489   : > { %2380 = vrot.lane.b32.xlu0 %v7251_v51, %s6736_s9 }
 0x48c   : > { %2382 = vrot.lane.b32.xlu1 %v7249_v50, %s6736_s9 }
 0x48d   : > { %2711 = vrot.lane.b32.xlu0 %v7259_v18, %s6736_s9 }
 0x490   : > { %2709 = vrot.lane.b32.xlu1 %v7262_v19, %s6736_s9 }
 0x491   : > { %2707 = vrot.lane.b32.xlu0 %v7268_v22, %s6736_s9  ;;  %v7444_v22 = vpop.f32.mrf.mxu1 }
 0x494   : > { %2701 = vrot.lane.b32.xlu1 %v7285_v24, %s6736_s9  ;;  %v7446_v24 = vpop.f32.mrf.mxu1 }
 0x495   : > { %2705 = vrot.lane.b32.xlu0 %v7272_v23, %s6736_s9 }
 0x496   : > { %v7448_v23 = vpop.f32.mrf.mxu1 }
 0x498   : > { %2697 = vrot.lane.b32.xlu1 %v7291_v25, %s6736_s9  ;;  %v7450_v25 = vpop.f32.mrf.mxu1 }
 0x499   : > { %2703 = vrot.lane.b32.xlu0 %v7278_v47, %s6736_s9  ;;  %8764 = vst [vmem:[#allocation38_spill] sm:$0xff] %v7450_v25 }
 0x49a   : > { %v7452_v44 = vpop.f32.mrf.mxu1 }
 0x49c   : > { %v7457_v2 = vpop.f32.mrf.mxu1 }
 0x49e   : > { %v7460_v28 = vpop.f32.mrf.mxu1 }
 0x49f   : > { %v1951_v8 = vpop.xlane.xlu0 %1950 }
 0x4a0   : > { %v7462_v62 = vpop.f32.mrf.mxu1 }
 0x4a1   : > { %8765 = vst [vmem:[#allocation39_spill] sm:$0xff] %v7462_v62 }
 0x4a3   : > { %v1947_v18 = vpop.xlane.xlu0 %1946  ;;  %v1953_v27 = vpop.xlane.xlu1 %1952 }
 0x4a4   : > { %6126 = vrcp.f32 %v1953_v27 }
 0x4a5   : > { %6128 = vrcp.f32 %v1947_v18 }
 0x4a6   : > { %6130 = vrcp.f32 %v1951_v8 }
 0x4a7   : > { %v1949_v19 = vpop.xlane.xlu1 %1948 }
 0x4a8   : > { %6132 = vrcp.f32 %v1949_v19 }
 0x4b1   : > { %v6127_v29 = vpop.eup %6126 }
 0x4b2   : > { %v6129_v30 = vpop.eup %6128  ;;  %v1997_v45 = vmul.f32 %v6127_v29, %v7351_v3  ;;  %v7466_v3 = vpop.f32.mrf.mxu1 }
 0x4b3   : > { %v6131_v47 = vpop.eup %6130  ;;  %v1994_v26 = vmul.f32 %v6129_v30, %v7349_v1 }
 0x4b4   : > { %v1996_v58 = vmul.f32 %v6131_v47, %v7346_v60  ;;  %v7470_v1 = vpop.f32.mrf.mxu1  ;;  %v1477_v60 = vlaneseq  ;;  %v2437_v47 = vsel %vm1720_vm0, %v7369_v37, 0 }
 0x4b5   : > { %v6133_v4 = vpop.eup %6132 }
 0x4b6   : > { %v1995_v46 = vmul.f32 %v6133_v4, %v7355_v5  ;;  %v2011_v48 = vpack.c.bf16 %v1997_v45, %v1996_v58  ;;  %v7472_v5 = vpop.f32.mrf.mxu1  ;;  %v1478_v0 = vshrl.u32 %v1477_v60, 7  ;;  %v2391_v4 = vpop.permute.xlu0 %2390 }
 0x4b7   : > { %v2389_v58 = vpop.permute.xlu1 %2388 }
 0x4b8   : > { %v2010_v32 = vpack.c.bf16 %v1995_v46, %v1994_v26  ;;  %v7474_v63 = vpop.f32.mrf.mxu1  ;;  %v1479_v34 = vsub.s32 0, %v1478_v0  ;;  %v1483_v7 = vsub.s32 1, %v1478_v0 }
 0x4b9   : > { %8766 = vst [vmem:[#allocation40_spill] sm:$0xff] %v7474_v63 }
 0x4ba   : > { %5540 = vmatprep.mubr.bf16.mxu1 %v2010_v32  ;;  %v7478_v38 = vpop.f32.mrf.mxu1  ;;  %v7491_v11 = vrot.slane %v1475_v55, %v1479_v34  ;;  %v7495_v8 = vrot.slane %v1475_v55, %v1483_v7 }
 0x4bb   : > { %5541 = vmatmul.mubr.bf16.vlgmr.msra.gmra.mxu1 %v2011_v48 }
 0x4bc   : > { %5557 = vmatpush3.bf16.xpose.msra.mxu1 %v2446_v61  ;;  %v7481_v54 = vpop.f32.mrf.mxu1  ;;  %8769 = vst [vmem:[#allocation42_spill] sm:$0xff] %v7495_v8 }
 0x4bd   : > { %5773 = vmatprep.subr.msk.bf16.mxu1 %vm1720_vm0, %v7344_v42  ;;  %v2440_v42 = vsel %vm1720_vm0, %v2395_v6, 0 }
 0x4be   : > { %v7486_v35 = vpop.f32.mrf.mxu1 }
 0x4c0   : > { %v7488_v10 = vpop.f32.mrf.mxu1 }
 0x4c1   : > { %8768 = vst [vmem:[#allocation41_spill] sm:$0xff] %v7488_v10 }
 0x4c2   : > { %v1641_v39 = vpop.f32.mrf.mxu1 }
 0x4c3   : > { %v7498_v18 = vadd.f32 %v1641_v39, %v7491_v11 }
 0x4c4   : > { %5559 = vmatpush3.bf16.xpose.msra.mxu1 %v2443_v49  ;;  %v1643_v27 = vpop.f32.mrf.mxu1 }
 0x4c5   : > { %5774 = vmatprep.subr.msk.bf16.mxu1 %vm1720_vm0, %v2395_v6  ;;  %v7501_v19 = vadd.f32 %v1643_v27, %v7495_v8 }
 0x4c6   : > { %v1645_v29 = vpop.f32.mrf.mxu1 }
 0x4c7   : > { %v7504_v30 = vadd.f32 %v1645_v29, %v7491_v11 }
 0x4c8   : > { %v7506_v6 = vpop.f32.mrf.mxu1 }
 0x4c9   : > { %8770 = vst [vmem:[#allocation43_spill] sm:$0xff] %v7506_v6 }
 0x4ca   : > { %v1651_v45 = vpop.f32.mrf.mxu1 }
 0x4cb   : > { %v7512_v26 = vadd.f32 %v1651_v45, %v7491_v11  ;;  %v2431_v45 = vsel %vm1720_vm0, %v2389_v58, 0 }
 0x4cc   : > { %5561 = vmatpush3.bf16.xpose.msra.mxu1 %v2440_v42  ;;  %v1653_v46 = vpop.f32.mrf.mxu1 }
 0x4cd   : > { %5775 = vmatprep.subr.msk.bf16.mxu1 %vm1720_vm0, %v7369_v37  ;;  %v7515_v32 = vadd.f32 %v1653_v46, %v7495_v8  ;;  %v2434_v37 = vsel %vm1720_vm0, %v2391_v4, 0 }
 0x4ce   : > { %v1655_v61 = vpop.f32.mrf.mxu1 }
 0x4cf   : > { %v7518_v60 = vadd.f32 %v1655_v61, %v7491_v11 }
 0x4d0   : > { %v7520_v49 = vpop.f32.mrf.mxu1 }
 0x4d1   : > { %8771 = vst [vmem:[#allocation44_spill] sm:$0xff] %v7520_v49 }
 0x4d2   : > { %v1661_v55 = vpop.f32.mrf.mxu1 }
 0x4d3   : > { %v7525_v7 = vadd.f32 %v1661_v55, %v7491_v11 }
 0x4d4   : > { %5563 = vmatpush3.bf16.xpose.msra.mxu1 %v2437_v47  ;;  %v1663_v42 = vpop.f32.mrf.mxu1 }
 0x4d5   : > { %5776 = vmatprep.subr.msk.bf16.mxu1 %vm1720_vm0, %v2391_v4  ;;  %v7528_v27 = vadd.f32 %v1663_v42, %v7495_v8 }
 0x4d6   : > { %v1665_v29 = vpop.f32.mrf.mxu1 }
 0x4d7   : > { %v7531_v4 = vadd.f32 %v1665_v29, %v7491_v11 }
 0x4d8   : > { %v1959_v48 = vpop.xlane.xlu0 %1958  ;;  %v7534_v46 = vpop.f32.mrf.mxu1 }
 0x4dc   : > { %5565 = vmatpush3.bf16.xpose.msra.mxu1 %v2434_v37  ;;  %v1957_v0 = vpop.xlane.xlu0 %1956  ;;  %v1955_v34 = vpop.xlane.xlu1 %1954 }
 0x4dd   : > { %6134 = vrcp.f32 %v1957_v0  ;;  %5777 = vmatprep.subr.msk.bf16.mxu1 %vm1720_vm0, %v2389_v58  ;;  %v1671_v37 = vpop.f32.mrf.mxu1 }
 0x4de   : > { %6136 = vrcp.f32 %v1955_v34  ;;  %v7537_v0 = vadd.f32 %v1671_v37, %v7491_v11 }
 0x4df   : > { %6138 = vrcp.f32 %v1959_v48  ;;  %v1673_v48 = vpop.f32.mrf.mxu1 }
 0x4e0   : > { %v1961_v39 = vpop.xlane.xlu1 %1960  ;;  %v1975_v47 = vpop.xlane.xlu0 %1974  ;;  %v7540_v42 = vadd.f32 %v1673_v48, %v7495_v8 }
 0x4e1   : > { %6140 = vrcp.f32 %v1961_v39  ;;  %v1675_v39 = vpop.f32.mrf.mxu1 }
 0x4e2   : > { %v7543_v29 = vadd.f32 %v1675_v39, %v7491_v11 }
 0x4e4   : > { %5567 = vmatpush3.bf16.xpose.msra.mxu1 %v2431_v45  ;;  %v1967_v61 = vpop.xlane.xlu1 %1966  ;;  %v1971_v34 = vpop.xlane.xlu0 %1970 }
 0x4e8   : > { %v1963_v55 = vpop.xlane.xlu1 %1962 }
 0x4ea   : > { %v6135_v14 = vpop.eup %6134 }
 0x4eb   : > { %v6137_v58 = vpop.eup %6136  ;;  %v1999_v10 = vmul.f32 %v6135_v14, %v7378_v59 }
 0x4ec   : > { %v1977_v45 = vpop.xlane.xlu0 %1976  ;;  %v1969_v63 = vpop.xlane.xlu1 %1968  ;;  %v1998_v62 = vmul.f32 %v6137_v58, %v7374_v53 }
 0x4ed   : > { %v6139_v37 = vpop.eup %6138  ;;  %6142 = vrcp.f32 %v1969_v63  ;;  %v6056_v63 = vld [vmem:[#allocation13 + $0x14] ss:$8 sps:$4 sm:$0xff]  }
 0x4ee   : > { %v2012_v25 = vpack.c.bf16 %v1999_v10, %v1998_v62  ;;  %v6141_v49 = vpop.eup %6140  ;;  %6144 = vrcp.f32 %v1963_v55  ;;  %v2000_v51 = vmul.f32 %v6139_v37, %v7371_v56  ;;  %v6054_v62 = vld [vmem:[#allocation13 + $0x10] ss:$8 sps:$4 sm:$0xff]   ;;  %2227 = vmatprep.subr.bf16.mxu0 %v6056_v63 }
 0x4ef   : > { %6146 = vrcp.f32 %v1967_v61  ;;  %v2001_v39 = vmul.f32 %v6141_v49, %v7382_v9  ;;  %2228 = vmatpush1.bf16.msra.mxu0 %v6054_v62 }
 0x4f0   : > { %5544 = vmatprep.mubr.bf16.mxu1 %v2012_v25  ;;  %v2387_v48 = vpop.permute.xlu0 %2386  ;;  %v1965_v6 = vpop.xlane.xlu1 %1964 }
 0x4f1   : > { %6148 = vrcp.f32 %v1965_v6  ;;  %5778 = vmatprep.subr.msk.bf16.mxu1 %vm1720_vm0, %v2387_v48  ;;  %v2428_v14 = vsel %vm1720_vm0, %v2387_v48, 0  ;;  %v2013_v59 = vpack.c.bf16 %v2001_v39, %v2000_v51 }
 0x4f2   : > { %5569 = vmatpush3.bf16.xpose.msra.mxu1 %v2428_v14  ;;  %6150 = vrcp.f32 %v1971_v34  ;;  %v6059_v34 = vld [vmem:[#allocation13 + $0x4] ss:$8 sps:$4 sm:$0xff]  }
 0x4f3   : > { %5545 = vmatmul.mubr.bf16.gmra.mxu1 %v2013_v59  ;;  %2229 = vmatprep.subr.bf16.mxu0 %v6059_v34 }
 0x4f4   : > { %v1973_v53 = vpop.xlane.xlu1 %1972 }
 0x4f5   : > { %6152 = vrcp.f32 %v1973_v53 }
 0x4f6   : > { %6154 = vrcp.f32 %v1977_v45  ;;  %v6057_v45 = vld [vmem:[#allocation13] ss:$8 sps:$4 sm:$0xff]  }
 0x4f7   : > { %6156 = vrcp.f32 %v1975_v47  ;;  %2230 = vmatpush1.bf16.msra.mxu0 %v6057_v45 }
 0x4f8   : > { %v2385_v25 = vpop.permute.xlu1 %2384 }
 0x4f9   : > { %5779 = vmatprep.subr.msk.bf16.mxu1 %vm1720_vm0, %v2385_v25  ;;  %v2425_v56 = vsel %vm1720_vm0, %v2385_v25, 0 }
 0x4fa   : > { %5571 = vmatpush3.bf16.xpose.msra.mxu1 %v2425_v56  ;;  %v6143_v9 = vpop.eup %6142  ;;  %v2369_v56 = vpop.permute.xlu0 %2368 }
 0x4fb   : > { %v6145_v10 = vpop.eup %6144  ;;  %v2005_v49 = vmul.f32 %v6143_v9, %v7398_v40 }
 0x4fc   : > { %v6147_v6 = vpop.eup %6146  ;;  %v2002_v61 = vmul.f32 %v6145_v10, %v7395_v15  ;;  %v2371_v9 = vpop.permute.xlu1 %2370  ;;  %v8772_v10 = vmov 0  }
 0x4fd   : > { %v2004_v58 = vmul.f32 %v6147_v6, %v7389_v36  ;;  %v7570_v6 = vpop.f32.mrf.mxu1 }
 0x4fe   : > { %v6149_v51 = vpop.eup %6148  ;;  %v2373_v62 = vpop.permute.xlu0 %2372  ;;  %8773 = vst [vmem:[#allocation45_spill] sm:$0xff] %v7570_v6 }
 0x4ff   : > { %v2003_v47 = vmul.f32 %v6149_v51, %v7404_v17  ;;  %v6151_v55 = vpop.eup %6150  ;;  %v2015_v39 = vpack.c.bf16 %v2005_v49, %v2004_v58 }
 0x500   : > { %v2006_v59 = vmul.f32 %v6151_v55, %v7391_v13  ;;  %v2375_v13 = vpop.permute.xlu1 %2374 }
 0x501   : > { %v2014_v37 = vpack.c.bf16 %v2003_v47, %v2002_v61 }
 0x502   : > { %v6153_v48 = vpop.eup %6152 }
 0x503   : > { %v6155_v14 = vpop.eup %6154  ;;  %5548 = vmatprep.mubr.bf16.mxu1 %v2014_v37  ;;  %v2007_v40 = vmul.f32 %v6153_v48, %v7407_v57  ;;  %v2377_v57 = vpop.permute.xlu0 %2376 }
 0x504   : > { %5549 = vmatmul.mubr.bf16.gmra.mxu1 %v2015_v39  ;;  %v6157_v15 = vpop.eup %6156  ;;  %v2009_v17 = vmul.f32 %v6155_v14, %v7400_v16  ;;  %v2379_v16 = vpop.permute.xlu1 %2378 }
 0x505   : > { %v2016_v53 = vpack.c.bf16 %v2007_v40, %v2006_v59  ;;  %v2008_v36 = vmul.f32 %v6157_v15, %v7385_v12 }
 0x507   : > { %5552 = vmatprep.mubr.bf16.mxu1 %v2016_v53  ;;  %v2017_v25 = vpack.c.bf16 %v2009_v17, %v2008_v36  ;;  %v2381_v63 = vpop.permute.xlu0 %2380 }
 0x508   : > { %v2383_v12 = vpop.permute.xlu1 %2382 }
 0x50b   : > { %v2712_v58 = vpop.permute.xlu0 %2711 }
 0x50c   : > { %5553 = vmatmul.mubr.bf16.gmra.mxu1 %v2017_v25  ;;  %5588 = vmatprep.subr.bf16.mxu0 %v2712_v58  ;;  %v2710_v45 = vpop.permute.xlu1 %2709 }
 0x50d   : > { %5572 = vmatprep.mubr.msk.bf16.mxu1 %vm1720_vm0, %v2369_v56 }
 0x50f   : > { %v2708_v37 = vpop.permute.xlu0 %2707 }
 0x510   : > { %v2702_v14 = vpop.permute.xlu1 %2701 }
 0x513   : > { %v2706_v48 = vpop.permute.xlu0 %2705 }
 0x514   : > { %5573 = vmatmul.mubr.msk.bf16.vlgmr.msra.gmra.mxu1 %vm1720_vm0, %v2371_v9 }
 0x515   : > { %5576 = vmatprep.mubr.msk.bf16.mxu1 %vm1720_vm0, %v2373_v62 }
 0x517   : > { %v2704_v39 = vpop.permute.xlu0 %2703 }
 0x51c   : > { %5577 = vmatmul.mubr.msk.bf16.gmra.mxu1 %vm1720_vm0, %v2375_v13 }
 0x51d   : > { %5580 = vmatprep.mubr.msk.bf16.mxu1 %vm1720_vm0, %v2377_v57 }
 0x524   : > { %5581 = vmatmul.mubr.msk.bf16.gmra.mxu1 %vm1720_vm0, %v2379_v16 }
 0x525   : > { %5584 = vmatprep.mubr.msk.bf16.mxu1 %vm1720_vm0, %v2381_v63 }
 0x52c   : > { %5585 = vmatmul.mubr.msk.bf16.gmra.mxu1 %vm1720_vm0, %v2383_v12 }
 0x52d   : > { %2902 = vmatprep.mubr.bf16.mxu1 %v8772_v10 }
 0x57b   : > { %v5542_v51 = vpop.f32.mrf.mxu1 }
 0x57d   : > { %v2100_v49 = vpop.f32.mrf.mxu1 }
 0x57f   : > { %v5543_v61 = vpop.f32.mrf.mxu1 }
 0x580   : > { %v2164_v55 = vpack.c.bf16 %v5543_v61, %v5542_v51 }
 0x581   : > { %v2103_v47 = vpop.f32.mrf.mxu1 }
 0x582   : > { %v2163_v34 = vpack.c.bf16 %v2103_v47, %v2100_v49 }
 0x584   : > { %4938 = vmatmul.mubr.msk.bf16.vlgmr.msra.gmra.mxu0 %vm1720_vm0, %v2163_v34 }
 0x585   : > { %2257 = vmatprep.mubr.bf16.mxu0 %v8772_v10  ;;  %5589 = vmatpush3.bf16.msra.mxu0 %v2712_v58 }
 0x586   : > { %5590 = vmatprep.subr.bf16.mxu0 %v2710_v45 }
 0x589   : > { %5591 = vmatpush3.bf16.msra.mxu0 %v2710_v45 }
 0x58a   : > { %5592 = vmatprep.subr.bf16.mxu0 %v2708_v37 }
 0x58c   : > { %4939 = vmatmul.mubr.msk.bf16.gmra.mxu0 %vm1720_vm0, %v2164_v55 }
 0x58d   : > { %2267 = vmatprep.mubr.bf16.mxu0 %v8772_v10  ;;  %5593 = vmatpush3.bf16.msra.mxu0 %v2708_v37 }
 0x58e   : > { %5594 = vmatprep.subr.bf16.mxu0 %v2706_v48 }
 0x591   : > { %5595 = vmatpush3.bf16.msra.mxu0 %v2706_v48 }
 0x592   : > { %5596 = vmatprep.subr.bf16.mxu0 %v2704_v39 }
 0x595   : > { %5597 = vmatpush3.bf16.msra.mxu0 %v2704_v39 }
 0x596   : > { %5598 = vmatprep.subr.bf16.mxu0 %v2702_v14 }
 0x599   : > { %5599 = vmatpush3.bf16.msra.mxu0 %v2702_v14 }
 0x5b3   : > { %v5546_v59 = vpop.f32.mrf.mxu1 }
 0x5b5   : > { %v2116_v40 = vpop.f32.mrf.mxu1 }
 0x5b7   : > { %v5547_v15 = vpop.f32.mrf.mxu1 }
 0x5b8   : > { %v2166_v36 = vpack.c.bf16 %v5547_v15, %v5546_v59 }
 0x5b9   : > { %v2119_v53 = vpop.f32.mrf.mxu1 }
 0x5ba   : > { %v2165_v17 = vpack.c.bf16 %v2119_v53, %v2116_v40  ;;  %v7621_v53 = vld [vmem:[#allocation2 + $0x30] sm:$0xff]  }
 0x5bc   : > { %4940 = vmatmul.mubr.msk.bf16.gmra.mxu0 %vm1720_vm0, %v2165_v17  ;;  %v7625_v17 = vld [vmem:[#allocation2 + $0x20] sm:$0xff]  }
 0x5bd   : > { %2277 = vmatprep.mubr.bf16.mxu0 %v8772_v10 }
 0x5c4   : > { %v5550_v25 = vpop.f32.mrf.mxu1  ;;  %4941 = vmatmul.mubr.msk.bf16.gmra.mxu0 %vm1720_vm0, %v2166_v36 }
 0x5c5   : > { %2287 = vmatprep.mubr.bf16.mxu0 %v8772_v10 }
 0x5c6   : > { %v2132_v56 = vpop.f32.mrf.mxu1 }
 0x5c8   : > { %v5551_v9 = vpop.f32.mrf.mxu1 }
 0x5c9   : > { %v2168_v51 = vpack.c.bf16 %v5551_v9, %v5550_v25  ;;  %v7645_v9 = vld [vmem:[#allocation2 + $0x38] sm:$0xff]  }
 0x5ca   : > { %v2135_v62 = vpop.f32.mrf.mxu1  ;;  %8774 = vst [vmem:[#allocation46_spill] sm:$0xff] %v7645_v9 }
 0x5cb   : > { %v2167_v13 = vpack.c.bf16 %v2135_v62, %v2132_v56  ;;  %v7649_v62 = vld [vmem:[#allocation2 + $0x28] sm:$0xff]  }
 0x5cc   : > { %v5554_v57 = vpop.f32.mrf.mxu1  ;;  %8775 = vst [vmem:[#allocation47_spill] sm:$0xff] %v7649_v62 }
 0x5cd   : > { %4942 = vmatmul.mubr.msk.bf16.gmra.mxu0 %vm1720_vm0, %v2167_v13  ;;  %v1602_v13 = vadd.f32 %v7444_v22, %v7491_v11 }
 0x5ce   : > { %v2148_v16 = vpop.f32.mrf.mxu1  ;;  %2297 = vmatprep.mubr.bf16.mxu0 %v8772_v10 }
 0x5d0   : > { %v5555_v63 = vpop.f32.mrf.mxu1 }
 0x5d1   : > { %v2170_v39 = vpack.c.bf16 %v5555_v63, %v5554_v57  ;;  %v1604_v63 = vadd.f32 %v7446_v24, %v7495_v8  ;;  %v1614_v24 = vadd.f32 %v7457_v2, %v7495_v8 }
 0x5d2   : > { %v2151_v12 = vpop.f32.mrf.mxu1 }
 0x5d3   : > { %v2169_v55 = vpack.c.bf16 %v2151_v12, %v2148_v16  ;;  %v7655_v16 = vld [vmem:[#allocation2 + $0x18] sm:$0xff]  }
 0x5d4   : > { %v7582_v49 = vpop.f32.mrf.mxu1  ;;  %8776 = vst [vmem:[#allocation48_spill] sm:$0xff] %v7655_v16 }
 0x5d5   : > { %4943 = vmatmul.mubr.msk.bf16.gmra.mxu0 %vm1720_vm0, %v2168_v51  ;;  %2549 = vmax.xlane.f32.xlu0 %v7582_v49 }
 0x5d6   : > { %v7586_v61 = vpop.f32.mrf.mxu1  ;;  %2307 = vmatprep.mubr.bf16.mxu0 %v8772_v10 }
 0x5d8   : > { %v7589_v47 = vpop.f32.mrf.mxu1 }
 0x5d9   : > { %2545 = vmax.xlane.f32.xlu0 %v7586_v61 }
 0x5da   : > { %v7592_v34 = vpop.f32.mrf.mxu1 }
 0x5db   : > { %2547 = vmax.xlane.f32.xlu1 %v7592_v34 }
 0x5dc   : > { %v7595_v58 = vpop.f32.mrf.mxu1 }
 0x5dd   : > { %4944 = vmatmul.mubr.msk.bf16.gmra.mxu0 %vm1720_vm0, %v2169_v55  ;;  %2551 = vmax.xlane.f32.xlu0 %v7589_v47  ;;  %v1606_v55 = vadd.f32 %v7448_v23, %v7491_v11  ;;  %v1616_v23 = vadd.f32 %v7460_v28, %v7491_v11 }
 0x5de   : > { %v7599_v45 = vpop.f32.mrf.mxu1  ;;  %2317 = vmatprep.mubr.bf16.mxu0 %v8772_v10 }
 0x5e0   : > { %v7602_v37 = vpop.f32.mrf.mxu1 }
 0x5e1   : > { %2559 = vmax.xlane.f32.xlu1 %v7602_v37 }
 0x5e2   : > { %v7605_v48 = vpop.f32.mrf.mxu1 }
 0x5e4   : > { %v7607_v14 = vpop.f32.mrf.mxu1 }
 0x5e5   : > { %4945 = vmatmul.mubr.msk.bf16.gmra.mxu0 %vm1720_vm0, %v2170_v39  ;;  %2555 = vmax.xlane.f32.xlu1 %v7605_v48 }
 0x5e6   : > { %v7611_v59 = vpop.f32.mrf.mxu1 }
 0x5e8   : > { %v7613_v40 = vpop.f32.mrf.mxu1 }
 0x5e9   : > { %2567 = vmax.xlane.f32.xlu1 %v7613_v40 }
 0x5ea   : > { %v7616_v15 = vpop.f32.mrf.mxu1 }
 0x5ec   : > { %v7632_v36 = vpop.f32.mrf.mxu1 }
 0x5ed   : > { %2563 = vmax.xlane.f32.xlu1 %v7616_v15 }
 0x5f3   : > { %2699 = vrot.lane.b32.xlu0 %v7289_v52, %s6736_s9  ;;  %v7635_v52 = vpop.f32.mrf.mxu1 }
 0x5f5   : > { %v7638_v25 = vpop.f32.mrf.mxu1 }
 0x5f7   : > { %v7642_v56 = vpop.f32.mrf.mxu1 }
 0x5fe   : > { %3043 = vrot.lane.b32.xlu1 %v7621_v53, %s6738_s20 }
 0x602   : > { %3039 = vrot.lane.b32.xlu1 %v7625_v17, %s6738_s20 }
 0x612   : > { %2557 = vmax.xlane.f32.xlu0 %v7595_v58 }
 0x616   : > { %2553 = vmax.xlane.f32.xlu0 %v7599_v45 }
 0x61a   : > { %2565 = vmax.xlane.f32.xlu0 %v7607_v14 }
 0x61e   : > { %2561 = vmax.xlane.f32.xlu0 %v7611_v59 }
 0x622   : > { %2573 = vmax.xlane.f32.xlu0 %v7632_v36 }
 0x626   : > { %2569 = vmax.xlane.f32.xlu0 %v7635_v52  ;;  %2575 = vmax.xlane.f32.xlu1 %v7638_v25 }
 0x62a   : > { %2571 = vmax.xlane.f32.xlu1 %v7642_v56 }
 0x63c   : > { %3045 = vrot.lane.b32.xlu0 %v7645_v9, %s6738_s20  ;;  %v1612_v9 = vadd.f32 %v7452_v44, %v7491_v11 }
 0x640   : > { %3041 = vrot.lane.b32.xlu0 %v7649_v62, %s6738_s20 }
 0x644   : > { %v2249_v57 = vpop.f32.mrf.mxu0  ;;  %3037 = vrot.lane.b32.xlu0 %v7655_v16, %s6738_s20 }
 0x645   : > { %v7661_v12 = vadd.f32 %v2249_v57, %v1602_v13 }
 0x646   : > { %v2251_v51 = vpop.f32.mrf.mxu0 }
 0x647   : > { %v7665_v39 = vadd.f32 %v2251_v51, %v1604_v63 }
 0x648   : > { %v2253_v6 = vpop.f32.mrf.mxu0 }
 0x649   : > { %8777 = vst [vmem:[#allocation49_spill] sm:$0xff] %v7665_v39  ;;  %v7667_v62 = vadd.f32 %v2253_v6, %v1606_v55 }
 0x64a   : > { %v7669_v22 = vpop.f32.mrf.mxu0 }
 0x64b   : > { %8778 = vst [vmem:[#allocation50_spill] sm:$0xff] %v7667_v62  ;;  %8779 = vst [vmem:[#allocation51_spill] sm:$0xff] %v7669_v22  ;;  %v2698_v62 = vpop.permute.xlu1 %2697 }
 0x64c   : > { %v2259_v16 = vpop.f32.mrf.mxu0 }
 0x64d   : > { %v7675_v13 = vadd.f32 %v2259_v16, %v1612_v9 }
 0x64e   : > { %v2261_v57 = vpop.f32.mrf.mxu0 }
 0x64f   : > { %8780 = vst [vmem:[#allocation52_spill] sm:$0xff] %v7675_v13  ;;  %v7679_v63 = vadd.f32 %v2261_v57, %v1614_v24 }
 0x650   : > { %v2263_v51 = vpop.f32.mrf.mxu0 }
 0x651   : > { %v7681_v6 = vadd.f32 %v2263_v51, %v1616_v23 }
 0x65e   : > { %v2550_v55 = vpop.xlane.xlu0 %2549 }
 0x65f   : > { %v2579_v22 = vsub.f32 %v7582_v49, %v2550_v55 }
 0x661   : > { %v2597_v44 = vmul.f32 1.442695, %v2579_v22  ;;  %v1622_v22 = vadd.f32 %v7466_v3, %v7491_v11  ;;  %v1632_v3 = vadd.f32 %v7478_v38, %v7491_v11 }
 0x662   : > { %v2546_v39 = vpop.xlane.xlu0 %2545 }
 0x663   : > { %6158 = vpow2.f32 %v2597_v44  ;;  %v2577_v2 = vsub.f32 %v7586_v61, %v2546_v39 }
 0x664   : > { %v2548_v9 = vpop.xlane.xlu1 %2547 }
 0x665   : > { %v2593_v16 = vmul.f32 1.442695, %v2577_v2  ;;  %v2578_v28 = vsub.f32 %v7592_v34, %v2548_v9  ;;  %v1626_v2 = vadd.f32 %v7472_v5, %v7491_v11  ;;  %v1636_v5 = vadd.f32 %v7486_v35, %v7491_v11 }
 0x666   : > { %v2552_v13 = vpop.xlane.xlu0 %2551 }
 0x667   : > { %6160 = vpow2.f32 %v2593_v16  ;;  %v2580_v24 = vsub.f32 %v7589_v47, %v2552_v13  ;;  %v2595_v51 = vmul.f32 1.442695, %v2578_v28  ;;  %v7696_v47 = vpop.f32.mrf.mxu0 }
 0x668   : > { %8781 = vst [vmem:[#allocation53_spill] sm:$0xff] %v7696_v47 }
 0x669   : > { %v2599_v57 = vmul.f32 1.442695, %v2580_v24 }
 0x66a   : > { %v2700_v23 = vpop.permute.xlu0 %2699 }
 0x66b   : > { %6162 = vpow2.f32 %v2599_v57  ;;  %5600 = vmatprep.subr.bf16.mxu0 %v2700_v23 }
 0x66c   : > { %5601 = vmatpush3.bf16.msra.mxu0 %v2700_v23  ;;  %6164 = vpow2.f32 %v2595_v51 }
 0x66d   : > { %5602 = vmatprep.subr.bf16.mxu0 %v2698_v62 }
 0x670   : > { %v7687_v49 = vpop.eup %6158  ;;  %5603 = vmatpush3.bf16.msra.mxu0 %v2698_v62  ;;  %v1624_v62 = vadd.f32 %v7470_v1, %v7495_v8  ;;  %v1634_v1 = vadd.f32 %v7481_v54, %v7495_v8 }
 0x671   : > { %2629 = vadd.xlane.f32.xlu1 %v7687_v49 }
 0x674   : > { %v7690_v61 = vpop.eup %6160 }
 0x675   : > { %2625 = vadd.xlane.f32.xlu1 %v7690_v61 }
 0x678   : > { %v7693_v34 = vpop.eup %6162 }
 0x679   : > { %2631 = vadd.xlane.f32.xlu1 %v7693_v34  ;;  %v7698_v39 = vpop.eup %6164 }
 0x67c   : > { %v2269_v13 = vpop.f32.mrf.mxu0 }
 0x67d   : > { %2627 = vadd.xlane.f32.xlu1 %v7698_v39  ;;  %v7705_v55 = vadd.f32 %v2269_v13, %v1622_v22 }
 0x67e   : > { %v2271_v44 = vpop.f32.mrf.mxu0 }
 0x67f   : > { %v7709_v9 = vadd.f32 %v2271_v44, %v1624_v62 }
 0x680   : > { %v2273_v16 = vpop.f32.mrf.mxu0 }
 0x681   : > { %v7711_v28 = vadd.f32 %v2273_v16, %v1626_v2  ;;  %v2560_v2 = vpop.xlane.xlu1 %2559 }
 0x682   : > { %v7713_v24 = vpop.f32.mrf.mxu0 }
 0x683   : > { %8782 = vst [vmem:[#allocation54_spill] sm:$0xff] %v7713_v24  ;;  %v7732_v24 = vld [vmem:[#allocation2 + $0x10] sm:$0xff]  }
 0x684   : > { %v2279_v57 = vpop.f32.mrf.mxu0 }
 0x685   : > { %v7719_v23 = vadd.f32 %v2279_v57, %v1632_v3  ;;  %v2556_v3 = vpop.xlane.xlu1 %2555 }
 0x686   : > { %v2281_v51 = vpop.f32.mrf.mxu0 }
 0x687   : > { %v7723_v22 = vadd.f32 %v2281_v51, %v1634_v1 }
 0x688   : > { %v2283_v13 = vpop.f32.mrf.mxu0 }
 0x689   : > { %v7725_v62 = vadd.f32 %v2283_v13, %v1636_v5  ;;  %v2568_v13 = vpop.xlane.xlu1 %2567 }
 0x68a   : > { %v7727_v44 = vpop.f32.mrf.mxu0 }
 0x68b   : > { %8783 = vst [vmem:[#allocation55_spill] sm:$0xff] %v7727_v44 }
 0x68d   : > { %v2289_v16 = vpop.f32.mrf.mxu0 }
 0x68e   : > { %v7730_v38 = vadd.f32 %v2289_v16, %v7498_v18  ;;  %3035 = vrot.lane.b32.xlu1 %v7732_v24, %s6738_s20 }
 0x68f   : > { %v2291_v54 = vpop.f32.mrf.mxu0 }
 0x690   : > { %v7737_v35 = vadd.f32 %v2291_v54, %v7501_v19  ;;  %v2582_v54 = vsub.f32 %v7605_v48, %v2556_v3 }
 0x691   : > { %v2293_v11 = vpop.f32.mrf.mxu0 }
 0x692   : > { %v7740_v57 = vadd.f32 %v2293_v11, %v7504_v30 }
 0x693   : > { %v7742_v1 = vpop.f32.mrf.mxu0 }
 0x694   : > { %8784 = vst [vmem:[#allocation56_spill] sm:$0xff] %v7740_v57  ;;  %8785 = vst [vmem:[#allocation57_spill] sm:$0xff] %v7742_v1  ;;  %v2564_v1 = vpop.xlane.xlu1 %2563 }
 0x695   : > { %v2299_v51 = vpop.f32.mrf.mxu0 }
 0x696   : > { %v7745_v18 = vadd.f32 %v2299_v51, %v7512_v26 }
 0x697   : > { %v2301_v5 = vpop.f32.mrf.mxu0 }
 0x698   : > { %8786 = vst [vmem:[#allocation58_spill] sm:$0xff] %v7745_v18  ;;  %v7748_v16 = vadd.f32 %v2301_v5, %v7515_v32  ;;  %v2584_v32 = vsub.f32 %v7602_v37, %v2560_v2  ;;  %v2603_v5 = vmul.f32 1.442695, %v2582_v54 }
 0x699   : > { %v2303_v44 = vpop.f32.mrf.mxu0 }
 0x69a   : > { %8787 = vst [vmem:[#allocation59_spill] sm:$0xff] %v7748_v16  ;;  %v7751_v19 = vadd.f32 %v2303_v44, %v7518_v60 }
 0x69b   : > { %v7754_v47 = vpop.f32.mrf.mxu0  ;;  %v2558_v30 = vpop.xlane.xlu0 %2557 }
 0x69c   : > { %v2583_v11 = vsub.f32 %v7595_v58, %v2558_v30  ;;  %v1668_v58 = vadd.f32 %v7534_v46, %v7495_v8 }
 0x69d   : > { %v2309_v57 = vpop.f32.mrf.mxu0 }
 0x69e   : > { %v2605_v26 = vmul.f32 1.442695, %v2583_v11  ;;  %v7758_v51 = vadd.f32 %v2309_v57, %v7525_v7  ;;  %v2607_v7 = vmul.f32 1.442695, %v2584_v32 }
 0x69f   : > { %v2311_v16 = vpop.f32.mrf.mxu0  ;;  %v2554_v18 = vpop.xlane.xlu0 %2553 }
 0x6a0   : > { %6166 = vpow2.f32 %v2605_v26  ;;  %v7762_v60 = vadd.f32 %v2311_v16, %v7528_v27  ;;  %v2581_v48 = vsub.f32 %v7599_v45, %v2554_v18  ;;  %v7773_v16 = vpop.permute.xlu1 %3043 }
 0x6a1   : > { %v2313_v44 = vpop.f32.mrf.mxu0  ;;  %6168 = vpow2.f32 %v2603_v5 }
 0x6a2   : > { %v2601_v3 = vmul.f32 1.442695, %v2581_v48  ;;  %v7768_v30 = vadd.f32 %v2313_v44, %v7531_v4  ;;  %v2588_v4 = vsub.f32 %v7613_v40, %v2568_v13 }
 0x6a3   : > { %v2315_v37 = vpop.f32.mrf.mxu0  ;;  %v2566_v2 = vpop.xlane.xlu0 %2565 }
 0x6a4   : > { %6170 = vpow2.f32 %v2601_v3  ;;  %v7770_v57 = vadd.f32 %v2315_v37, %v1668_v58  ;;  %v2587_v27 = vsub.f32 %v7607_v14, %v2566_v2  ;;  %v2615_v44 = vmul.f32 1.442695, %v2588_v4  ;;  %v7787_v58 = vpop.permute.xlu1 %3039 }
 0x6a5   : > { %v2319_v45 = vpop.f32.mrf.mxu0  ;;  %6172 = vpow2.f32 %v2607_v7 }
 0x6a6   : > { %v2613_v18 = vmul.f32 1.442695, %v2587_v27  ;;  %v7776_v54 = vadd.f32 %v2319_v45, %v7537_v0  ;;  %v2586_v0 = vsub.f32 %v7616_v15, %v2564_v1 }
 0x6a7   : > { %v2321_v46 = vpop.f32.mrf.mxu0  ;;  %v2562_v11 = vpop.xlane.xlu0 %2561 }
 0x6a8   : > { %6174 = vpow2.f32 %v2613_v18  ;;  %v7780_v26 = vadd.f32 %v2321_v46, %v7540_v42  ;;  %v2585_v32 = vsub.f32 %v7611_v59, %v2562_v11  ;;  %v2611_v59 = vmul.f32 1.442695, %v2586_v0 }
 0x6a9   : > { %v2323_v5 = vpop.f32.mrf.mxu0 }
 0x6aa   : > { %v2609_v14 = vmul.f32 1.442695, %v2585_v32  ;;  %v7784_v48 = vadd.f32 %v2323_v5, %v7543_v29 }
 0x6ab   : > { %v2574_v3 = vpop.xlane.xlu0 %2573 }
 0x6ac   : > { %6176 = vpow2.f32 %v2609_v14  ;;  %v2591_v40 = vsub.f32 %v7632_v36, %v2574_v3  ;;  %v7833_v3 = vld [vmem:[#allocation2] sm:$0xff]  }
 0x6ad   : > { %v7790_v13 = vpop.eup %6166  ;;  %6178 = vpow2.f32 %v2615_v44 }
 0x6ae   : > { %v2621_v42 = vmul.f32 1.442695, %v2591_v40  ;;  %2637 = vadd.xlane.f32.xlu0 %v7790_v13  ;;  %v7793_v29 = vpop.eup %6168  ;;  %v7839_v40 = vld [vmem:[#allocation2 + $0x8] sm:$0xff]  }
 0x6af   : > { %v2570_v7 = vpop.xlane.xlu0 %2569  ;;  %v2576_v37 = vpop.xlane.xlu1 %2575 }
 0x6b0   : > { %6180 = vpow2.f32 %v2621_v42  ;;  %v2589_v15 = vsub.f32 %v7635_v52, %v2570_v7  ;;  %v2592_v1 = vsub.f32 %v7638_v25, %v2576_v37  ;;  %v7855_v42 = vld [vmem:[#allocation3 + $0x30] sm:$0xff]   ;;  %v7862_v37 = vld [vmem:[#allocation3 + $0x38] sm:$0xff]  }
 0x6b1   : > { %v7797_v2 = vpop.eup %6170  ;;  %6182 = vpow2.f32 %v2611_v59  ;;  %8788 = vst [vmem:[#allocation60_spill] sm:$0xff] %v7855_v42  ;;  %v8789_v59 = vld [vmem:[#allocation37_spill] sm:$0xff]  ;;  %v6359_v7 = vld [vmem:[#allocation3 + $0x10] sm:$0xff]   ;;  %8790 = vst [vmem:[#allocation61_spill] sm:$0xff] %v7862_v37 }
 0x6b2   : > { %v2617_v27 = vmul.f32 1.442695, %v2589_v15  ;;  %2633 = vadd.xlane.f32.xlu0 %v7797_v2  ;;  %2635 = vadd.xlane.f32.xlu1 %v7793_v29  ;;  %v2623_v36 = vmul.f32 1.442695, %v2592_v1  ;;  %v7803_v4 = vpop.eup %6172  ;;  %v6361_v15 = vld [vmem:[#allocation3] sm:$0xff]   ;;  %v7867_v1 = vld [vmem:[#allocation3 + $0x28] sm:$0xff]  }
 0x6b3   : > { %v2572_v45 = vpop.xlane.xlu1 %2571  ;;  %v7801_v18 = vpop.permute.xlu0 %3045  ;;  %8791 = vst [vmem:[#allocation62_spill] sm:$0xff] %v7867_v1 }
 0x6b4   : > { %6184 = vpow2.f32 %v2617_v27  ;;  %v2590_v46 = vsub.f32 %v7642_v56, %v2572_v45  ;;  %5780 = vmatprep.subr.msk.bf16.mxu0 %vm1720_vm0, %v7801_v18  ;;  %v7871_v27 = vld [vmem:[#allocation3 + $0x20] sm:$0xff]   ;;  %v6364_v45 = vld [vmem:[#allocation3 + $0x18] sm:$0xff]  }
 0x6b5   : > { %v7808_v52 = vpop.eup %6174  ;;  %6186 = vpow2.f32 %v2623_v36  ;;  %8792 = vst [vmem:[#allocation63_spill] sm:$0xff] %v7871_v27 }
 0x6b6   : > { %v2619_v25 = vmul.f32 1.442695, %v2590_v46  ;;  %2639 = vadd.xlane.f32.xlu0 %v7803_v4  ;;  %2645 = vadd.xlane.f32.xlu1 %v7808_v52 }
 0x6b8   : > { %6188 = vpow2.f32 %v2619_v25 }
 0x6b9   : > { %v7812_v11 = vpop.eup %6176 }
 0x6ba   : > { %2641 = vadd.xlane.f32.xlu1 %v7812_v11  ;;  %v7815_v32 = vpop.eup %6178 }
 0x6bd   : > { %v7817_v5 = vpop.eup %6180 }
 0x6be   : > { %2653 = vadd.xlane.f32.xlu0 %v7817_v5  ;;  %2647 = vadd.xlane.f32.xlu1 %v7815_v32  ;;  %v7821_v56 = vpop.eup %6182 }
 0x6c1   : > { %v7823_v14 = vpop.eup %6184 }
 0x6c2   : > { %2649 = vadd.xlane.f32.xlu0 %v7823_v14  ;;  %2643 = vadd.xlane.f32.xlu1 %v7821_v56  ;;  %v7827_v44 = vpop.eup %6186 }
 0x6c5   : > { %v7829_v0 = vpop.eup %6188 }
 0x6c6   : > { %2655 = vadd.xlane.f32.xlu0 %v7827_v44  ;;  %2651 = vadd.xlane.f32.xlu1 %v7829_v0 }
 0x6d7   : > { %3031 = vrot.lane.b32.xlu1 %v7833_v3, %s6738_s20 }
 0x6db   : > { %3017 = vrot.lane.b32.xlu1 %v7227_v21, %s6738_s20 }
 0x6dc   : > { %3033 = vrot.lane.b32.xlu0 %v7839_v40, %s6738_s20 }
 0x6df   : > { %3021 = vrot.lane.b32.xlu1 %v7233_v31, %s6738_s20 }
 0x6e0   : > { %3015 = vrot.lane.b32.xlu0 %v7225_v20, %s6738_s20 }
 0x6e3   : > { %3025 = vrot.lane.b32.xlu1 %v7241_v41, %s6738_s20 }
 0x6e4   : > { %3019 = vrot.lane.b32.xlu0 %v7235_v33, %s6738_s20 }
 0x6e7   : > { %3029 = vrot.lane.b32.xlu1 %v7249_v50, %s6738_s20 }
 0x6e8   : > { %3023 = vrot.lane.b32.xlu0 %v7243_v43, %s6738_s20 }
 0x6eb   : > { %3356 = vrot.lane.b32.xlu1 %v7855_v42, %s6738_s20 }
 0x6ec   : > { %3027 = vrot.lane.b32.xlu0 %v8789_v59, %s6738_s20 }
 0x6ef   : > { %3348 = vrot.lane.b32.xlu1 %v6359_v7, %s6738_s20 }
 0x6f0   : > { %3358 = vrot.lane.b32.xlu0 %v7862_v37, %s6738_s20 }
 0x6f3   : > { %3344 = vrot.lane.b32.xlu1 %v6361_v15, %s6738_s20 }
 0x6f4   : > { %3354 = vrot.lane.b32.xlu0 %v7867_v1, %s6738_s20 }
 0x6f8   : > { %3352 = vrot.lane.b32.xlu0 %v7871_v27, %s6738_s20 }
 0x6fa   : > { %v2630_v36 = vpop.xlane.xlu1 %2629 }
 0x6fc   : > { %3350 = vrot.lane.b32.xlu0 %v6364_v45, %s6738_s20 }
 0x6fe   : > { %v2626_v46 = vpop.xlane.xlu1 %2625 }
 0x702   : > { %v2632_v25 = vpop.xlane.xlu1 %2631 }
 0x703   : > { %6190 = vrcp.f32 %v2632_v25 }
 0x704   : > { %6192 = vrcp.f32 %v2626_v46  ;;  %v3042_v46 = vpop.permute.xlu0 %3041 }
 0x705   : > { %6194 = vrcp.f32 %v2630_v36  ;;  %v3093_v36 = vsel %vm1720_vm0, %v7801_v18, 0 }
 0x706   : > { %v2628_v7 = vpop.xlane.xlu1 %2627 }
 0x707   : > { %6196 = vrcp.f32 %v2628_v7 }
 0x710   : > { %v6191_v15 = vpop.eup %6190 }
 0x711   : > { %v6193_v37 = vpop.eup %6192  ;;  %v2676_v42 = vmul.f32 %v6191_v15, %v7693_v34  ;;  %v3090_v34 = vsel %vm1720_vm0, %v7773_v16, 0 }
 0x712   : > { %v6195_v59 = vpop.eup %6194  ;;  %v2673_v43 = vmul.f32 %v6193_v37, %v7690_v61 }
 0x713   : > { %v2675_v50 = vmul.f32 %v6195_v59, %v7687_v49  ;;  %v3087_v49 = vsel %vm1720_vm0, %v3042_v46, 0 }
 0x714   : > { %v6197_v1 = vpop.eup %6196 }
 0x715   : > { %v2674_v27 = vmul.f32 %v6197_v1, %v7698_v39  ;;  %v2690_v33 = vpack.c.bf16 %v2676_v42, %v2675_v50  ;;  %v3036_v50 = vpop.permute.xlu1 %3035 }
 0x717   : > { %v2689_v45 = vpack.c.bf16 %v2674_v27, %v2673_v43  ;;  %v3038_v43 = vpop.permute.xlu0 %3037 }
 0x718   : > { %v3081_v39 = vsel %vm1720_vm0, %v3038_v43, 0 }
 0x719   : > { %5604 = vmatprep.mubr.bf16.mxu0 %v2689_v45 }
 0x71a   : > { %5605 = vmatmul.mubr.bf16.vlgmr.msra.gmra.mxu0 %v2690_v33  ;;  %v3084_v33 = vsel %vm1720_vm0, %v7787_v58, 0 }
 0x71b   : > { %5621 = vmatpush3.bf16.xpose.msra.mxu0 %v3093_v36 }
 0x71c   : > { %5781 = vmatprep.subr.msk.bf16.mxu0 %vm1720_vm0, %v7773_v16 }
 0x723   : > { %5623 = vmatpush3.bf16.xpose.msra.mxu0 %v3090_v34 }
 0x724   : > { %5782 = vmatprep.subr.msk.bf16.mxu0 %vm1720_vm0, %v3042_v46 }
 0x72b   : > { %5625 = vmatpush3.bf16.xpose.msra.mxu0 %v3087_v49 }
 0x72c   : > { %5783 = vmatprep.subr.msk.bf16.mxu0 %vm1720_vm0, %v7787_v58  ;;  %v3078_v58 = vsel %vm1720_vm0, %v3036_v50, 0 }
 0x733   : > { %5627 = vmatpush3.bf16.xpose.msra.mxu0 %v3084_v33 }
 0x734   : > { %5784 = vmatprep.subr.msk.bf16.mxu0 %vm1720_vm0, %v3038_v43 }
 0x737   : > { %v2638_v61 = vpop.xlane.xlu0 %2637 }
 0x73b   : > { %5629 = vmatpush3.bf16.xpose.msra.mxu0 %v3081_v39  ;;  %v2634_v16 = vpop.xlane.xlu0 %2633  ;;  %v2636_v18 = vpop.xlane.xlu1 %2635 }
 0x73c   : > { %6198 = vrcp.f32 %v2634_v16  ;;  %5785 = vmatprep.subr.msk.bf16.mxu0 %vm1720_vm0, %v3036_v50 }
 0x73d   : > { %6200 = vrcp.f32 %v2636_v18 }
 0x73e   : > { %6202 = vrcp.f32 %v2638_v61 }
 0x73f   : > { %v2640_v42 = vpop.xlane.xlu0 %2639  ;;  %v2646_v59 = vpop.xlane.xlu1 %2645 }
 0x740   : > { %6204 = vrcp.f32 %v2640_v42 }
 0x743   : > { %5631 = vmatpush3.bf16.xpose.msra.mxu0 %v3078_v58  ;;  %v2642_v37 = vpop.xlane.xlu1 %2641 }
 0x747   : > { %v2654_v1 = vpop.xlane.xlu0 %2653  ;;  %v2648_v27 = vpop.xlane.xlu1 %2647 }
 0x748   : > { %6206 = vrcp.f32 %v2648_v27  ;;  %v6060_v27 = vld [vmem:[#allocation13 + $0x30] ss:$8 sps:$4 sm:$0xff]  }
 0x749   : > { %v6199_v25 = vpop.eup %6198  ;;  %6208 = vrcp.f32 %v2642_v37 }
 0x74a   : > { %v6201_v7 = vpop.eup %6200  ;;  %v2677_v15 = vmul.f32 %v6199_v25, %v7797_v2  ;;  %6210 = vrcp.f32 %v2646_v59  ;;  %v6062_v25 = vld [vmem:[#allocation13 + $0x34] ss:$8 sps:$4 sm:$0xff]  }
 0x74b   : > { %v6203_v45 = vpop.eup %6202  ;;  %v2650_v36 = vpop.xlane.xlu0 %2649  ;;  %v2678_v46 = vmul.f32 %v6201_v7, %v7793_v29  ;;  %2882 = vmatprep.subr.bf16.mxu1 %v6062_v25 }
 0x74c   : > { %v2644_v34 = vpop.xlane.xlu1 %2643  ;;  %v2679_v43 = vmul.f32 %v6203_v45, %v7790_v13  ;;  %2883 = vmatpush1.bf16.msra.mxu1 %v6060_v27 }
 0x74d   : > { %v6205_v49 = vpop.eup %6204  ;;  %6212 = vrcp.f32 %v2644_v34  ;;  %v2691_v33 = vpack.c.bf16 %v2678_v46, %v2677_v15 }
 0x74e   : > { %v2680_v50 = vmul.f32 %v6205_v49, %v7803_v4  ;;  %6214 = vrcp.f32 %v2650_v36  ;;  %v6065_v49 = vld [vmem:[#allocation13 + $0x24] ss:$8 sps:$4 sm:$0xff]  }
 0x74f   : > { %5608 = vmatprep.mubr.bf16.mxu0 %v2691_v33  ;;  %v2656_v61 = vpop.xlane.xlu0 %2655  ;;  %2884 = vmatprep.subr.bf16.mxu1 %v6065_v49 }
 0x750   : > { %v2652_v39 = vpop.xlane.xlu1 %2651  ;;  %v2692_v16 = vpack.c.bf16 %v2680_v50, %v2679_v43  ;;  %v6063_v50 = vld [vmem:[#allocation13 + $0x20] ss:$8 sps:$4 sm:$0xff]  }
 0x751   : > { %6216 = vrcp.f32 %v2652_v39  ;;  %2885 = vmatpush1.bf16.msra.mxu1 %v6063_v50 }
 0x752   : > { %6218 = vrcp.f32 %v2656_v61  ;;  %5609 = vmatmul.mubr.bf16.gmra.mxu0 %v2692_v16 }
 0x753   : > { %v3034_v2 = vpop.permute.xlu0 %3033  ;;  %6220 = vrcp.f32 %v2654_v1 }
 0x754   : > { %5786 = vmatprep.subr.msk.bf16.mxu0 %vm1720_vm0, %v3034_v2  ;;  %v3075_v29 = vsel %vm1720_vm0, %v3034_v2, 0  ;;  %v3032_v18 = vpop.permute.xlu1 %3031 }
 0x755   : > { %5633 = vmatpush3.bf16.xpose.msra.mxu0 %v3075_v29  ;;  %v6207_v13 = vpop.eup %6206  ;;  %v3072_v37 = vsel %vm1720_vm0, %v3032_v18, 0 }
 0x756   : > { %5787 = vmatprep.subr.msk.bf16.mxu0 %vm1720_vm0, %v3032_v18  ;;  %v6209_v4 = vpop.eup %6208  ;;  %v2684_v58 = vmul.f32 %v6207_v13, %v7815_v32  ;;  %v7921_v13 = vpop.f32.mrf.mxu0 }
 0x757   : > { %v6211_v42 = vpop.eup %6210  ;;  %v2681_v1 = vmul.f32 %v6209_v4, %v7812_v11  ;;  %v3016_v16 = vpop.permute.xlu0 %3015  ;;  %8793 = vst [vmem:[#allocation64_spill] sm:$0xff] %v7921_v13  ;;  %v8808_v13 = vld [vmem:[#allocation56_spill] sm:$0xff] }
 0x758   : > { %v2683_v45 = vmul.f32 %v6211_v42, %v7808_v52  ;;  %v3018_v2 = vpop.permute.xlu1 %3017 }
 0x75a   : > { %v6213_v59 = vpop.eup %6212  ;;  %v2694_v46 = vpack.c.bf16 %v2684_v58, %v2683_v45 }
 0x75b   : > { %v2682_v7 = vmul.f32 %v6213_v59, %v7821_v56  ;;  %v6215_v15 = vpop.eup %6214 }
 0x75c   : > { %v2685_v32 = vmul.f32 %v6215_v15, %v7823_v14  ;;  %v3020_v14 = vpop.permute.xlu0 %3019 }
 0x75d   : > { %v2693_v36 = vpack.c.bf16 %v2682_v7, %v2681_v1  ;;  %5635 = vmatpush3.bf16.xpose.msra.mxu0 %v3072_v37 }
 0x75e   : > { %v6217_v34 = vpop.eup %6216 }
 0x75f   : > { %v6219_v33 = vpop.eup %6218  ;;  %5612 = vmatprep.mubr.bf16.mxu0 %v2693_v36  ;;  %v2686_v43 = vmul.f32 %v6217_v34, %v7829_v0  ;;  %v3022_v0 = vpop.permute.xlu1 %3021 }
 0x760   : > { %5613 = vmatmul.mubr.bf16.gmra.mxu0 %v2694_v46  ;;  %v6221_v11 = vpop.eup %6220  ;;  %v2688_v52 = vmul.f32 %v6219_v33, %v7827_v44  ;;  %v3024_v29 = vpop.permute.xlu0 %3023 }
 0x761   : > { %v2695_v56 = vpack.c.bf16 %v2686_v43, %v2685_v32  ;;  %v2687_v61 = vmul.f32 %v6221_v11, %v7817_v5 }
 0x763   : > { %5616 = vmatprep.mubr.bf16.mxu0 %v2695_v56  ;;  %v2696_v39 = vpack.c.bf16 %v2688_v52, %v2687_v61  ;;  %v3026_v44 = vpop.permute.xlu1 %3025 }
 0x764   : > { %v3028_v18 = vpop.permute.xlu0 %3027 }
 0x767   : > { %v3030_v5 = vpop.permute.xlu1 %3029 }
 0x768   : > { %5617 = vmatmul.mubr.bf16.gmra.mxu0 %v2696_v39  ;;  %v3359_v25 = vpop.permute.xlu0 %3358 }
 0x769   : > { %5636 = vmatprep.mubr.msk.bf16.mxu0 %vm1720_vm0, %v3016_v16  ;;  %5652 = vmatprep.subr.bf16.mxu1 %v3359_v25 }
 0x76b   : > { %v3357_v1 = vpop.permute.xlu1 %3356 }
 0x76c   : > { %v3355_v7 = vpop.permute.xlu0 %3354 }
 0x76f   : > { %v3349_v36 = vpop.permute.xlu1 %3348 }
 0x770   : > { %5637 = vmatmul.mubr.msk.bf16.vlgmr.msra.gmra.mxu0 %vm1720_vm0, %v3018_v2  ;;  %v3353_v15 = vpop.permute.xlu0 %3352 }
 0x771   : > { %5640 = vmatprep.mubr.msk.bf16.mxu0 %vm1720_vm0, %v3020_v14 }
 0x774   : > { %v3351_v45 = vpop.permute.xlu0 %3350 }
 0x778   : > { %5641 = vmatmul.mubr.msk.bf16.gmra.mxu0 %vm1720_vm0, %v3022_v0 }
 0x779   : > { %5644 = vmatprep.mubr.msk.bf16.mxu0 %vm1720_vm0, %v3024_v29 }
 0x780   : > { %5645 = vmatmul.mubr.msk.bf16.gmra.mxu0 %vm1720_vm0, %v3026_v44 }
 0x781   : > { %5648 = vmatprep.mubr.msk.bf16.mxu0 %vm1720_vm0, %v3028_v18 }
 0x788   : > { %5649 = vmatmul.mubr.msk.bf16.gmra.mxu0 %vm1720_vm0, %v3030_v5 }
 0x789   : > { %3549 = vmatprep.mubr.bf16.mxu0 %v8772_v10 }
 0x7da   : > { %v5606_v4 = vpop.f32.mrf.mxu0 }
 0x7dc   : > { %v2755_v42 = vpop.f32.mrf.mxu0 }
 0x7de   : > { %v5607_v59 = vpop.f32.mrf.mxu0 }
 0x7df   : > { %v2819_v27 = vpack.c.bf16 %v5607_v59, %v5606_v4 }
 0x7e0   : > { %v2758_v58 = vpop.f32.mrf.mxu0 }
 0x7e1   : > { %v2818_v37 = vpack.c.bf16 %v2758_v58, %v2755_v42 }
 0x7e3   : > { %4958 = vmatmul.mubr.msk.bf16.vlgmr.msra.gmra.mxu1 %vm1720_vm0, %v2818_v37 }
 0x7e4   : > { %2912 = vmatprep.mubr.bf16.mxu1 %v8772_v10  ;;  %5653 = vmatpush3.bf16.msra.mxu1 %v3359_v25 }
 0x7e5   : > { %5654 = vmatprep.subr.bf16.mxu1 %v3357_v1 }
 0x7e8   : > { %5655 = vmatpush3.bf16.msra.mxu1 %v3357_v1 }
 0x7e9   : > { %5656 = vmatprep.subr.bf16.mxu1 %v3355_v7 }
 0x7eb   : > { %4959 = vmatmul.mubr.msk.bf16.gmra.mxu1 %vm1720_vm0, %v2819_v27 }
 0x7ec   : > { %2922 = vmatprep.mubr.bf16.mxu1 %v8772_v10  ;;  %5657 = vmatpush3.bf16.msra.mxu1 %v3355_v7 }
 0x7ed   : > { %5658 = vmatprep.subr.bf16.mxu1 %v3353_v15 }
 0x7f0   : > { %5659 = vmatpush3.bf16.msra.mxu1 %v3353_v15 }
 0x7f1   : > { %5660 = vmatprep.subr.bf16.mxu1 %v3351_v45 }
 0x7f4   : > { %5661 = vmatpush3.bf16.msra.mxu1 %v3351_v45  ;;  %v6365_v45 = vld [vmem:[#allocation3 + $0x8] sm:$0xff]  }
 0x7f5   : > { %5662 = vmatprep.subr.bf16.mxu1 %v3349_v36 }
 0x7f8   : > { %5663 = vmatpush3.bf16.msra.mxu1 %v3349_v36 }
 0x812   : > { %v5610_v34 = vpop.f32.mrf.mxu0 }
 0x814   : > { %v2771_v46 = vpop.f32.mrf.mxu0 }
 0x816   : > { %v5611_v49 = vpop.f32.mrf.mxu0 }
 0x817   : > { %v2821_v50 = vpack.c.bf16 %v5611_v49, %v5610_v34  ;;  %v8795_v49 = vld [vmem:[#allocation47_spill] sm:$0xff] }
 0x818   : > { %v2774_v33 = vpop.f32.mrf.mxu0 }
 0x819   : > { %v2820_v32 = vpack.c.bf16 %v2774_v33, %v2771_v46  ;;  %v8796_v33 = vld [vmem:[#allocation48_spill] sm:$0xff] }
 0x81b   : > { %4960 = vmatmul.mubr.msk.bf16.gmra.mxu1 %vm1720_vm0, %v2820_v32 }
 0x81c   : > { %2932 = vmatprep.mubr.bf16.mxu1 %v8772_v10 }
 0x820   : > { %v5614_v43 = vpop.f32.mrf.mxu0 }
 0x822   : > { %v2787_v11 = vpop.f32.mrf.mxu0 }
 0x823   : > { %4961 = vmatmul.mubr.msk.bf16.gmra.mxu1 %vm1720_vm0, %v2821_v50 }
 0x824   : > { %v5615_v56 = vpop.f32.mrf.mxu0  ;;  %2942 = vmatprep.mubr.bf16.mxu1 %v8772_v10 }
 0x825   : > { %v2823_v29 = vpack.c.bf16 %v5615_v56, %v5614_v43 }
 0x826   : > { %v2790_v52 = vpop.f32.mrf.mxu0 }
 0x827   : > { %v2822_v39 = vpack.c.bf16 %v2790_v52, %v2787_v11  ;;  %v8797_v11 = vld [vmem:[#allocation49_spill] sm:$0xff] }
 0x828   : > { %v5618_v61 = vpop.f32.mrf.mxu0 }
 0x82a   : > { %v2803_v16 = vpop.f32.mrf.mxu0 }
 0x82b   : > { %4962 = vmatmul.mubr.msk.bf16.gmra.mxu1 %vm1720_vm0, %v2822_v39 }
 0x82c   : > { %v5619_v2 = vpop.f32.mrf.mxu0  ;;  %2952 = vmatprep.mubr.bf16.mxu1 %v8772_v10 }
 0x82d   : > { %v2825_v25 = vpack.c.bf16 %v5619_v2, %v5618_v61  ;;  %v8798_v61 = vld [vmem:[#allocation50_spill] sm:$0xff] }
 0x82e   : > { %v2806_v14 = vpop.f32.mrf.mxu0 }
 0x82f   : > { %v2824_v42 = vpack.c.bf16 %v2806_v14, %v2803_v16  ;;  %v8799_v14 = vld [vmem:[#allocation52_spill] sm:$0xff] }
 0x830   : > { %v7933_v0 = vpop.f32.mrf.mxu0 }
 0x831   : > { %3196 = vmax.xlane.f32.xlu0 %v7933_v0 }
 0x832   : > { %v7936_v44 = vpop.f32.mrf.mxu0 }
 0x833   : > { %4963 = vmatmul.mubr.msk.bf16.gmra.mxu1 %vm1720_vm0, %v2823_v29 }
 0x834   : > { %v7939_v18 = vpop.f32.mrf.mxu0  ;;  %2962 = vmatprep.mubr.bf16.mxu1 %v8772_v10 }
 0x835   : > { %3192 = vmax.xlane.f32.xlu0 %v7936_v44 }
 0x836   : > { %v7943_v5 = vpop.f32.mrf.mxu0 }
 0x837   : > { %3194 = vmax.xlane.f32.xlu1 %v7943_v5 }
 0x838   : > { %v7946_v4 = vpop.f32.mrf.mxu0 }
 0x839   : > { %3198 = vmax.xlane.f32.xlu0 %v7939_v18 }
 0x83a   : > { %v7949_v59 = vpop.f32.mrf.mxu0 }
 0x83b   : > { %4964 = vmatmul.mubr.msk.bf16.gmra.mxu1 %vm1720_vm0, %v2824_v42 }
 0x83c   : > { %v7952_v58 = vpop.f32.mrf.mxu0  ;;  %2972 = vmatprep.mubr.bf16.mxu1 %v8772_v10 }
 0x83d   : > { %3206 = vmax.xlane.f32.xlu1 %v7952_v58 }
 0x83e   : > { %v7956_v37 = vpop.f32.mrf.mxu0 }
 0x840   : > { %v7958_v27 = vpop.f32.mrf.mxu0 }
 0x841   : > { %3202 = vmax.xlane.f32.xlu1 %v7956_v37 }
 0x842   : > { %v7961_v1 = vpop.f32.mrf.mxu0 }
 0x843   : > { %4965 = vmatmul.mubr.msk.bf16.gmra.mxu1 %vm1720_vm0, %v2825_v25 }
 0x844   : > { %v7964_v7 = vpop.f32.mrf.mxu0 }
 0x845   : > { %3214 = vmax.xlane.f32.xlu1 %v7964_v7 }
 0x846   : > { %v7967_v15 = vpop.f32.mrf.mxu0 }
 0x848   : > { %v7978_v36 = vpop.f32.mrf.mxu0 }
 0x849   : > { %3210 = vmax.xlane.f32.xlu1 %v7967_v15 }
 0x84a   : > { %v7981_v34 = vpop.f32.mrf.mxu0 }
 0x84c   : > { %v7984_v46 = vpop.f32.mrf.mxu0 }
 0x84f   : > { %3346 = vrot.lane.b32.xlu0 %v6365_v45, %s6738_s20  ;;  %s6586_s20 = sshll.u32 %s6740_s2, 4  ;;  %s6587_s20 = int_to_ptr.vmem [resolvable:$false] %s6586_s20 }
 0x850   : > { %p6589_p11 = scmp.lt.s32.totalorder %s8601_s8, %s6587_s20 }
 0x85a   : > { %3690 = vrot.lane.b32.xlu1 %v7621_v53, %s6739_s13  ;;  %v7988_v53 = vpop.f32.mrf.mxu0 }
 0x85e   : > { %3686 = vrot.lane.b32.xlu1 %v7625_v17, %s6739_s13  ;;  %v8794_v17 = vld [vmem:[#allocation46_spill] sm:$0xff] }
 0x86e   : > { %3204 = vmax.xlane.f32.xlu0 %v7946_v4 }
 0x872   : > { %3200 = vmax.xlane.f32.xlu0 %v7949_v59 }
 0x876   : > { %3212 = vmax.xlane.f32.xlu0 %v7958_v27 }
 0x87a   : > { %3208 = vmax.xlane.f32.xlu0 %v7961_v1 }
 0x87e   : > { %3220 = vmax.xlane.f32.xlu0 %v7978_v36 }
 0x882   : > { %3216 = vmax.xlane.f32.xlu0 %v7981_v34  ;;  %3222 = vmax.xlane.f32.xlu1 %v7984_v46 }
 0x886   : > { %3218 = vmax.xlane.f32.xlu1 %v7988_v53 }
 0x898   : > { %3692 = vrot.lane.b32.xlu0 %v8794_v17, %s6739_s13 }
 0x89c   : > { %3688 = vrot.lane.b32.xlu0 %v8795_v49, %s6739_s13 }
 0x8a0   : > { %3684 = vrot.lane.b32.xlu0 %v8796_v33, %s6739_s13  ;;  %v3345_v33 = vpop.permute.xlu1 %3344 }
 0x8a3   : > { %v2904_v32 = vpop.f32.mrf.mxu1 }
 0x8a4   : > { %v7998_v43 = vadd.f32 %v2904_v32, %v7661_v12 }
 0x8a5   : > { %v2906_v50 = vpop.f32.mrf.mxu1 }
 0x8a6   : > { %v8001_v56 = vadd.f32 %v2906_v50, %v8797_v11 }
 0x8a7   : > { %v2908_v52 = vpop.f32.mrf.mxu1 }
 0x8a8   : > { %v8004_v39 = vadd.f32 %v2908_v52, %v8798_v61 }
 0x8a9   : > { %v8006_v16 = vpop.f32.mrf.mxu1 }
 0x8ab   : > { %v2914_v2 = vpop.f32.mrf.mxu1 }
 0x8ac   : > { %v8009_v29 = vadd.f32 %v2914_v2, %v8799_v14 }
 0x8ad   : > { %v2916_v42 = vpop.f32.mrf.mxu1 }
 0x8ae   : > { %v8012_v25 = vadd.f32 %v2916_v42, %v7679_v63 }
 0x8af   : > { %v2918_v12 = vpop.f32.mrf.mxu1 }
 0x8b0   : > { %v8015_v45 = vadd.f32 %v2918_v12, %v7681_v6 }
 0x8ba   : > { %v3197_v17 = vpop.xlane.xlu0 %3196 }
 0x8bb   : > { %v3226_v49 = vsub.f32 %v7933_v0, %v3197_v17  ;;  %v8032_v17 = vpop.f32.mrf.mxu1 }
 0x8bd   : > { %v3244_v32 = vmul.f32 1.442695, %v3226_v49 }
 0x8be   : > { %v3193_v50 = vpop.xlane.xlu0 %3192 }
 0x8bf   : > { %6222 = vpow2.f32 %v3244_v32  ;;  %v3224_v11 = vsub.f32 %v7936_v44, %v3193_v50 }
 0x8c0   : > { %v3195_v52 = vpop.xlane.xlu1 %3194 }
 0x8c1   : > { %v3240_v61 = vmul.f32 1.442695, %v3224_v11  ;;  %v3225_v63 = vsub.f32 %v7943_v5, %v3195_v52 }
 0x8c2   : > { %v3199_v2 = vpop.xlane.xlu0 %3198 }
 0x8c3   : > { %6224 = vpow2.f32 %v3240_v61  ;;  %v3227_v14 = vsub.f32 %v7939_v18, %v3199_v2  ;;  %v3242_v12 = vmul.f32 1.442695, %v3225_v63 }
 0x8c5   : > { %v3246_v42 = vmul.f32 1.442695, %v3227_v14 }
 0x8c6   : > { %v3347_v6 = vpop.permute.xlu0 %3346 }
 0x8c7   : > { %6226 = vpow2.f32 %v3246_v42  ;;  %5664 = vmatprep.subr.bf16.mxu1 %v3347_v6 }
 0x8c8   : > { %5665 = vmatpush3.bf16.msra.mxu1 %v3347_v6  ;;  %6228 = vpow2.f32 %v3242_v12  ;;  %v3207_v6 = vpop.xlane.xlu1 %3206 }
 0x8c9   : > { %5666 = vmatprep.subr.bf16.mxu1 %v3345_v33 }
 0x8cc   : > { %v8021_v0 = vpop.eup %6222  ;;  %5667 = vmatpush3.bf16.msra.mxu1 %v3345_v33 }
 0x8cd   : > { %3276 = vadd.xlane.f32.xlu1 %v8021_v0 }
 0x8d0   : > { %v8024_v44 = vpop.eup %6224 }
 0x8d1   : > { %3272 = vadd.xlane.f32.xlu1 %v8024_v44 }
 0x8d4   : > { %v8027_v5 = vpop.eup %6226 }
 0x8d5   : > { %3278 = vadd.xlane.f32.xlu1 %v8027_v5  ;;  %v8030_v18 = vpop.eup %6228 }
 0x8d9   : > { %3274 = vadd.xlane.f32.xlu1 %v8030_v18 }
 0x8db   : > { %v2924_v49 = vpop.f32.mrf.mxu1 }
 0x8dc   : > { %v8036_v32 = vadd.f32 %v2924_v49, %v7705_v55 }
 0x8dd   : > { %v2926_v33 = vpop.f32.mrf.mxu1 }
 0x8de   : > { %v8039_v50 = vadd.f32 %v2926_v33, %v7709_v9  ;;  %v8806_v33 = vld [vmem:[#allocation43_spill] sm:$0xff] }
 0x8df   : > { %v2928_v11 = vpop.f32.mrf.mxu1 }
 0x8e0   : > { %v8042_v52 = vadd.f32 %v2928_v11, %v7711_v28  ;;  %v1648_v11 = vadd.f32 %v8806_v33, %v7495_v8  ;;  %v8812_v33 = vld [vmem:[#allocation44_spill] sm:$0xff] }
 0x8e1   : > { %v8044_v61 = vpop.f32.mrf.mxu1 }
 0x8e2   : > { %8800 = vst [vmem:[#allocation46_spill] sm:$0xff] %v8042_v52  ;;  %v1658_v52 = vadd.f32 %v8812_v33, %v7495_v8  ;;  %v3231_v33 = vsub.f32 %v7952_v58, %v3207_v6 }
 0x8e3   : > { %v2934_v2 = vpop.f32.mrf.mxu1 }
 0x8e4   : > { %v8047_v63 = vadd.f32 %v2934_v2, %v7719_v23 }
 0x8e5   : > { %v2936_v14 = vpop.f32.mrf.mxu1 }
 0x8e6   : > { %8801 = vst [vmem:[#allocation47_spill] sm:$0xff] %v8047_v63  ;;  %v8050_v42 = vadd.f32 %v2936_v14, %v7723_v22  ;;  %v3203_v22 = vpop.xlane.xlu1 %3202 }
 0x8e7   : > { %v2938_v55 = vpop.f32.mrf.mxu1 }
 0x8e8   : > { %8802 = vst [vmem:[#allocation48_spill] sm:$0xff] %v8050_v42  ;;  %v8053_v12 = vadd.f32 %v2938_v55, %v7725_v62  ;;  %v8807_v62 = vld [vmem:[#allocation57_spill] sm:$0xff] }
 0x8e9   : > { %v8055_v9 = vpop.f32.mrf.mxu1  ;;  %v2347_v55 = vadd.f32 %v8807_v62, %v1648_v11  ;;  %v3229_v11 = vsub.f32 %v7956_v37, %v3203_v22  ;;  %v3254_v22 = vmul.f32 1.442695, %v3231_v33 }
 0x8ea   : > { %8803 = vst [vmem:[#allocation49_spill] sm:$0xff] %v8053_v12  ;;  %8804 = vst [vmem:[#allocation50_spill] sm:$0xff] %v8055_v9  ;;  %3682 = vrot.lane.b32.xlu1 %v7732_v24, %s6739_s13 }
 0x8eb   : > { %v2944_v28 = vpop.f32.mrf.mxu1 }
 0x8ec   : > { %v8060_v49 = vadd.f32 %v2944_v28, %v7730_v38  ;;  %v3215_v38 = vpop.xlane.xlu1 %3214  ;;  %v8810_v28 = vld [vmem:[#allocation58_spill] sm:$0xff] }
 0x8ed   : > { %v2946_v23 = vpop.f32.mrf.mxu1 }
 0x8ee   : > { %8805 = vst [vmem:[#allocation52_spill] sm:$0xff] %v8060_v49  ;;  %v8065_v2 = vadd.f32 %v2946_v23, %v7737_v35  ;;  %v8813_v35 = vld [vmem:[#allocation59_spill] sm:$0xff] }
 0x8ef   : > { %v2948_v14 = vpop.f32.mrf.mxu1 }
 0x8f0   : > { %v8069_v12 = vadd.f32 %v2948_v14, %v8808_v13  ;;  %v2351_v14 = vadd.f32 %v7754_v47, %v1658_v52 }
 0x8f1   : > { %v2950_v9 = vpop.f32.mrf.mxu1 }
 0x8f2   : > { %v8071_v24 = vadd.f32 %v2950_v9, %v2347_v55 }
 0x8f3   : > { %v2954_v42 = vpop.f32.mrf.mxu1 }
 0x8f4   : > { %8809 = vst [vmem:[#allocation43_spill] sm:$0xff] %v8071_v24  ;;  %v8074_v49 = vadd.f32 %v2954_v42, %v8810_v28  ;;  %v3211_v28 = vpop.xlane.xlu1 %3210 }
 0x8f5   : > { %v2956_v63 = vpop.f32.mrf.mxu1 }
 0x8f6   : > { %8811 = vst [vmem:[#allocation57_spill] sm:$0xff] %v8074_v49  ;;  %v8079_v23 = vadd.f32 %v2956_v63, %v8813_v35  ;;  %v3250_v63 = vmul.f32 1.442695, %v3229_v11 }
 0x8f7   : > { %v3205_v62 = vpop.xlane.xlu0 %3204  ;;  %v2958_v13 = vpop.f32.mrf.mxu1 }
 0x8f8   : > { %8814 = vst [vmem:[#allocation56_spill] sm:$0xff] %v8079_v23  ;;  %v3230_v9 = vsub.f32 %v7946_v4, %v3205_v62  ;;  %v8085_v55 = vadd.f32 %v2958_v13, %v7751_v19 }
 0x8f9   : > { %v2960_v42 = vpop.f32.mrf.mxu1 }
 0x8fa   : > { %v3252_v49 = vmul.f32 1.442695, %v3230_v9  ;;  %v8087_v24 = vadd.f32 %v2960_v42, %v2351_v14  ;;  %v8097_v14 = vpop.permute.xlu1 %3690 }
 0x8fb   : > { %v3201_v35 = vpop.xlane.xlu0 %3200  ;;  %v2964_v23 = vpop.f32.mrf.mxu1 }
 0x8fc   : > { %6230 = vpow2.f32 %v3252_v49  ;;  %v3228_v37 = vsub.f32 %v7949_v59, %v3201_v35  ;;  %v8092_v47 = vadd.f32 %v2964_v23, %v7758_v51  ;;  %v3233_v35 = vsub.f32 %v7967_v15, %v3211_v28 }
 0x8fd   : > { %v2966_v4 = vpop.f32.mrf.mxu1  ;;  %6232 = vpow2.f32 %v3250_v63 }
 0x8fe   : > { %v3248_v52 = vmul.f32 1.442695, %v3228_v37  ;;  %v8095_v19 = vadd.f32 %v2966_v4, %v7762_v60  ;;  %v3235_v60 = vsub.f32 %v7964_v7, %v3215_v38  ;;  %v8111_v33 = vpop.permute.xlu1 %3686 }
 0x8ff   : > { %v3213_v62 = vpop.xlane.xlu0 %3212  ;;  %v2968_v13 = vpop.f32.mrf.mxu1 }
 0x900   : > { %6234 = vpow2.f32 %v3248_v52  ;;  %v3234_v58 = vsub.f32 %v7958_v27, %v3213_v62  ;;  %v8101_v6 = vadd.f32 %v2968_v13, %v7768_v30  ;;  %v3258_v52 = vmul.f32 1.442695, %v3233_v35  ;;  %v8815_v35 = vld [vmem:[#allocation34_spill] sm:$0xff] }
 0x901   : > { %v2970_v59 = vpop.f32.mrf.mxu1  ;;  %6236 = vpow2.f32 %v3254_v22 }
 0x902   : > { %v3260_v51 = vmul.f32 1.442695, %v3234_v58  ;;  %v8104_v49 = vadd.f32 %v2970_v59, %v7770_v57  ;;  %v3262_v57 = vmul.f32 1.442695, %v3235_v60 }
 0x903   : > { %v3209_v23 = vpop.xlane.xlu0 %3208  ;;  %v2974_v11 = vpop.f32.mrf.mxu1 }
 0x904   : > { %6238 = vpow2.f32 %v3260_v51  ;;  %v3232_v9 = vsub.f32 %v7961_v1, %v3209_v23  ;;  %v8109_v42 = vadd.f32 %v2974_v11, %v7776_v54 }
 0x905   : > { %v2976_v27 = vpop.f32.mrf.mxu1 }
 0x906   : > { %v3256_v30 = vmul.f32 1.442695, %v3232_v9  ;;  %v8114_v63 = vadd.f32 %v2976_v27, %v7780_v26 }
 0x907   : > { %v3221_v37 = vpop.xlane.xlu0 %3220  ;;  %v2978_v7 = vpop.f32.mrf.mxu1 }
 0x908   : > { %6240 = vpow2.f32 %v3256_v30  ;;  %v3238_v38 = vsub.f32 %v7978_v36, %v3221_v37  ;;  %v8119_v1 = vadd.f32 %v2978_v7, %v7784_v48  ;;  %v8822_v37 = vld [vmem:[#allocation63_spill] sm:$0xff] }
 0x909   : > { %v8121_v54 = vpop.eup %6230  ;;  %6242 = vpow2.f32 %v3262_v57 }
 0x90a   : > { %v3268_v4 = vmul.f32 1.442695, %v3238_v38  ;;  %3284 = vadd.xlane.f32.xlu0 %v8121_v54  ;;  %v8124_v62 = vpop.eup %6232 }
 0x90b   : > { %v3217_v26 = vpop.xlane.xlu0 %3216  ;;  %v3223_v22 = vpop.xlane.xlu1 %3222 }
 0x90c   : > { %6244 = vpow2.f32 %v3268_v4  ;;  %v3236_v15 = vsub.f32 %v7981_v34, %v3217_v26  ;;  %v3239_v28 = vsub.f32 %v7984_v46, %v3223_v22 }
 0x90d   : > { %v8128_v36 = vpop.eup %6234  ;;  %6246 = vpow2.f32 %v3258_v52 }
 0x90e   : > { %v3264_v48 = vmul.f32 1.442695, %v3236_v15  ;;  %3280 = vadd.xlane.f32.xlu0 %v8128_v36  ;;  %3282 = vadd.xlane.f32.xlu1 %v8124_v62  ;;  %v3270_v13 = vmul.f32 1.442695, %v3239_v28  ;;  %v8132_v51 = vpop.eup %6236 }
 0x90f   : > { %v3219_v58 = vpop.xlane.xlu1 %3218  ;;  %v3693_v59 = vpop.permute.xlu0 %3692 }
 0x910   : > { %6248 = vpow2.f32 %v3264_v48  ;;  %v3237_v60 = vsub.f32 %v7988_v53, %v3219_v58  ;;  %5788 = vmatprep.subr.msk.bf16.mxu1 %vm1720_vm0, %v3693_v59 }
 0x911   : > { %v8136_v34 = vpop.eup %6238  ;;  %6250 = vpow2.f32 %v3270_v13 }
 0x912   : > { %v3266_v46 = vmul.f32 1.442695, %v3237_v60  ;;  %3286 = vadd.xlane.f32.xlu0 %v8132_v51  ;;  %3292 = vadd.xlane.f32.xlu1 %v8136_v34 }
 0x914   : > { %6252 = vpow2.f32 %v3266_v46 }
 0x915   : > { %v8140_v23 = vpop.eup %6240 }
 0x916   : > { %3288 = vadd.xlane.f32.xlu1 %v8140_v23  ;;  %v8143_v11 = vpop.eup %6242 }
 0x919   : > { %v8145_v9 = vpop.eup %6244 }
 0x91a   : > { %3300 = vadd.xlane.f32.xlu0 %v8145_v9  ;;  %3294 = vadd.xlane.f32.xlu1 %v8143_v11  ;;  %v8149_v53 = vpop.eup %6246 }
 0x91d   : > { %v8151_v27 = vpop.eup %6248 }
 0x91e   : > { %3296 = vadd.xlane.f32.xlu0 %v8151_v27  ;;  %3290 = vadd.xlane.f32.xlu1 %v8149_v53  ;;  %v8155_v30 = vpop.eup %6250 }
 0x921   : > { %v8157_v57 = vpop.eup %6252 }
 0x922   : > { %3302 = vadd.xlane.f32.xlu0 %v8155_v30  ;;  %3298 = vadd.xlane.f32.xlu1 %v8157_v57 }
 0x933   : > { %3678 = vrot.lane.b32.xlu1 %v7833_v3, %s6739_s13  ;;  %v8816_v3 = vld [vmem:[#allocation36_spill] sm:$0xff] }
 0x937   : > { %3664 = vrot.lane.b32.xlu1 %v7227_v21, %s6739_s13  ;;  %v8817_v21 = vld [vmem:[#allocation35_spill] sm:$0xff] }
 0x938   : > { %3680 = vrot.lane.b32.xlu0 %v7839_v40, %s6739_s13  ;;  %v8818_v40 = vld [vmem:[#allocation60_spill] sm:$0xff] }
 0x93b   : > { %3668 = vrot.lane.b32.xlu1 %v7233_v31, %s6739_s13  ;;  %v8819_v31 = vld [vmem:[#allocation37_spill] sm:$0xff] }
 0x93c   : > { %3662 = vrot.lane.b32.xlu0 %v7225_v20, %s6739_s13  ;;  %v8820_v20 = vld [vmem:[#allocation61_spill] sm:$0xff] }
 0x93f   : > { %3672 = vrot.lane.b32.xlu1 %v7241_v41, %s6739_s13  ;;  %v8821_v41 = vld [vmem:[#allocation62_spill] sm:$0xff] }
 0x940   : > { %3666 = vrot.lane.b32.xlu0 %v8815_v35, %s6739_s13 }
 0x943   : > { %3676 = vrot.lane.b32.xlu1 %v8816_v3, %s6739_s13  ;;  %v3740_v3 = vsel %vm1720_vm0, %v3693_v59, 0 }
 0x944   : > { %3670 = vrot.lane.b32.xlu0 %v8817_v21, %s6739_s13  ;;  %v3737_v21 = vsel %vm1720_vm0, %v8097_v14, 0 }
 0x947   : > { %4003 = vrot.lane.b32.xlu1 %v8818_v40, %s6739_s13 }
 0x948   : > { %3674 = vrot.lane.b32.xlu0 %v8819_v31, %s6739_s13 }
 0x94c   : > { %4005 = vrot.lane.b32.xlu0 %v8820_v20, %s6739_s13 }
 0x950   : > { %4001 = vrot.lane.b32.xlu0 %v8821_v41, %s6739_s13 }
 0x954   : > { %3999 = vrot.lane.b32.xlu0 %v8822_v37, %s6739_s13 }
 0x956   : > { %v3277_v7 = vpop.xlane.xlu1 %3276 }
 0x95a   : > { %v3273_v38 = vpop.xlane.xlu1 %3272 }
 0x95e   : > { %v3279_v4 = vpop.xlane.xlu1 %3278 }
 0x95f   : > { %6254 = vrcp.f32 %v3279_v4 }
 0x960   : > { %6256 = vrcp.f32 %v3273_v38 }
 0x961   : > { %6258 = vrcp.f32 %v3277_v7 }
 0x962   : > { %v3275_v52 = vpop.xlane.xlu1 %3274 }
 0x963   : > { %6260 = vrcp.f32 %v3275_v52 }
 0x966   : > { %v3683_v59 = vpop.permute.xlu1 %3682 }
 0x96c   : > { %v6255_v26 = vpop.eup %6254 }
 0x96d   : > { %v6257_v22 = vpop.eup %6256  ;;  %v3323_v48 = vmul.f32 %v6255_v26, %v8027_v5  ;;  %v3689_v5 = vpop.permute.xlu0 %3688 }
 0x96e   : > { %v6259_v15 = vpop.eup %6258  ;;  %v3320_v13 = vmul.f32 %v6257_v22, %v8024_v44  ;;  %v3734_v44 = vsel %vm1720_vm0, %v3689_v5, 0 }
 0x96f   : > { %v3322_v60 = vmul.f32 %v6259_v15, %v8021_v0  ;;  %v3731_v0 = vsel %vm1720_vm0, %v8111_v33, 0 }
 0x970   : > { %v6261_v28 = vpop.eup %6260 }
 0x971   : > { %v3321_v58 = vmul.f32 %v6261_v28, %v8030_v18  ;;  %v3337_v35 = vpack.c.bf16 %v3323_v48, %v3322_v60  ;;  %v3685_v18 = vpop.permute.xlu0 %3684 }
 0x973   : > { %v3336_v46 = vpack.c.bf16 %v3321_v58, %v3320_v13 }
 0x975   : > { %5668 = vmatprep.mubr.bf16.mxu1 %v3336_v46 }
 0x976   : > { %5669 = vmatmul.mubr.bf16.vlgmr.msra.gmra.mxu1 %v3337_v35 }
 0x977   : > { %5685 = vmatpush3.bf16.xpose.msra.mxu1 %v3740_v3 }
 0x978   : > { %5789 = vmatprep.subr.msk.bf16.mxu1 %vm1720_vm0, %v8097_v14  ;;  %v3728_v14 = vsel %vm1720_vm0, %v3685_v18, 0 }
 0x97f   : > { %5687 = vmatpush3.bf16.xpose.msra.mxu1 %v3737_v21 }
 0x980   : > { %5790 = vmatprep.subr.msk.bf16.mxu1 %vm1720_vm0, %v3689_v5 }
 0x987   : > { %5689 = vmatpush3.bf16.xpose.msra.mxu1 %v3734_v44 }
 0x988   : > { %5791 = vmatprep.subr.msk.bf16.mxu1 %vm1720_vm0, %v8111_v33  ;;  %v3725_v33 = vsel %vm1720_vm0, %v3683_v59, 0 }
 0x98f   : > { %5691 = vmatpush3.bf16.xpose.msra.mxu1 %v3731_v0 }
 0x990   : > { %5792 = vmatprep.subr.msk.bf16.mxu1 %vm1720_vm0, %v3685_v18 }
 0x993   : > { %v3285_v40 = vpop.xlane.xlu0 %3284 }
 0x997   : > { %5693 = vmatpush3.bf16.xpose.msra.mxu1 %v3728_v14  ;;  %v3281_v31 = vpop.xlane.xlu0 %3280  ;;  %v3283_v20 = vpop.xlane.xlu1 %3282  ;;  %v6066_v14 = vld [vmem:[#allocation13 + $0x50] ss:$8 sps:$4 sm:$0xff]  }
 0x998   : > { %6262 = vrcp.f32 %v3281_v31  ;;  %5793 = vmatprep.subr.msk.bf16.mxu1 %vm1720_vm0, %v3683_v59  ;;  %v6068_v31 = vld [vmem:[#allocation13 + $0x54] ss:$8 sps:$4 sm:$0xff]  }
 0x999   : > { %6264 = vrcp.f32 %v3283_v20  ;;  %3529 = vmatprep.subr.bf16.mxu0 %v6068_v31 }
 0x99a   : > { %6266 = vrcp.f32 %v3285_v40  ;;  %3530 = vmatpush1.bf16.msra.mxu0 %v6066_v14 }
 0x99b   : > { %v3287_v41 = vpop.xlane.xlu0 %3286  ;;  %v3293_v37 = vpop.xlane.xlu1 %3292 }
 0x99c   : > { %6268 = vrcp.f32 %v3287_v41 }
 0x99f   : > { %5695 = vmatpush3.bf16.xpose.msra.mxu1 %v3725_v33  ;;  %v3289_v7 = vpop.xlane.xlu1 %3288 }
 0x9a3   : > { %v3301_v38 = vpop.xlane.xlu0 %3300  ;;  %v3295_v4 = vpop.xlane.xlu1 %3294 }
 0x9a4   : > { %6270 = vrcp.f32 %v3295_v4 }
 0x9a5   : > { %v6263_v52 = vpop.eup %6262  ;;  %6272 = vrcp.f32 %v3289_v7 }
 0x9a6   : > { %v6265_v26 = vpop.eup %6264  ;;  %v3324_v22 = vmul.f32 %v6263_v52, %v8128_v36  ;;  %6274 = vrcp.f32 %v3293_v37  ;;  %v6071_v52 = vld [vmem:[#allocation13 + $0x44] ss:$8 sps:$4 sm:$0xff]  }
 0x9a7   : > { %v6267_v15 = vpop.eup %6266  ;;  %v3297_v28 = vpop.xlane.xlu0 %3296  ;;  %v3325_v13 = vmul.f32 %v6265_v26, %v8124_v62  ;;  %3531 = vmatprep.subr.bf16.mxu0 %v6071_v52 }
 0x9a8   : > { %v3291_v48 = vpop.xlane.xlu1 %3290  ;;  %v3326_v46 = vmul.f32 %v6267_v15, %v8121_v54  ;;  %v6069_v15 = vld [vmem:[#allocation13 + $0x40] ss:$8 sps:$4 sm:$0xff]  }
 0x9a9   : > { %v6269_v58 = vpop.eup %6268  ;;  %6276 = vrcp.f32 %v3291_v48  ;;  %v3338_v60 = vpack.c.bf16 %v3325_v13, %v3324_v22  ;;  %3532 = vmatpush1.bf16.msra.mxu0 %v6069_v15 }
 0x9aa   : > { %v3327_v35 = vmul.f32 %v6269_v58, %v8132_v51  ;;  %6278 = vrcp.f32 %v3297_v28 }
 0x9ab   : > { %5672 = vmatprep.mubr.bf16.mxu1 %v3338_v60  ;;  %v3303_v3 = vpop.xlane.xlu0 %3302 }
 0x9ac   : > { %v3299_v21 = vpop.xlane.xlu1 %3298  ;;  %v3339_v5 = vpack.c.bf16 %v3327_v35, %v3326_v46  ;;  %v8233_v35 = vpop.f32.mrf.mxu1 }
 0x9ad   : > { %6280 = vrcp.f32 %v3299_v21  ;;  %8823 = vst [vmem:[#allocation58_spill] sm:$0xff] %v8233_v35  ;;  %v8837_v35 = vld [vmem:[#allocation49_spill] sm:$0xff] }
 0x9ae   : > { %6282 = vrcp.f32 %v3303_v3  ;;  %5673 = vmatmul.mubr.bf16.gmra.mxu1 %v3339_v5 }
 0x9af   : > { %v3681_v36 = vpop.permute.xlu0 %3680  ;;  %6284 = vrcp.f32 %v3301_v38 }
 0x9b0   : > { %v3722_v62 = vsel %vm1720_vm0, %v3681_v36, 0  ;;  %5794 = vmatprep.subr.msk.bf16.mxu1 %vm1720_vm0, %v3681_v36  ;;  %v3679_v44 = vpop.permute.xlu1 %3678 }
 0x9b1   : > { %5697 = vmatpush3.bf16.xpose.msra.mxu1 %v3722_v62  ;;  %v6271_v54 = vpop.eup %6270  ;;  %v3719_v59 = vsel %vm1720_vm0, %v3679_v44, 0 }
 0x9b2   : > { %5795 = vmatprep.subr.msk.bf16.mxu1 %vm1720_vm0, %v3679_v44  ;;  %v6273_v51 = vpop.eup %6272  ;;  %v3331_v40 = vmul.f32 %v6271_v54, %v8143_v11 }
 0x9b3   : > { %v6275_v0 = vpop.eup %6274  ;;  %v3328_v20 = vmul.f32 %v6273_v51, %v8140_v23  ;;  %v3663_v13 = vpop.permute.xlu0 %3662 }
 0x9b4   : > { %v3330_v33 = vmul.f32 %v6275_v0, %v8136_v34  ;;  %v3665_v58 = vpop.permute.xlu1 %3664 }
 0x9b6   : > { %v6277_v18 = vpop.eup %6276  ;;  %v3341_v4 = vpack.c.bf16 %v3331_v40, %v3330_v33 }
 0x9b7   : > { %v3329_v41 = vmul.f32 %v6277_v18, %v8149_v53  ;;  %v6279_v37 = vpop.eup %6278 }
 0x9b8   : > { %v3332_v11 = vmul.f32 %v6279_v37, %v8151_v27  ;;  %v3667_v27 = vpop.permute.xlu0 %3666 }
 0x9b9   : > { %v3340_v7 = vpack.c.bf16 %v3329_v41, %v3328_v20  ;;  %5699 = vmatpush3.bf16.xpose.msra.mxu1 %v3719_v59 }
 0x9ba   : > { %v6281_v38 = vpop.eup %6280 }
 0x9bb   : > { %v6283_v26 = vpop.eup %6282  ;;  %5676 = vmatprep.mubr.bf16.mxu1 %v3340_v7  ;;  %v3333_v22 = vmul.f32 %v6281_v38, %v8157_v57  ;;  %v3669_v57 = vpop.permute.xlu1 %3668 }
 0x9bc   : > { %5677 = vmatmul.mubr.bf16.gmra.mxu1 %v3341_v4  ;;  %v6285_v23 = vpop.eup %6284  ;;  %v3335_v34 = vmul.f32 %v6283_v26, %v8155_v30  ;;  %v3671_v60 = vpop.permute.xlu0 %3670 }
 0x9bd   : > { %v3342_v53 = vpack.c.bf16 %v3333_v22, %v3332_v11  ;;  %v3334_v28 = vmul.f32 %v6285_v23, %v8145_v9 }
 0x9bf   : > { %5680 = vmatprep.mubr.bf16.mxu1 %v3342_v53  ;;  %v3343_v48 = vpack.c.bf16 %v3335_v34, %v3334_v28  ;;  %v3673_v30 = vpop.permute.xlu1 %3672 }
 0x9c0   : > { %v3675_v46 = vpop.permute.xlu0 %3674 }
 0x9c3   : > { %v3677_v9 = vpop.permute.xlu1 %3676 }
 0x9c4   : > { %5681 = vmatmul.mubr.bf16.gmra.mxu1 %v3343_v48  ;;  %v4006_v44 = vpop.permute.xlu0 %4005 }
 0x9c5   : > { %5700 = vmatprep.mubr.msk.bf16.mxu1 %vm1720_vm0, %v3663_v13  ;;  %5716 = vmatprep.subr.bf16.mxu0 %v4006_v44 }
 0x9c7   : > { %v4004_v54 = vpop.permute.xlu1 %4003 }
 0x9c8   : > { %v4002_v0 = vpop.permute.xlu0 %4001 }
 0x9cc   : > { %5701 = vmatmul.mubr.msk.bf16.vlgmr.msra.gmra.mxu1 %vm1720_vm0, %v3665_v58  ;;  %v4000_v18 = vpop.permute.xlu0 %3999 }
 0x9cd   : > { %5704 = vmatprep.mubr.msk.bf16.mxu1 %vm1720_vm0, %v3667_v27 }
 0x9d4   : > { %5705 = vmatmul.mubr.msk.bf16.gmra.mxu1 %vm1720_vm0, %v3669_v57 }
 0x9d5   : > { %5708 = vmatprep.mubr.msk.bf16.mxu1 %vm1720_vm0, %v3671_v60 }
 0x9dc   : > { %5709 = vmatmul.mubr.msk.bf16.gmra.mxu1 %vm1720_vm0, %v3673_v30 }
 0x9dd   : > { %5712 = vmatprep.mubr.msk.bf16.mxu1 %vm1720_vm0, %v3675_v46 }
 0x9e4   : > { %5713 = vmatmul.mubr.msk.bf16.gmra.mxu1 %vm1720_vm0, %v3677_v9 }
 0x9e5   : > { %4196 = vmatprep.mubr.bf16.mxu1 %v8772_v10 }
 0xa36   : > { %v5670_v3 = vpop.f32.mrf.mxu1 }
 0xa38   : > { %v3402_v21 = vpop.f32.mrf.mxu1 }
 0xa3a   : > { %v5671_v5 = vpop.f32.mrf.mxu1 }
 0xa3b   : > { %v3466_v51 = vpack.c.bf16 %v5671_v5, %v5670_v3 }
 0xa3c   : > { %v3405_v36 = vpop.f32.mrf.mxu1 }
 0xa3d   : > { %v3465_v62 = vpack.c.bf16 %v3405_v36, %v3402_v21  ;;  %v6366_v36 = vld [vmem:[#allocation3 + $0x10] sm:$0xff]  }
 0xa3f   : > { %4978 = vmatmul.mubr.msk.bf16.vlgmr.msra.gmra.mxu0 %vm1720_vm0, %v3465_v62  ;;  %v6367_v62 = vld [vmem:[#allocation3 + $0x18] sm:$0xff]  }
 0xa40   : > { %3559 = vmatprep.mubr.bf16.mxu0 %v8772_v10  ;;  %5717 = vmatpush3.bf16.msra.mxu0 %v4006_v44 }
 0xa41   : > { %5718 = vmatprep.subr.bf16.mxu0 %v4004_v54 }
 0xa44   : > { %5719 = vmatpush3.bf16.msra.mxu0 %v4004_v54 }
 0xa45   : > { %5720 = vmatprep.subr.bf16.mxu0 %v4002_v0 }
 0xa47   : > { %4979 = vmatmul.mubr.msk.bf16.gmra.mxu0 %vm1720_vm0, %v3466_v51 }
 0xa48   : > { %3569 = vmatprep.mubr.bf16.mxu0 %v8772_v10  ;;  %5721 = vmatpush3.bf16.msra.mxu0 %v4002_v0  ;;  %v8824_v0 = vld [vmem:[#allocation38_spill] sm:$0xff] }
 0xa49   : > { %5722 = vmatprep.subr.bf16.mxu0 %v4000_v18 }
 0xa4c   : > { %5723 = vmatpush3.bf16.msra.mxu0 %v4000_v18  ;;  %v1608_v18 = vadd.f32 %v8824_v0, %v7495_v8 }
 0xa6e   : > { %v5674_v59 = vpop.f32.mrf.mxu1 }
 0xa70   : > { %v3418_v40 = vpop.f32.mrf.mxu1 }
 0xa72   : > { %v5675_v14 = vpop.f32.mrf.mxu1 }
 0xa73   : > { %v3468_v37 = vpack.c.bf16 %v5675_v14, %v5674_v59  ;;  %v8825_v14 = vld [vmem:[#allocation51_spill] sm:$0xff] }
 0xa74   : > { %v3421_v31 = vpop.f32.mrf.mxu1 }
 0xa75   : > { %v3467_v20 = vpack.c.bf16 %v3421_v31, %v3418_v40  ;;  %v2331_v31 = vadd.f32 %v8825_v14, %v1608_v18 }
 0xa77   : > { %4980 = vmatmul.mubr.msk.bf16.gmra.mxu0 %vm1720_vm0, %v3467_v20 }
 0xa78   : > { %3579 = vmatprep.mubr.bf16.mxu0 %v8772_v10 }
 0xa7c   : > { %v5678_v41 = vpop.f32.mrf.mxu1 }
 0xa7e   : > { %v3434_v33 = vpop.f32.mrf.mxu1 }
 0xa7f   : > { %4981 = vmatmul.mubr.msk.bf16.gmra.mxu0 %vm1720_vm0, %v3468_v37  ;;  %v2986_v37 = vadd.f32 %v8006_v16, %v2331_v31 }
 0xa80   : > { %v5679_v7 = vpop.f32.mrf.mxu1  ;;  %3589 = vmatprep.mubr.bf16.mxu0 %v8772_v10 }
 0xa81   : > { %v3470_v23 = vpack.c.bf16 %v5679_v7, %v5678_v41 }
 0xa82   : > { %v3437_v38 = vpop.f32.mrf.mxu1 }
 0xa83   : > { %v3469_v52 = vpack.c.bf16 %v3437_v38, %v3434_v33 }
 0xa84   : > { %v5682_v4 = vpop.f32.mrf.mxu1 }
 0xa86   : > { %v3450_v26 = vpop.f32.mrf.mxu1 }
 0xa87   : > { %4982 = vmatmul.mubr.msk.bf16.gmra.mxu0 %vm1720_vm0, %v3469_v52  ;;  %v8826_v52 = vld [vmem:[#allocation39_spill] sm:$0xff] }
 0xa88   : > { %v5683_v11 = vpop.f32.mrf.mxu1  ;;  %3599 = vmatprep.mubr.bf16.mxu0 %v8772_v10 }
 0xa89   : > { %v3472_v30 = vpack.c.bf16 %v5683_v11, %v5682_v4 }
 0xa8a   : > { %v3453_v22 = vpop.f32.mrf.mxu1 }
 0xa8b   : > { %v3471_v13 = vpack.c.bf16 %v3453_v22, %v3450_v26  ;;  %v8827_v22 = vld [vmem:[#allocation53_spill] sm:$0xff] }
 0xa8c   : > { %v8245_v15 = vpop.f32.mrf.mxu1 }
 0xa8d   : > { %3843 = vmax.xlane.f32.xlu0 %v8245_v15 }
 0xa8e   : > { %v8248_v53 = vpop.f32.mrf.mxu1 }
 0xa8f   : > { %4983 = vmatmul.mubr.msk.bf16.gmra.mxu0 %vm1720_vm0, %v3470_v23 }
 0xa90   : > { %v8251_v34 = vpop.f32.mrf.mxu1  ;;  %3609 = vmatprep.mubr.bf16.mxu0 %v8772_v10 }
 0xa91   : > { %3839 = vmax.xlane.f32.xlu0 %v8248_v53 }
 0xa92   : > { %v8255_v28 = vpop.f32.mrf.mxu1 }
 0xa93   : > { %3841 = vmax.xlane.f32.xlu1 %v8255_v28 }
 0xa94   : > { %v8258_v48 = vpop.f32.mrf.mxu1 }
 0xa95   : > { %3845 = vmax.xlane.f32.xlu0 %v8251_v34 }
 0xa96   : > { %v8261_v58 = vpop.f32.mrf.mxu1 }
 0xa97   : > { %4984 = vmatmul.mubr.msk.bf16.gmra.mxu0 %vm1720_vm0, %v3471_v13 }
 0xa98   : > { %v8264_v27 = vpop.f32.mrf.mxu1  ;;  %3619 = vmatprep.mubr.bf16.mxu0 %v8772_v10 }
 0xa99   : > { %3851 = vmax.xlane.f32.xlu0 %v8258_v48  ;;  %3853 = vmax.xlane.f32.xlu1 %v8264_v27 }
 0xa9a   : > { %v8269_v57 = vpop.f32.mrf.mxu1 }
 0xa9c   : > { %v8271_v60 = vpop.f32.mrf.mxu1 }
 0xa9d   : > { %3847 = vmax.xlane.f32.xlu0 %v8261_v58  ;;  %3849 = vmax.xlane.f32.xlu1 %v8269_v57 }
 0xa9e   : > { %v8275_v46 = vpop.f32.mrf.mxu1 }
 0xa9f   : > { %4985 = vmatmul.mubr.msk.bf16.gmra.mxu0 %vm1720_vm0, %v3472_v30 }
 0xaa0   : > { %v8278_v9 = vpop.f32.mrf.mxu1 }
 0xaa1   : > { %3859 = vmax.xlane.f32.xlu0 %v8271_v60  ;;  %3861 = vmax.xlane.f32.xlu1 %v8278_v9 }
 0xaa2   : > { %v8282_v3 = vpop.f32.mrf.mxu1 }
 0xaa4   : > { %v8286_v21 = vpop.f32.mrf.mxu1 }
 0xaa5   : > { %3855 = vmax.xlane.f32.xlu0 %v8275_v46  ;;  %3857 = vmax.xlane.f32.xlu1 %v8282_v3 }
 0xaa6   : > { %v8289_v5 = vpop.f32.mrf.mxu1 }
 0xaa8   : > { %v8294_v44 = vpop.f32.mrf.mxu1 }
 0xaa9   : > { %3867 = vmax.xlane.f32.xlu0 %v8286_v21 }
 0xaaa   : > { %v8297_v54 = vpop.f32.mrf.mxu1 }
 0xaad   : > { %3863 = vmax.xlane.f32.xlu0 %v8289_v5 }
 0xab6   : > { %3995 = vrot.lane.b32.xlu1 %v6366_v36, %s6739_s13 }
 0xac3   : > { %3997 = vrot.lane.b32.xlu0 %v6367_v62, %s6739_s13 }
 0xada   : > { %3869 = vmax.xlane.f32.xlu1 %v8294_v44 }
 0xade   : > { %3865 = vmax.xlane.f32.xlu1 %v8297_v54 }
 0xaff   : > { %v3551_v51 = vpop.f32.mrf.mxu0 }
 0xb00   : > { %v8303_v59 = vadd.f32 %v3551_v51, %v7998_v43  ;;  %v1618_v43 = vadd.f32 %v8826_v52, %v7495_v8 }
 0xb01   : > { %v3553_v40 = vpop.f32.mrf.mxu0 }
 0xb02   : > { %v8307_v20 = vadd.f32 %v3553_v40, %v8001_v56  ;;  %v2335_v56 = vadd.f32 %v8827_v22, %v1618_v43 }
 0xb03   : > { %v3555_v41 = vpop.f32.mrf.mxu0 }
 0xb04   : > { %v8311_v33 = vadd.f32 %v3555_v41, %v8004_v39  ;;  %v2990_v39 = vadd.f32 %v8032_v17, %v2335_v56 }
 0xb05   : > { %v3557_v7 = vpop.f32.mrf.mxu0 }
 0xb06   : > { %v8313_v38 = vadd.f32 %v3557_v7, %v2986_v37 }
 0xb07   : > { %v3561_v4 = vpop.f32.mrf.mxu0 }
 0xb08   : > { %v8318_v26 = vadd.f32 %v3561_v4, %v8009_v29 }
 0xb09   : > { %v3563_v11 = vpop.f32.mrf.mxu0 }
 0xb0a   : > { %v8322_v23 = vadd.f32 %v3563_v11, %v8012_v25 }
 0xb0b   : > { %v3565_v16 = vpop.f32.mrf.mxu0 }
 0xb0c   : > { %v8326_v13 = vadd.f32 %v3565_v16, %v8015_v45 }
 0xb0d   : > { %v3567_v30 = vpop.f32.mrf.mxu0 }
 0xb0e   : > { %v8328_v36 = vadd.f32 %v3567_v30, %v2990_v39 }
 0xb16   : > { %v3844_v62 = vpop.xlane.xlu0 %3843 }
 0xb17   : > { %v3873_v51 = vsub.f32 %v8245_v15, %v3844_v62 }
 0xb19   : > { %v3891_v29 = vmul.f32 1.442695, %v3873_v51 }
 0xb1a   : > { %v3840_v0 = vpop.xlane.xlu0 %3839 }
 0xb1b   : > { %6286 = vpow2.f32 %v3891_v29  ;;  %v3871_v18 = vsub.f32 %v8248_v53, %v3840_v0 }
 0xb1c   : > { %v3842_v40 = vpop.xlane.xlu1 %3841 }
 0xb1d   : > { %v3887_v25 = vmul.f32 1.442695, %v3871_v18  ;;  %v3872_v14 = vsub.f32 %v8255_v28, %v3842_v40 }
 0xb1e   : > { %v3846_v31 = vpop.xlane.xlu0 %3845 }
 0xb1f   : > { %6288 = vpow2.f32 %v3887_v25  ;;  %v3874_v45 = vsub.f32 %v8251_v34, %v3846_v31  ;;  %v3889_v41 = vmul.f32 1.442695, %v3872_v14  ;;  %v8828_v14 = vld [vmem:[#allocation40_spill] sm:$0xff] }
 0xb20   : > { %v1628_v31 = vadd.f32 %v8828_v14, %v7495_v8 }
 0xb21   : > { %v3893_v17 = vmul.f32 1.442695, %v3874_v45 }
 0xb22   : > { %v3852_v37 = vpop.xlane.xlu0 %3851  ;;  %v3854_v7 = vpop.xlane.xlu1 %3853 }
 0xb23   : > { %6290 = vpow2.f32 %v3893_v17  ;;  %v3877_v15 = vsub.f32 %v8258_v48, %v3852_v37  ;;  %v3878_v4 = vsub.f32 %v8264_v27, %v3854_v7 }
 0xb24   : > { %6292 = vpow2.f32 %v3889_v41  ;;  %v8829_v41 = vld [vmem:[#allocation54_spill] sm:$0xff] }
 0xb25   : > { %v3899_v52 = vmul.f32 1.442695, %v3877_v15  ;;  %v3901_v53 = vmul.f32 1.442695, %v3878_v4  ;;  %v2339_v37 = vadd.f32 %v8829_v41, %v1628_v31  ;;  %v8834_v31 = vld [vmem:[#allocation55_spill] sm:$0xff]  ;;  %v8835_v41 = vld [vmem:[#allocation48_spill] sm:$0xff] }
 0xb26   : > { %v3848_v43 = vpop.xlane.xlu0 %3847  ;;  %v3850_v11 = vpop.xlane.xlu1 %3849 }
 0xb27   : > { %6294 = vpow2.f32 %v3899_v52  ;;  %v3875_v28 = vsub.f32 %v8261_v58, %v3848_v43  ;;  %v3876_v22 = vsub.f32 %v8269_v57, %v3850_v11 }
 0xb28   : > { %v8338_v34 = vpop.eup %6286  ;;  %6296 = vpow2.f32 %v3901_v53  ;;  %v2994_v53 = vadd.f32 %v8044_v61, %v2339_v37 }
 0xb29   : > { %v3895_v56 = vmul.f32 1.442695, %v3875_v28  ;;  %3923 = vadd.xlane.f32.xlu1 %v8338_v34  ;;  %v3897_v48 = vmul.f32 1.442695, %v3876_v22 }
 0xb2a   : > { %v8341_v16 = vpop.xlane.xlu0 %3859  ;;  %v8350_v57 = vpop.xlane.xlu1 %3861 }
 0xb2b   : > { %6298 = vpow2.f32 %v3895_v56  ;;  %v8832_v56 = vld [vmem:[#allocation41_spill] sm:$0xff] }
 0xb2c   : > { %v8343_v27 = vpop.eup %6288  ;;  %6300 = vpow2.f32 %v3897_v48  ;;  %v1638_v48 = vadd.f32 %v8832_v56, %v7495_v8  ;;  %v8838_v8 = vld [vmem:[#allocation52_spill] sm:$0xff] }
 0xb2d   : > { %3919 = vadd.xlane.f32.xlu1 %v8343_v27 }
 0xb2e   : > { %v8346_v39 = vpop.xlane.xlu0 %3855  ;;  %v8361_v29 = vpop.xlane.xlu1 %3857 }
 0xb30   : > { %v8348_v58 = vpop.eup %6290 }
 0xb31   : > { %3925 = vadd.xlane.f32.xlu1 %v8348_v58  ;;  %v8355_v62 = vpop.eup %6292 }
 0xb32   : > { %v8353_v30 = vpop.xlane.xlu0 %3867  ;;  %v3996_v43 = vpop.permute.xlu1 %3995 }
 0xb34   : > { %v8357_v51 = vpop.eup %6294 }
 0xb35   : > { %3931 = vadd.xlane.f32.xlu0 %v8357_v51  ;;  %3921 = vadd.xlane.f32.xlu1 %v8355_v62  ;;  %v8365_v18 = vpop.eup %6296 }
 0xb36   : > { %v8363_v0 = vpop.xlane.xlu0 %3863 }
 0xb37   : > { %v3571_v40 = vpop.f32.mrf.mxu0 }
 0xb38   : > { %v8367_v25 = vpop.eup %6298  ;;  %v8372_v45 = vadd.f32 %v3571_v40, %v8036_v32  ;;  %v8830_v32 = vld [vmem:[#allocation46_spill] sm:$0xff]  ;;  %v8833_v40 = vld [vmem:[#allocation47_spill] sm:$0xff] }
 0xb39   : > { %3927 = vadd.xlane.f32.xlu1 %v8367_v25  ;;  %3933 = vadd.xlane.f32.xlu0 %v8365_v18  ;;  %v3573_v17 = vpop.f32.mrf.mxu0  ;;  %v8380_v52 = vpop.eup %6300 }
 0xb3a   : > { %v8378_v7 = vadd.f32 %v3573_v17, %v8039_v50  ;;  %v3998_v15 = vpop.permute.xlu0 %3997  ;;  %v2343_v17 = vadd.f32 %v8834_v31, %v1638_v48  ;;  %v6368_v48 = vld [vmem:[#allocation3] sm:$0xff]  }
 0xb3b   : > { %5724 = vmatprep.subr.bf16.mxu0 %v3998_v15  ;;  %v3575_v4 = vpop.f32.mrf.mxu0 }
 0xb3c   : > { %v8384_v11 = vadd.f32 %v3575_v4, %v8830_v32  ;;  %5725 = vmatpush3.bf16.msra.mxu0 %v3998_v15  ;;  %v8836_v4 = vld [vmem:[#allocation50_spill] sm:$0xff] }
 0xb3d   : > { %3929 = vadd.xlane.f32.xlu0 %v8380_v52  ;;  %5726 = vmatprep.subr.bf16.mxu0 %v3996_v43  ;;  %v3577_v28 = vpop.f32.mrf.mxu0  ;;  %v2998_v32 = vadd.f32 %v8836_v4, %v2343_v17  ;;  %v8839_v17 = vld [vmem:[#allocation43_spill] sm:$0xff]  ;;  %v8840_v4 = vld [vmem:[#allocation57_spill] sm:$0xff] }
 0xb3e   : > { %v8387_v22 = vadd.f32 %v3577_v28, %v2994_v53 }
 0xb3f   : > { %v3581_v50 = vpop.f32.mrf.mxu0 }
 0xb40   : > { %8831 = vst [vmem:[#allocation44_spill] sm:$0xff] %v8387_v22  ;;  %v8392_v14 = vadd.f32 %v3581_v50, %v8833_v40  ;;  %5727 = vmatpush3.bf16.msra.mxu0 %v3996_v43 }
 0xb41   : > { %v3583_v61 = vpop.f32.mrf.mxu0 }
 0xb42   : > { %v8396_v37 = vadd.f32 %v3583_v61, %v8835_v41 }
 0xb43   : > { %v3585_v15 = vpop.f32.mrf.mxu0 }
 0xb44   : > { %v8400_v53 = vadd.f32 %v3585_v15, %v8837_v35 }
 0xb45   : > { %v3587_v28 = vpop.f32.mrf.mxu0 }
 0xb46   : > { %v8402_v22 = vadd.f32 %v3587_v28, %v2998_v32  ;;  %v8841_v28 = vld [vmem:[#allocation56_spill] sm:$0xff] }
 0xb47   : > { %v3591_v56 = vpop.f32.mrf.mxu0 }
 0xb48   : > { %v8405_v50 = vadd.f32 %v3591_v56, %v8838_v8 }
 0xb49   : > { %v3593_v43 = vpop.f32.mrf.mxu0 }
 0xb4a   : > { %v8408_v40 = vadd.f32 %v3593_v43, %v8065_v2  ;;  %3991 = vrot.lane.b32.xlu1 %v6368_v48, %s6739_s13  ;;  %v6369_v2 = vld [vmem:[#allocation3 + $0x8] sm:$0xff]  }
 0xb4b   : > { %v3595_v61 = vpop.f32.mrf.mxu0 }
 0xb4c   : > { %v8412_v31 = vadd.f32 %v3595_v61, %v8069_v12 }
 0xb4d   : > { %v3597_v35 = vpop.f32.mrf.mxu0 }
 0xb4e   : > { %v8415_v41 = vadd.f32 %v3597_v35, %v8839_v17  ;;  %v3879_v17 = vsub.f32 %v8275_v46, %v8346_v39 }
 0xb4f   : > { %v3601_v15 = vpop.f32.mrf.mxu0 }
 0xb50   : > { %v8418_v32 = vadd.f32 %v3601_v15, %v8840_v4 }
 0xb51   : > { %v3603_v8 = vpop.f32.mrf.mxu0 }
 0xb52   : > { %v8421_v56 = vadd.f32 %v3603_v8, %v8841_v28  ;;  %v3882_v28 = vsub.f32 %v8278_v9, %v8350_v57 }
 0xb53   : > { %3993 = vrot.lane.b32.xlu0 %v6369_v2, %s6739_s13  ;;  %v3605_v43 = vpop.f32.mrf.mxu0  ;;  %v3903_v2 = vmul.f32 1.442695, %v3879_v17  ;;  %s6588_s13 = scalar_lea.vmem %s6587_s20, 4096 }
 0xb54   : > { %v8425_v48 = vadd.f32 %v3605_v43, %v8085_v55  ;;  %p6590_p3 = scmp.lt.s32.totalorder %s6588_s13, %s6582_s10 }
 0xb55   : > { %v3607_v12 = vpop.f32.mrf.mxu0  ;;  %6302 = vpow2.f32 %v3903_v2 }
 0xb56   : > { %v8428_v61 = vadd.f32 %v3607_v12, %v8087_v24  ;;  %v3880_v24 = vsub.f32 %v8282_v3, %v8361_v29  ;;  %p6591_p6 = por %p6590_p3, %p6589_p11 }
 0xb57   : > { %v3611_v35 = vpop.f32.mrf.mxu0 }
 0xb58   : > { %v8433_v15 = vadd.f32 %v3611_v35, %v8092_v47  ;;  %v3909_v47 = vmul.f32 1.442695, %v3882_v28  ;;  %v3905_v35 = vmul.f32 1.442695, %v3880_v24  ;;  %p6592_p0 = pnand %p6591_p6, %p6585_p13 }
 0xb59   : > { %v3613_v4 = vpop.f32.mrf.mxu0 }
 0xb5a   : > { %v8436_v8 = vadd.f32 %v3613_v4, %v8095_v19  ;;  %v3881_v19 = vsub.f32 %v8271_v60, %v8341_v16  ;;  %6304 = vpow2.f32 %v3909_v47  ;;  %v3885_v60 = vsub.f32 %v8286_v21, %v8353_v30 }
 0xb5b   : > { %v3615_v55 = vpop.f32.mrf.mxu0  ;;  %6306 = vpow2.f32 %v3905_v35 }
 0xb5c   : > { %v8443_v43 = vadd.f32 %v3615_v55, %v8101_v6  ;;  %v3883_v6 = vsub.f32 %v8289_v5, %v8363_v0  ;;  %v3907_v17 = vmul.f32 1.442695, %v3881_v19  ;;  %v3915_v2 = vmul.f32 1.442695, %v3885_v60 }
 0xb5d   : > { %v3617_v12 = vpop.f32.mrf.mxu0 }
 0xb5e   : > { %v8446_v46 = vadd.f32 %v3617_v12, %v8104_v49  ;;  %6308 = vpow2.f32 %v3907_v17 }
 0xb5f   : > { %v3621_v39 = vpop.f32.mrf.mxu0 }
 0xb60   : > { %v8451_v9 = vadd.f32 %v3621_v39, %v8109_v42  ;;  %v3911_v42 = vmul.f32 1.442695, %v3883_v6 }
 0xb61   : > { %v3623_v57 = vpop.f32.mrf.mxu0 }
 0xb62   : > { %v8454_v3 = vadd.f32 %v3623_v57, %v8114_v63  ;;  %6310 = vpow2.f32 %v3911_v42  ;;  %v8465_v0 = vpop.eup %6302 }
 0xb63   : > { %v3870_v49 = vpop.xlane.xlu1 %3869  ;;  %v3625_v29 = vpop.f32.mrf.mxu0 }
 0xb64   : > { %v8459_v4 = vadd.f32 %v3625_v29, %v8119_v1  ;;  %v3886_v63 = vsub.f32 %v8294_v44, %v3870_v49 }
 0xb66   : > { %v3917_v5 = vmul.f32 1.442695, %v3886_v63 }
 0xb67   : > { %v3866_v16 = vpop.xlane.xlu1 %3865  ;;  %v8468_v1 = vpop.eup %6304 }
 0xb68   : > { %v3884_v28 = vsub.f32 %v8297_v54, %v3866_v16  ;;  %v8470_v21 = vpop.eup %6306 }
 0xb6a   : > { %v3913_v55 = vmul.f32 1.442695, %v3884_v28 }
 0xb6b   : > { %v8474_v44 = vpop.eup %6308 }
 0xb6c   : > { %6312 = vpow2.f32 %v3913_v55 }
 0xb6d   : > { %6314 = vpow2.f32 %v3915_v2 }
 0xb6e   : > { %3935 = vadd.xlane.f32.xlu1 %v8465_v0  ;;  %6316 = vpow2.f32 %v3917_v5 }
 0xb6f   : > { %v8477_v54 = vpop.eup %6310 }
 0xb72   : > { %3941 = vadd.xlane.f32.xlu1 %v8468_v1  ;;  %3937 = vadd.xlane.f32.xlu0 %v8470_v21 }
 0xb76   : > { %3939 = vadd.xlane.f32.xlu0 %v8474_v44 }
 0xb79   : > { %v8479_v30 = vpop.eup %6312 }
 0xb7a   : > { %3943 = vadd.xlane.f32.xlu0 %v8477_v54  ;;  %3945 = vadd.xlane.f32.xlu1 %v8479_v30  ;;  %v8483_v24 = vpop.eup %6314 }
 0xb7b   : > { %v8485_v12 = vpop.eup %6316 }
 0xb7e   : > { %3947 = vadd.xlane.f32.xlu0 %v8483_v24  ;;  %3949 = vadd.xlane.f32.xlu1 %v8485_v12 }
 0xbb2   : > { %v3924_v47 = vpop.xlane.xlu1 %3923 }
 0xbb6   : > { %v3920_v39 = vpop.xlane.xlu1 %3919 }
 0xbba   : > { %v3926_v19 = vpop.xlane.xlu1 %3925 }
 0xbbb   : > { %6318 = vrcp.f32 %v3926_v19 }
 0xbbc   : > { %6320 = vrcp.f32 %v3920_v39 }
 0xbbd   : > { %6322 = vrcp.f32 %v3924_v47 }
 0xbbe   : > { %v3932_v35 = vpop.xlane.xlu0 %3931  ;;  %v3922_v57 = vpop.xlane.xlu1 %3921 }
 0xbbf   : > { %6324 = vrcp.f32 %v3922_v57 }
 0xbc2   : > { %v3934_v6 = vpop.xlane.xlu0 %3933  ;;  %v3928_v49 = vpop.xlane.xlu1 %3927 }
 0xbc3   : > { %6326 = vrcp.f32 %v3934_v6 }
 0xbc4   : > { %6328 = vrcp.f32 %v3928_v49 }
 0xbc5   : > { %6330 = vrcp.f32 %v3932_v35 }
 0xbc6   : > { %v3930_v29 = vpop.xlane.xlu0 %3929  ;;  %v3992_v63 = vpop.permute.xlu1 %3991 }
 0xbc7   : > { %6332 = vrcp.f32 %v3930_v29 }
 0xbc8   : > { %v6319_v17 = vpop.eup %6318 }
 0xbc9   : > { %v6321_v42 = vpop.eup %6320  ;;  %v3970_v55 = vmul.f32 %v6319_v17, %v8348_v58 }
 0xbca   : > { %v3994_v60 = vpop.permute.xlu0 %3993  ;;  %v6323_v16 = vpop.eup %6322  ;;  %v3967_v2 = vmul.f32 %v6321_v42, %v8343_v27 }
 0xbcb   : > { %5728 = vmatprep.subr.bf16.mxu0 %v3994_v60  ;;  %v3969_v47 = vmul.f32 %v6323_v16, %v8338_v34 }
 0xbcc   : > { %5729 = vmatpush3.bf16.msra.mxu0 %v3994_v60  ;;  %v6325_v28 = vpop.eup %6324 }
 0xbcd   : > { %5730 = vmatprep.subr.bf16.mxu0 %v3992_v63  ;;  %v3968_v5 = vmul.f32 %v6325_v28, %v8355_v62  ;;  %v3984_v35 = vpack.c.bf16 %v3970_v55, %v3969_v47 }
 0xbcf   : > { %v3983_v39 = vpack.c.bf16 %v3968_v5, %v3967_v2 }
 0xbd0   : > { %5731 = vmatpush3.bf16.msra.mxu0 %v3992_v63  ;;  %v6327_v19 = vpop.eup %6326 }
 0xbd1   : > { %v6329_v57 = vpop.eup %6328  ;;  %5732 = vmatprep.mubr.bf16.mxu0 %v3983_v39  ;;  %v3974_v17 = vmul.f32 %v6327_v19, %v8365_v18 }
 0xbd2   : > { %v6331_v6 = vpop.eup %6330  ;;  %v3971_v29 = vmul.f32 %v6329_v57, %v8367_v25 }
 0xbd3   : > { %5733 = vmatmul.mubr.bf16.vlgmr.msra.gmra.mxu0 %v3984_v35  ;;  %v3973_v62 = vmul.f32 %v6331_v6, %v8357_v51 }
 0xbd4   : > { %v6333_v49 = vpop.eup %6332 }
 0xbd5   : > { %v3972_v58 = vmul.f32 %v6333_v49, %v8380_v52  ;;  %v3986_v34 = vpack.c.bf16 %v3974_v17, %v3973_v62 }
 0xbd7   : > { %v3985_v27 = vpack.c.bf16 %v3972_v58, %v3971_v29 }
 0xbd9   : > { %5736 = vmatprep.mubr.bf16.mxu0 %v3985_v27  ;;  %v6072_v27 = vld [vmem:[#allocation13 + $0x70] ss:$8 sps:$4 sm:$0xff]  }
 0xbdb   : > { %5737 = vmatmul.mubr.bf16.gmra.mxu0 %v3986_v34 }
 0xbf7   : > { %v3936_v60 = vpop.xlane.xlu1 %3935 }
 0xbf8   : > { %6334 = vrcp.f32 %v3936_v60 }
 0xbfb   : > { %v3938_v42 = vpop.xlane.xlu0 %3937  ;;  %v3942_v16 = vpop.xlane.xlu1 %3941 }
 0xbfc   : > { %6336 = vrcp.f32 %v3938_v42  ;;  %v6075_v42 = vld [vmem:[#allocation13 + $0x60] ss:$8 sps:$4 sm:$0xff]  }
 0xbfd   : > { %6338 = vrcp.f32 %v3942_v16 }
 0xbff   : > { %v3940_v63 = vpop.xlane.xlu0 %3939 }
 0xc00   : > { %6340 = vrcp.f32 %v3940_v63  ;;  %v6080_v63 = vld [vmem:[#allocation16 + $0x70] sm:$0xff]  }
 0xc03   : > { %v3944_v28 = vpop.xlane.xlu0 %3943  ;;  %v3946_v25 = vpop.xlane.xlu1 %3945 }
 0xc04   : > { %6342 = vrcp.f32 %v3944_v28  ;;  %v6081_v28 = vld [vmem:[#allocation16 + $0x30] sm:$0xff]  }
 0xc05   : > { %6344 = vrcp.f32 %v3946_v25  ;;  %v6335_v52 = vpop.eup %6334  ;;  %v6082_v25 = vld [vmem:[#allocation16 + $0x68] sm:$0xff]  }
 0xc06   : > { %v3975_v2 = vmul.f32 %v6335_v52, %v8465_v0  ;;  %v6074_v0 = vld [vmem:[#allocation13 + $0x74] ss:$8 sps:$4 sm:$0xff]   ;;  %v6084_v52 = vld [vmem:[#allocation16 + $0x60] sm:$0xff]  }
 0xc07   : > { %v3948_v18 = vpop.xlane.xlu0 %3947  ;;  %v3950_v55 = vpop.xlane.xlu1 %3949  ;;  %4176 = vmatprep.subr.bf16.mxu1 %v6074_v0 }
 0xc08   : > { %6346 = vrcp.f32 %v3948_v18  ;;  %4177 = vmatpush1.bf16.msra.mxu1 %v6072_v27  ;;  %v6086_v18 = vld [vmem:[#allocation16 + $0x58] sm:$0xff]  }
 0xc09   : > { %v6337_v51 = vpop.eup %6336  ;;  %6348 = vrcp.f32 %v3950_v55  ;;  %v6087_v55 = vld [vmem:[#allocation16 + $0x18] sm:$0xff]  }
 0xc0a   : > { %v3976_v5 = vmul.f32 %v6337_v51, %v8470_v21  ;;  %v6339_v47 = vpop.eup %6338  ;;  %v8505_v51 = vpop.f32.mrf.mxu0 }
 0xc0b   : > { %v3978_v57 = vmul.f32 %v6339_v47, %v8468_v1 }
 0xc0c   : > { %v3987_v39 = vpack.c.bf16 %v3976_v5, %v3975_v2 }
 0xc0d   : > { %v6341_v19 = vpop.eup %6340 }
 0xc0e   : > { %5740 = vmatprep.mubr.bf16.mxu0 %v3987_v39  ;;  %v3977_v35 = vmul.f32 %v6341_v19, %v8474_v44  ;;  %v6077_v44 = vld [vmem:[#allocation13 + $0x64] ss:$8 sps:$4 sm:$0xff]  }
 0xc0f   : > { %4178 = vmatprep.subr.bf16.mxu1 %v6077_v44 }
 0xc10   : > { %v3988_v6 = vpack.c.bf16 %v3978_v57, %v3977_v35  ;;  %4179 = vmatpush1.bf16.msra.mxu1 %v6075_v42  ;;  %v6089_v42 = vld [vmem:[#allocation16 + $0x10] sm:$0xff]  }
 0xc11   : > { %v6343_v49 = vpop.eup %6342 }
 0xc12   : > { %v6345_v29 = vpop.eup %6344  ;;  %5741 = vmatmul.mubr.bf16.gmra.mxu0 %v3988_v6  ;;  %v3979_v58 = vmul.f32 %v6343_v49, %v8477_v54  ;;  %v6078_v54 = vld [vmem:[#allocation16 + $0x78] sm:$0xff]  }
 0xc13   : > { %v3980_v17 = vmul.f32 %v6345_v29, %v8479_v30  ;;  %v6079_v30 = vld [vmem:[#allocation16 + $0x38] sm:$0xff]   ;;  %5332 = vmatprep.subr.bf16.mxu0 %v6078_v54  ;;  %5748 = vmatprep.subr.bf16.mxu1 %v6078_v54  ;;  %v6090_v54 = vld [vmem:[#allocation16 + $0x48] sm:$0xff]  }
 0xc14   : > { %5333 = vmatpush3.bf16.msra.mxu0 %v6079_v30 }
 0xc15   : > { %v6347_v62 = vpop.eup %6346  ;;  %v3989_v21 = vpack.c.bf16 %v3980_v17, %v3979_v58  ;;  %5334 = vmatprep.subr.bf16.mxu0 %v6080_v63 }
 0xc16   : > { %v6349_v34 = vpop.eup %6348  ;;  %v3981_v60 = vmul.f32 %v6347_v62, %v8483_v24  ;;  %v6083_v24 = vld [vmem:[#allocation16 + $0x28] sm:$0xff]  }
 0xc17   : > { %5744 = vmatprep.mubr.bf16.mxu0 %v3989_v21  ;;  %v3982_v1 = vmul.f32 %v6349_v34, %v8485_v12  ;;  %v6085_v12 = vld [vmem:[#allocation16 + $0x20] sm:$0xff]  }
 0xc18   : > { %5335 = vmatpush3.bf16.msra.mxu0 %v6081_v28 }
 0xc19   : > { %v3990_v16 = vpack.c.bf16 %v3982_v1, %v3981_v60  ;;  %5336 = vmatprep.subr.bf16.mxu0 %v6082_v25  ;;  %v6088_v1 = vld [vmem:[#allocation16 + $0x50] sm:$0xff]  }
 0xc1b   : > { %5745 = vmatmul.mubr.bf16.gmra.mxu0 %v3990_v16 }
 0xc1c   : > { %5337 = vmatpush3.bf16.msra.mxu0 %v6083_v24 }
 0xc1d   : > { %5338 = vmatprep.subr.bf16.mxu0 %v6084_v52 }
 0xc20   : > { %5339 = vmatpush3.bf16.msra.mxu0 %v6085_v12 }
 0xc21   : > { %5340 = vmatprep.subr.bf16.mxu0 %v6086_v18 }
 0xc24   : > { %5341 = vmatpush3.bf16.msra.mxu0 %v6087_v55 }
 0xc25   : > { %5342 = vmatprep.subr.bf16.mxu0 %v6088_v1 }
 0xc28   : > { %5343 = vmatpush3.bf16.msra.mxu0 %v6089_v42 }
 0xc29   : > { %5344 = vmatprep.subr.bf16.mxu0 %v6090_v54 }
 0xc93   : > { %v5734_v2 = vpop.f32.mrf.mxu0 }
 0xc95   : > { %v4049_v5 = vpop.f32.mrf.mxu0 }
 0xc97   : > { %v5735_v47 = vpop.f32.mrf.mxu0 }
 0xc98   : > { %v4113_v6 = vpack.c.bf16 %v5735_v47, %v5734_v2 }
 0xc99   : > { %v4052_v39 = vpop.f32.mrf.mxu0 }
 0xc9a   : > { %v4112_v19 = vpack.c.bf16 %v4052_v39, %v4049_v5 }
 0xc9b   : > { %v5738_v35 = vpop.f32.mrf.mxu0 }
 0xc9c   : > { %4998 = vmatmul.mubr.msk.bf16.vlgmr.msra.gmra.mxu1 %vm1720_vm0, %v4112_v19 }
 0xc9d   : > { %4206 = vmatprep.mubr.bf16.mxu1 %v8772_v10  ;;  %5756 = vmatpush3.bf16.msra.mxu1 %v6079_v30  ;;  %v4065_v57 = vpop.f32.mrf.mxu0 }
 0xc9e   : > { %5749 = vmatprep.subr.bf16.mxu1 %v6080_v63  ;;  %v6091_v63 = vld [vmem:[#allocation16 + $0x8] sm:$0xff]  }
 0xc9f   : > { %v5739_v49 = vpop.f32.mrf.mxu0  ;;  %5345 = vmatpush3.bf16.msra.mxu0 %v6091_v63 }
 0xca0   : > { %v4115_v17 = vpack.c.bf16 %v5739_v49, %v5738_v35 }
 0xca1   : > { %5757 = vmatpush3.bf16.msra.mxu1 %v6081_v28  ;;  %v4068_v29 = vpop.f32.mrf.mxu0  ;;  %v6092_v28 = vld [vmem:[#allocation16 + $0x40] sm:$0xff]  }
 0xca2   : > { %5750 = vmatprep.subr.bf16.mxu1 %v6082_v25  ;;  %v4114_v58 = vpack.c.bf16 %v4068_v29, %v4065_v57  ;;  %5346 = vmatprep.subr.bf16.mxu0 %v6092_v28 }
 0xca4   : > { %4999 = vmatmul.mubr.msk.bf16.gmra.mxu1 %vm1720_vm0, %v4113_v6 }
 0xca5   : > { %4216 = vmatprep.mubr.bf16.mxu1 %v8772_v10  ;;  %5758 = vmatpush3.bf16.msra.mxu1 %v6083_v24  ;;  %v6093_v24 = vld [vmem:[#allocation16] sm:$0xff]  }
 0xca6   : > { %5751 = vmatprep.subr.bf16.mxu1 %v6084_v52  ;;  %5347 = vmatpush3.bf16.msra.mxu0 %v6093_v24 }
 0xca9   : > { %5759 = vmatpush3.bf16.msra.mxu1 %v6085_v12 }
 0xcaa   : > { %5752 = vmatprep.subr.bf16.mxu1 %v6086_v18 }
 0xcac   : > { %5000 = vmatmul.mubr.msk.bf16.gmra.mxu1 %vm1720_vm0, %v4114_v58 }
 0xcad   : > { %4226 = vmatprep.mubr.bf16.mxu1 %v8772_v10  ;;  %5760 = vmatpush3.bf16.msra.mxu1 %v6087_v55 }
 0xcae   : > { %5753 = vmatprep.subr.bf16.mxu1 %v6088_v1 }
 0xcb1   : > { %5761 = vmatpush3.bf16.msra.mxu1 %v6089_v42 }
 0xcb2   : > { %5754 = vmatprep.subr.bf16.mxu1 %v6090_v54 }
 0xcb4   : > { %5001 = vmatmul.mubr.msk.bf16.gmra.mxu1 %vm1720_vm0, %v4115_v17 }
 0xcb5   : > { %4236 = vmatprep.mubr.bf16.mxu1 %v8772_v10  ;;  %5762 = vmatpush3.bf16.msra.mxu1 %v6091_v63 }
 0xcb6   : > { %5755 = vmatprep.subr.bf16.mxu1 %v6092_v28 }
 0xcb9   : > { %5763 = vmatpush3.bf16.msra.mxu1 %v6093_v24  ;;  %v8842_v24 = vld [vmem:[#allocation44_spill] sm:$0xff] }
 0xcd2   : > { %v5742_v27 = vpop.f32.mrf.mxu0 }
 0xcd4   : > { %v4081_v0 = vpop.f32.mrf.mxu0 }
 0xcd6   : > { %v5743_v62 = vpop.f32.mrf.mxu0 }
 0xcd7   : > { %v4117_v16 = vpack.c.bf16 %v5743_v62, %v5742_v27 }
 0xcd8   : > { %v4084_v21 = vpop.f32.mrf.mxu0 }
 0xcd9   : > { %v4116_v34 = vpack.c.bf16 %v4084_v21, %v4081_v0 }
 0xcdb   : > { %v5746_v60 = vpop.f32.mrf.mxu0  ;;  %5002 = vmatmul.mubr.msk.bf16.gmra.mxu1 %vm1720_vm0, %v4116_v34 }
 0xcdc   : > { %4246 = vmatprep.mubr.bf16.mxu1 %v8772_v10 }
 0xcdd   : > { %v4097_v44 = vpop.f32.mrf.mxu0 }
 0xcdf   : > { %v5747_v30 = vpop.f32.mrf.mxu0 }
 0xce0   : > { %v4119_v12 = vpack.c.bf16 %v5747_v30, %v5746_v60 }
 0xce1   : > { %v4100_v25 = vpop.f32.mrf.mxu0 }
 0xce2   : > { %v4118_v52 = vpack.c.bf16 %v4100_v25, %v4097_v44 }
 0xce3   : > { %5003 = vmatmul.mubr.msk.bf16.gmra.mxu1 %vm1720_vm0, %v4117_v16 }
 0xce4   : > { %4256 = vmatprep.mubr.bf16.mxu1 %v8772_v10 }
 0xceb   : > { %5004 = vmatmul.mubr.msk.bf16.gmra.mxu1 %vm1720_vm0, %v4118_v52 }
 0xcec   : > { %4266 = vmatprep.mubr.bf16.mxu1 %v8772_v10 }
 0xcf3   : > { %5005 = vmatmul.mubr.msk.bf16.gmra.mxu1 %vm1720_vm0, %v4119_v12 }
 0xd5c   : > { %v4198_v18 = vpop.f32.mrf.mxu1 }
 0xd5d   : > { %v4277_v2 = vadd.f32 %v4198_v18, %v8303_v59 }
 0xd5e   : > { %v4200_v55 = vpop.f32.mrf.mxu1 }
 0xd5f   : > { %v4278_v47 = vadd.f32 %v4200_v55, %v8307_v20  ;;  %v4309_v35 = vmax.f32 %v4277_v2, 0.0 }
 0xd60   : > { %v4202_v5 = vpop.f32.mrf.mxu1 }
 0xd61   : > { %v4279_v39 = vadd.f32 %v4202_v5, %v8311_v33  ;;  %v4310_v29 = vmax.f32 %v4278_v47, 0.0 }
 0xd62   : > { %v4204_v19 = vpop.f32.mrf.mxu1 }
 0xd63   : > { %v4311_v57 = vmax.f32 %v4279_v39, 0.0  ;;  %v4280_v6 = vadd.f32 %v4204_v19, %v8313_v38 }
 0xd64   : > { %v4208_v49 = vpop.f32.mrf.mxu1 }
 0xd65   : > { %v4341_v10 = vpack.c.bf16 %v4311_v57, %v4309_v35  ;;  %v4312_v58 = vmax.f32 %v4280_v6, 0.0  ;;  %v4281_v0 = vadd.f32 %v4208_v49, %v8318_v26 }
 0xd66   : > { %v4210_v17 = vpop.f32.mrf.mxu1 }
 0xd67   : > { %v4342_v27 = vpack.c.bf16 %v4312_v58, %v4310_v29  ;;  %v4282_v59 = vadd.f32 %v4210_v17, %v8322_v23  ;;  %v4313_v21 = vmax.f32 %v4281_v0, 0.0 }
 0xd68   : > { %v4212_v62 = vpop.f32.mrf.mxu1 }
 0xd69   : > { %v4283_v20 = vadd.f32 %v4212_v62, %v8326_v13  ;;  %4524 = vmatprep.mubr.bf16.mxu0 %v4342_v27  ;;  %v4314_v1 = vmax.f32 %v4282_v59, 0.0 }
 0xd6a   : > { %v4214_v33 = vpop.f32.mrf.mxu1  ;;  %4525 = vmatmul.mubr.bf16.vlgmr.msra.gmra.mxu0 %v4341_v10 }
 0xd6b   : > { %v4315_v34 = vmax.f32 %v4283_v20, 0.0  ;;  %v4284_v38 = vadd.f32 %v4214_v33, %v8328_v36 }
 0xd6c   : > { %v4218_v60 = vpop.f32.mrf.mxu1 }
 0xd6d   : > { %v4343_v44 = vpack.c.bf16 %v4315_v34, %v4313_v21  ;;  %v4316_v42 = vmax.f32 %v4284_v38, 0.0  ;;  %v4285_v26 = vadd.f32 %v4218_v60, %v8372_v45 }
 0xd6e   : > { %v4220_v16 = vpop.f32.mrf.mxu1 }
 0xd6f   : > { %v4344_v54 = vpack.c.bf16 %v4316_v42, %v4314_v1  ;;  %v4286_v23 = vadd.f32 %v4220_v16, %v8378_v7  ;;  %v4317_v28 = vmax.f32 %v4285_v26, 0.0 }
 0xd70   : > { %v4222_v30 = vpop.f32.mrf.mxu1 }
 0xd71   : > { %v4287_v13 = vadd.f32 %v4222_v30, %v8384_v11  ;;  %4532 = vmatprep.mubr.bf16.mxu0 %v4344_v54  ;;  %v4318_v12 = vmax.f32 %v4286_v23, 0.0 }
 0xd72   : > { %v4224_v63 = vpop.f32.mrf.mxu1  ;;  %4533 = vmatmul.mubr.bf16.gmra.mxu0 %v4343_v44 }
 0xd73   : > { %v4319_v25 = vmax.f32 %v4287_v13, 0.0  ;;  %v4288_v36 = vadd.f32 %v4224_v63, %v8842_v24  ;;  %v8843_v24 = vld [vmem:[#allocation42_spill] sm:$0xff] }
 0xd74   : > { %v4228_v52 = vpop.f32.mrf.mxu1 }
 0xd75   : > { %v4345_v18 = vpack.c.bf16 %v4319_v25, %v4317_v28  ;;  %v4320_v55 = vmax.f32 %v4288_v36, 0.0  ;;  %v4289_v45 = vadd.f32 %v4228_v52, %v8392_v14  ;;  %v8844_v36 = vld [vmem:[#allocation45_spill] sm:$0xff] }
 0xd76   : > { %v4230_v2 = vpop.f32.mrf.mxu1  ;;  %v1678_v52 = vadd.f32 %v8844_v36, %v8843_v24 }
 0xd77   : > { %v4346_v5 = vpack.c.bf16 %v4320_v55, %v4318_v12  ;;  %v4290_v7 = vadd.f32 %v4230_v2, %v8396_v37  ;;  %v4321_v19 = vmax.f32 %v4289_v45, 0.0  ;;  %v8845_v2 = vld [vmem:[#allocation64_spill] sm:$0xff] }
 0xd78   : > { %v4232_v47 = vpop.f32.mrf.mxu1 }
 0xd79   : > { %v4291_v11 = vadd.f32 %v4232_v47, %v8400_v53  ;;  %4540 = vmatprep.mubr.bf16.mxu0 %v4346_v5  ;;  %v4322_v6 = vmax.f32 %v4290_v7, 0.0  ;;  %v2359_v5 = vadd.f32 %v8845_v2, %v1678_v52 }
 0xd7a   : > { %v4234_v39 = vpop.f32.mrf.mxu1  ;;  %4541 = vmatmul.mubr.bf16.gmra.mxu0 %v4345_v18 }
 0xd7b   : > { %v4323_v35 = vmax.f32 %v4291_v11, 0.0  ;;  %v4292_v57 = vadd.f32 %v4234_v39, %v8402_v22 }
 0xd7d   : > { %v4347_v49 = vpack.c.bf16 %v4323_v35, %v4321_v19  ;;  %v4324_v29 = vmax.f32 %v4292_v57, 0.0 }
 0xd7f   : > { %v4348_v10 = vpack.c.bf16 %v4324_v29, %v4322_v6 }
 0xd81   : > { %4548 = vmatprep.mubr.bf16.mxu0 %v4348_v10 }
 0xd82   : > { %4549 = vmatmul.mubr.bf16.gmra.mxu0 %v4347_v49 }
 0xd9b   : > { %v4238_v58 = vpop.f32.mrf.mxu1 }
 0xd9c   : > { %v4293_v17 = vadd.f32 %v4238_v58, %v8405_v50 }
 0xd9d   : > { %v4240_v14 = vpop.f32.mrf.mxu1 }
 0xd9e   : > { %v4294_v53 = vadd.f32 %v4240_v14, %v8408_v40  ;;  %v4325_v62 = vmax.f32 %v4293_v17, 0.0 }
 0xd9f   : > { %v4242_v37 = vpop.f32.mrf.mxu1 }
 0xda0   : > { %v4295_v27 = vadd.f32 %v4242_v37, %v8412_v31  ;;  %v4326_v33 = vmax.f32 %v4294_v53, 0.0 }
 0xda1   : > { %v4244_v0 = vpop.f32.mrf.mxu1 }
 0xda2   : > { %v4327_v59 = vmax.f32 %v4295_v27, 0.0  ;;  %v4296_v22 = vadd.f32 %v4244_v0, %v8415_v41 }
 0xda3   : > { %v4248_v20 = vpop.f32.mrf.mxu1 }
 0xda4   : > { %v4349_v21 = vpack.c.bf16 %v4327_v59, %v4325_v62  ;;  %v4328_v34 = vmax.f32 %v4296_v22, 0.0  ;;  %v4297_v1 = vadd.f32 %v4248_v20, %v8418_v32 }
 0xda5   : > { %v4250_v38 = vpop.f32.mrf.mxu1 }
 0xda6   : > { %v4350_v60 = vpack.c.bf16 %v4328_v34, %v4326_v33  ;;  %v4298_v50 = vadd.f32 %v4250_v38, %v8421_v56  ;;  %v4329_v42 = vmax.f32 %v4297_v1, 0.0 }
 0xda7   : > { %v4252_v44 = vpop.f32.mrf.mxu1 }
 0xda8   : > { %v4299_v40 = vadd.f32 %v4252_v44, %v8425_v48  ;;  %4556 = vmatprep.mubr.bf16.mxu0 %v4350_v60  ;;  %v4330_v26 = vmax.f32 %v4298_v50, 0.0 }
 0xda9   : > { %v4254_v31 = vpop.f32.mrf.mxu1  ;;  %4557 = vmatmul.mubr.bf16.gmra.mxu0 %v4349_v21 }
 0xdaa   : > { %v4331_v16 = vmax.f32 %v4299_v40, 0.0  ;;  %v4300_v41 = vadd.f32 %v4254_v31, %v8428_v61 }
 0xdab   : > { %v4258_v54 = vpop.f32.mrf.mxu1 }
 0xdac   : > { %v4351_v30 = vpack.c.bf16 %v4331_v16, %v4329_v42  ;;  %v4332_v23 = vmax.f32 %v4300_v41, 0.0  ;;  %v4301_v32 = vadd.f32 %v4258_v54, %v8433_v15 }
 0xdad   : > { %v4260_v13 = vpop.f32.mrf.mxu1 }
 0xdae   : > { %v4352_v63 = vpack.c.bf16 %v4332_v23, %v4330_v26  ;;  %v4302_v56 = vadd.f32 %v4260_v13, %v8436_v8  ;;  %v4333_v61 = vmax.f32 %v4301_v32, 0.0  ;;  %v8846_v8 = vld [vmem:[#allocation58_spill] sm:$0xff] }
 0xdaf   : > { %v4262_v28 = vpop.f32.mrf.mxu1  ;;  %v3014_v11 = vadd.f32 %v8846_v8, %v2359_v5 }
 0xdb0   : > { %v4303_v48 = vadd.f32 %v4262_v28, %v8443_v43  ;;  %4564 = vmatprep.mubr.bf16.mxu0 %v4352_v63  ;;  %v4334_v45 = vmax.f32 %v4302_v56, 0.0 }
 0xdb1   : > { %v4264_v25 = vpop.f32.mrf.mxu1  ;;  %4565 = vmatmul.mubr.bf16.gmra.mxu0 %v4351_v30  ;;  %v3661_v35 = vadd.f32 %v8505_v51, %v3014_v11 }
 0xdb2   : > { %v4335_v12 = vmax.f32 %v4303_v48, 0.0  ;;  %v4304_v18 = vadd.f32 %v4264_v25, %v8446_v46 }
 0xdb3   : > { %v4268_v55 = vpop.f32.mrf.mxu1 }
 0xdb4   : > { %v4353_v15 = vpack.c.bf16 %v4335_v12, %v4333_v61  ;;  %v4336_v47 = vmax.f32 %v4304_v18, 0.0  ;;  %v4305_v39 = vadd.f32 %v4268_v55, %v8451_v9 }
 0xdb5   : > { %v4270_v7 = vpop.f32.mrf.mxu1 }
 0xdb6   : > { %v4354_v43 = vpack.c.bf16 %v4336_v47, %v4334_v45  ;;  %v4306_v57 = vadd.f32 %v4270_v7, %v8454_v3  ;;  %v4337_v49 = vmax.f32 %v4305_v39, 0.0  ;;  %v8561_v3 = vld [vmem:[%s8847_s21] ss:$0 sm:$0xff] }
 0xdb7   : > { %v4272_v19 = vpop.f32.mrf.mxu1 }
 0xdb8   : > { %v4307_v6 = vadd.f32 %v4272_v19, %v8459_v4  ;;  %4572 = vmatprep.mubr.bf16.mxu1 %v4354_v43  ;;  %v4338_v58 = vmax.f32 %v4306_v57, 0.0 }
 0xdb9   : > { %v4274_v46 = vpop.f32.mrf.mxu1  ;;  %4573 = vmatmul.mubr.bf16.vlgmr.msra.gmra.mxu1 %v4353_v15 }
 0xdba   : > { %v4339_v29 = vmax.f32 %v4307_v6, 0.0  ;;  %v4308_v10 = vadd.f32 %v4274_v46, %v3661_v35 }
 0xdbc   : > { %v4355_v14 = vpack.c.bf16 %v4339_v29, %v4337_v49  ;;  %v4340_v17 = vmax.f32 %v4308_v10, 0.0 }
 0xdbe   : > { %v4356_v37 = vpack.c.bf16 %v4340_v17, %v4338_v58 }
 0xdc0   : > { %4580 = vmatprep.mubr.bf16.mxu1 %v4356_v37 }
 0xdc1   : > { %4581 = vmatmul.mubr.bf16.gmra.mxu1 %v4355_v14 }
 0xe2a   : > { %v5348_v9 = vpop.f32.mrf.mxu0 }
 0xe2c   : > { %v5349_v4 = vpop.f32.mrf.mxu0 }
 0xe2d   : > { %v5350_v51 = vadd.f32 %v5349_v4, %v5348_v9 }
 0xe2e   : > { %v5351_v53 = vpop.f32.mrf.mxu0 }
 0xe2f   : > { %v4527_v27 = vadd.f32 %v5350_v51, %v8561_v3 }
 0xe30   : > { %v5352_v0 = vpop.f32.mrf.mxu0 }
 0xe31   : > { %4589 = vst [vmem:[%s7095_s22] sm:$0xff] %v4527_v27  ;;  %v5353_v62 = vadd.f32 %v5352_v0, %v5351_v53 }
 0xe32   : > { %v5354_v59 = vpop.f32.mrf.mxu0 }
 0xe33   : > { %v4530_v22 = vadd.f32 %v5353_v62, %v8561_v3 }
 0xe34   : > { %v5355_v20 = vpop.f32.mrf.mxu0 }
 0xe35   : > { %4590 = vst [vmem:[%s7095_s22 + $0x8] sm:$0xff] %v4530_v22  ;;  %v5356_v33 = vadd.f32 %v5355_v20, %v5354_v59 }
 0xe36   : > { %v5357_v21 = vpop.f32.mrf.mxu0 }
 0xe37   : > { %v4535_v34 = vadd.f32 %v5356_v33, %v8561_v3 }
 0xe38   : > { %v5358_v38 = vpop.f32.mrf.mxu0 }
 0xe39   : > { %4591 = vst [vmem:[%s7095_s22 + $0x10] sm:$0xff] %v4535_v34  ;;  %v5359_v60 = vadd.f32 %v5358_v38, %v5357_v21 }
 0xe3a   : > { %v5360_v1 = vpop.f32.mrf.mxu0 }
 0xe3b   : > { %v4538_v44 = vadd.f32 %v5359_v60, %v8561_v3 }
 0xe3c   : > { %v5361_v50 = vpop.f32.mrf.mxu0 }
 0xe3d   : > { %4592 = vst [vmem:[%s7095_s22 + $0x18] sm:$0xff] %v4538_v44  ;;  %v5362_v40 = vadd.f32 %v5361_v50, %v5360_v1 }
 0xe3e   : > { %v5363_v31 = vpop.f32.mrf.mxu0 }
 0xe3f   : > { %v4543_v42 = vadd.f32 %v5362_v40, %v8561_v3 }
 0xe40   : > { %v5364_v16 = vpop.f32.mrf.mxu0 }
 0xe41   : > { %4593 = vst [vmem:[%s7095_s22 + $0x20] sm:$0xff] %v4543_v42  ;;  %v5365_v41 = vadd.f32 %v5364_v16, %v5363_v31 }
 0xe42   : > { %v5366_v54 = vpop.f32.mrf.mxu0 }
 0xe43   : > { %v4546_v26 = vadd.f32 %v5365_v41, %v8561_v3 }
 0xe44   : > { %v5367_v30 = vpop.f32.mrf.mxu0 }
 0xe45   : > { %4594 = vst [vmem:[%s7095_s22 + $0x28] sm:$0xff] %v4546_v26  ;;  %v5368_v23 = vadd.f32 %v5367_v30, %v5366_v54 }
 0xe46   : > { %v5369_v13 = vpop.f32.mrf.mxu0 }
 0xe47   : > { %v4551_v63 = vadd.f32 %v5368_v23, %v8561_v3 }
 0xe48   : > { %v5370_v32 = vpop.f32.mrf.mxu0 }
 0xe49   : > { %4595 = vst [vmem:[%s7095_s22 + $0x30] sm:$0xff] %v4551_v63  ;;  %v5371_v28 = vadd.f32 %v5370_v32, %v5369_v13 }
 0xe4b   : > { %v4554_v56 = vadd.f32 %v5371_v28, %v8561_v3 }
 0xe4d   : > { %4596 = vst [vmem:[%s7095_s22 + $0x38] sm:$0xff] %v4554_v56 }
 0xe69   : > { %v5372_v48 = vpop.f32.mrf.mxu0 }
 0xe6b   : > { %v5373_v25 = vpop.f32.mrf.mxu0 }
 0xe6c   : > { %v5374_v24 = vadd.f32 %v5373_v25, %v5372_v48 }
 0xe6d   : > { %v5375_v36 = vpop.f32.mrf.mxu0 }
 0xe6e   : > { %v4559_v52 = vadd.f32 %v5374_v24, %v8561_v3 }
 0xe6f   : > { %v5376_v61 = vpop.f32.mrf.mxu0 }
 0xe70   : > { %4597 = vst [vmem:[%s7095_s22 + $0x40] sm:$0xff] %v4559_v52  ;;  %v5377_v12 = vadd.f32 %v5376_v61, %v5375_v36 }
 0xe71   : > { %v5378_v18 = vpop.f32.mrf.mxu0 }
 0xe72   : > { %v4562_v55 = vadd.f32 %v5377_v12, %v8561_v3 }
 0xe73   : > { %v5379_v2 = vpop.f32.mrf.mxu0 }
 0xe74   : > { %4598 = vst [vmem:[%s7095_s22 + $0x48] sm:$0xff] %v4562_v55  ;;  %v5380_v5 = vadd.f32 %v5379_v2, %v5378_v18 }
 0xe75   : > { %v5381_v45 = vpop.f32.mrf.mxu0 }
 0xe76   : > { %v4567_v15 = vadd.f32 %v5380_v5, %v8561_v3 }
 0xe77   : > { %v5382_v47 = vpop.f32.mrf.mxu0 }
 0xe78   : > { %4599 = vst [vmem:[%s7095_s22 + $0x50] sm:$0xff] %v4567_v15  ;;  %v5383_v7 = vadd.f32 %v5382_v47, %v5381_v45 }
 0xe79   : > { %v5384_v8 = vpop.f32.mrf.mxu1 }
 0xe7a   : > { %v4570_v11 = vadd.f32 %v5383_v7, %v8561_v3 }
 0xe7b   : > { %v5385_v43 = vpop.f32.mrf.mxu1 }
 0xe7c   : > { %4600 = vst [vmem:[%s7095_s22 + $0x58] sm:$0xff] %v4570_v11  ;;  %v5386_v39 = vadd.f32 %v5385_v43, %v5384_v8 }
 0xe7d   : > { %v5387_v19 = vpop.f32.mrf.mxu1 }
 0xe7e   : > { %v4575_v35 = vadd.f32 %v5386_v39, %v8561_v3 }
 0xe7f   : > { %v5388_v57 = vpop.f32.mrf.mxu1 }
 0xe80   : > { %4601 = vst [vmem:[%s7095_s22 + $0x60] sm:$0xff] %v4575_v35  ;;  %v5389_v6 = vadd.f32 %v5388_v57, %v5387_v19 }
 0xe81   : > { %v5390_v46 = vpop.f32.mrf.mxu1 }
 0xe82   : > { %v4578_v49 = vadd.f32 %v5389_v6, %v8561_v3 }
 0xe83   : > { %v5391_v29 = vpop.f32.mrf.mxu1 }
 0xe84   : > { %4602 = vst [vmem:[%s7095_s22 + $0x68] sm:$0xff] %v4578_v49  ;;  %v5392_v10 = vadd.f32 %v5391_v29, %v5390_v46 }
 0xe85   : > { %v5393_v58 = vpop.f32.mrf.mxu1 }
 0xe86   : > { %v4583_v14 = vadd.f32 %v5392_v10, %v8561_v3 }
 0xe87   : > { %v5394_v17 = vpop.f32.mrf.mxu1 }
 0xe88   : > { %4603 = vst [vmem:[%s7095_s22 + $0x70] sm:$0xff] %v4583_v14  ;;  %v5395_v37 = vadd.f32 %v5394_v17, %v5393_v58 }
 0xe8a   : > { %v4586_v9 = vadd.f32 %v5395_v37, %v8561_v3 }
 0xe8c   : > { %4604 = vst [vmem:[%s7095_s22 + $0x78] sm:$0xff] %v4586_v9 }
 0xe8d   : > { %6595 = shalt.err (!%p6592_p0)
}
 0xe8e   : > { %s6596_s22 = scalar_lea.hbm %s8599_s7, 2048  ;;  %s6600_s21 = scalar_lea.hbm %s8850_s4, 8192 }
 0xe8f   : > { %p6597_p7 = scmp.ne.s32.totalorder %s8599_s7, %s6596_s22  ;;  %p6601_p4 = scmp.lt.s32.totalorder %s8599_s7, %s8850_s4 }
 0xe90   : > { %p6602_p5 = scmp.lt.s32.totalorder %s6600_s21, %s6596_s22 }
 0xe91   : > { %p6598_p9 = pnand %p6597_p7, %p6981_p2 }
 0xe92   : > { %p6603_p1 = por %p6602_p5, %p6601_p4 }
 0xe93   : > { %p6599_p8 = pneg %p6598_p9 }
 0xe95   : > { %p6604_p10 = pnand %p6603_p1, %p6599_p8 }
 0xe97   : > { %6607 = shalt.err (!%p6604_p10)
}
 0xe98   : > { %s6741_s23 = smov 128   ;;  %s6742_s14 = smov 8  }
 0xe99   : > { %5824 = dma.vmem_to_hbm [thread:$0]  (%p6981_p2), %s8601_s8, 2048, %s8599_s7, %s4606_s5, %s6741_s23, %s6741_s23, %s6742_s14  }
 0xe9a PF: > { %s8851_s3 = sld [smem:[#allocation26_spill]]  ;;  %p5869_p12 = scmp.ge.s32.totalorder %s6722_s18, 2 }
 0xe9b   : > { %s8852_s25 = sld [smem:[#allocation32_spill]] }
 0xea0   : > { %s4636_s9 = sand.u32 1, %s8851_s3  }
 0xea1   : > { %p8853_p13 = scmp.ne.s32.totalorder %s8852_s25, 0  ;;  %s4637_s11 = scalar_lea.sflag [#allocation6], %s4636_s9 }
 0xea3   : > { %p5853_p11 = pnand %p5869_p12, %p8853_p13 }
 0xea5   : > { %p5854_p3 = pneg %p5853_p11 }
 0xea7   : > { %6677 = dma.done.wait (%p5854_p3), %s4637_s11, 2048  }
 0xea8   : > { %6679 = vsyncadd (%p5854_p3), %s4637_s11, 4294965248  ;;  %s35_s18 = sadd.s32 1, %s6722_s18   ;;  %s8854_s12 = sld [smem:[#allocation33_spill]] }
 0xea9   : > { %p32_p6 = scmp.ge.s32.totalorder %s35_s18, 6   ;;  %s8855_s14 = sld [smem:[#allocation29_spill]] }
 0xeaa   : > { %s8856_s16 = sld [smem:[#allocation30_spill]]  ;;  %s8858_s25 = smov %s6686_s26 }
 0xeab   : > { %s8857_s8 = sld [smem:[#allocation31_spill]]  ;;  %s8859_s26 = smov %s6690_s27 }
 0xeac   : > { %s8860_s27 = smov %s7026_s28  ;;  %s8861_s28 = smov %s6698_s29 }
 0xead   : > { %s8862_s29 = smov %s6702_s30  ;;  %s8864_s15 = smov %s6718_s17 }
 0xeae   : > { %s8863_s30 = smov %s8854_s12  ;;  %34 = sbr.rel (!%p32_p6) target bundleno = 27 (0x1b), region = 158 }
 0xeb1   : > { %s8865_s17 = smov %s8857_s8 }
 0xeb3   :  { %4642 = vsyncpa [#allocation5], 1 }
 0xeb4   :  { %4644 = vsyncpa [#allocation5 + $0x1], 1 }
 0xeb5   :  { %4645 = vsyncpa [#allocation8], 1 }
 0xeb6   :  { %4647 = vsyncpa [#allocation8 + $0x1], 1 }
 0xeb7   :  { %4648 = vsyncpa [#allocation11], 1 }
 0xeb8   :  { %4649 = vsyncpa [#allocation14], 1 }
 0xeb9   :  { %4650 = vsyncpa [#allocation17], 1 }
 0xeba   :  { %4651 = vsyncpa [#allocation6], 1 }
 0xebb   :  { %4653 = vsyncpa [#allocation6 + $0x1], 1 }

</bundles_post_ra>
